<compile_context>
chip_gen: v7x
topology: tpu7x:2x2x1
jax: 0.10.0
libtpu: 0.0.40
codegen_flags: <defaults>
</compile_context>

<pallas_src>
import functools

import jax
import jax.numpy as jnp
from jax.experimental import pallas as pl
from jax.experimental.pallas import tpu as pltpu


# Order in which stacked/pre-transposed parameters are passed to the fused kernel.
_PARAM_ORDER = (
    # encoder layers (stacked over n_enc)
    "enc_qkv_w", "enc_qkv_b", "enc_proj_w", "enc_proj_b",
    "enc_ln1_g", "enc_ln1_b",
    "enc_ff1_w", "enc_ff1_b", "enc_ff2_w", "enc_ff2_b",
    "enc_ln2_g", "enc_ln2_b",
    # final encoder norm
    "enc_norm_g", "enc_norm_b",
    # decoder layers (stacked over n_dec)
    "dec_sa_qkv_w", "dec_sa_qkv_b", "dec_sa_proj_w", "dec_sa_proj_b",
    "dec_ln1_g", "dec_ln1_b",
    "dec_ca_q_w", "dec_ca_q_b", "dec_ca_kv_w", "dec_ca_kv_b",
    "dec_ca_proj_w", "dec_ca_proj_b",
    "dec_ln2_g", "dec_ln2_b",
    "dec_ff1_w", "dec_ff1_b", "dec_ff2_w", "dec_ff2_b",
    "dec_ln3_g", "dec_ln3_b",
    # final decoder norm
    "dec_norm_g", "dec_norm_b",
    # classifier
    "fc_w", "fc_b",
)


# ----------------------------------------------------------------------------- #
# Fused whole-model kernel (one grid step == one batch element)
# ----------------------------------------------------------------------------- #
def _fused_transformer_kernel(src_ref, trg_ref, causal_ref, *refs,
                              n_enc, n_dec, num_heads,
                              eps=1e-5, matmul_dtype=jnp.float32):
    out_ref = refs[-1]
    p = dict(zip(_PARAM_ORDER, refs[:-1]))

    E = src_ref.shape[-1]
    D = E // num_heads
    scale = 1.0 / (D ** 0.5)

    def matmul(x, w, b):
        # On v5e/v6e matmul_dtype=jnp.bfloat16 uses the native MXU path (f32 accumulation);
        # default f32 keeps PyTorch-level numerics.
        acc = jnp.dot(x.astype(matmul_dtype), w.astype(matmul_dtype),
                      preferred_element_type=jnp.float32)
        return acc + b

    def layer_norm(x, g, b):
        mu = jnp.mean(x, axis=-1, keepdims=True)
        var = jnp.mean(jnp.square(x - mu), axis=-1, keepdims=True)   # biased, like torch
        return (x - mu) * jax.lax.rsqrt(var + eps) * g + b

    def attention(q, k, v, mask):
        # q: [Lq, E], k/v: [Lkv, E]; per-head loop unrolled (H=4 tiny matmuls, all in VMEM).
        head_outs = []
        for h in range(num_heads):
            qh = q[:, h * D:(h + 1) * D]
            kh = k[:, h * D:(h + 1) * D]
            vh = v[:, h * D:(h + 1) * D]
            s = jax.lax.dot_general(            # contract last dims -> no k transpose
                qh.astype(matmul_dtype), kh.astype(matmul_dtype),
                (((1,), (1,)), ((), ())),
                preferred_element_type=jnp.float32) * scale
            if mask is not None:
                s = s + mask
            m = jnp.max(s, axis=-1, keepdims=True)
            e = jnp.exp(s - m)
            r = pl.reciprocal(jnp.sum(e, axis=-1, keepdims=True), approx=True)
            pr = (e * r).astype(matmul_dtype)
            head_outs.append(jnp.dot(pr, vh.astype(matmul_dtype),
                                     preferred_element_type=jnp.float32))
        return jnp.concatenate(head_outs, axis=-1)   # [Lq, E]

    # ------------------------- encoder ------------------------- #
    x = src_ref[...]                       # [S, E]
    for l in range(n_enc):
        qkv = matmul(x, p["enc_qkv_w"][l], p["enc_qkv_b"][l])            # fused QKV [S, 3E]
        a = attention(qkv[:, :E], qkv[:, E:2 * E], qkv[:, 2 * E:], None)  # src_mask == no mask
        a = matmul(a, p["enc_proj_w"][l], p["enc_proj_b"][l])
        x = layer_norm(x + a, p["enc_ln1_g"][l], p["enc_ln1_b"][l])
        h = jnp.maximum(matmul(x, p["enc_ff1_w"][l], p["enc_ff1_b"][l]), 0.0)
        h = matmul(h, p["enc_ff2_w"][l], p["enc_ff2_b"][l])
        x = layer_norm(x + h, p["enc_ln2_g"][l], p["enc_ln2_b"][l])
    memory = layer_norm(x, p["enc_norm_g"][...], p["enc_norm_b"][...])   # [S, E]

    # ------------------------- decoder ------------------------- #
    y = trg_ref[...]                       # [T, E]
    causal = causal_ref[...]               # [T, T] additive mask
    for l in range(n_dec):
        # masked self-attention (fused QKV)
        qkv = matmul(y, p["dec_sa_qkv_w"][l], p["dec_sa_qkv_b"][l])
        sa = attention(qkv[:, :E], qkv[:, E:2 * E], qkv[:, 2 * E:], causal)
        sa = matmul(sa, p["dec_sa_proj_w"][l], p["dec_sa_proj_b"][l])
        y = layer_norm(y + sa, p["dec_ln1_g"][l], p["dec_ln1_b"][l])
        # cross-attention (fused KV from memory)
        q = matmul(y, p["dec_ca_q_w"][l], p["dec_ca_q_b"][l])
        kv = matmul(memory, p["dec_ca_kv_w"][l], p["dec_ca_kv_b"][l])
        ca = attention(q, kv[:, :E], kv[:, E:], None)                    # memory_mask == no mask
        ca = matmul(ca, p["dec_ca_proj_w"][l], p["dec_ca_proj_b"][l])
        y = layer_norm(y + ca, p["dec_ln2_g"][l], p["dec_ln2_b"][l])
        # feed-forward
        h = jnp.maximum(matmul(y, p["dec_ff1_w"][l], p["dec_ff1_b"][l]), 0.0)
        h = matmul(h, p["dec_ff2_w"][l], p["dec_ff2_b"][l])
        y = layer_norm(y + h, p["dec_ln3_g"][l], p["dec_ln3_b"][l])
    y = layer_norm(y, p["dec_norm_g"][...], p["dec_norm_b"][...])        # [T, E]

    # classifier head (out.permute(1,0,2) is free: the grid already is batch-major)
    out_ref[...] = matmul(y, p["fc_w"][...], p["fc_b"][...]).astype(out_ref.dtype)


# ----------------------------------------------------------------------------- #
# Wrapper
# ----------------------------------------------------------------------------- #
def cot_transformer_forward(params, embed_src, query_embed, num_heads, n_enc, n_dec):
    """embed_src: [S, N, E], query_embed: [T, E] -> [N, T, num_cls]."""
    S, N, E = embed_src.shape
    T = query_embed.shape[0]
    C = params["fc_b"].shape[-1]
    assert E % num_heads == 0

    # Input layout plumbing done once outside the kernel (batch-major slabs).
    src = embed_src.astype(jnp.float32).transpose(1, 0, 2)                # [N, S, E]
    trg_row = query_embed.astype(jnp.float32) + params["trg_pos_emb"][:T]  # [T, E]
    trg = jnp.broadcast_to(trg_row[None], (N, T, E))                      # [N, T, E]
    # nn.Transformer.generate_square_subsequent_mask semantics (additive -inf above diag).
    causal = jnp.where(jnp.arange(T)[:, None] >= jnp.arange(T)[None, :],
                       0.0, -jnp.inf).astype(jnp.float32)                 # [T, T]

    weights = [params[k] for k in _PARAM_ORDER]

    def _const_spec(arr):  # whole array resident in VMEM, never re-fetched across grid steps
        nd = arr.ndim
        return pl.BlockSpec(arr.shape, lambda n, nd=nd: (0,) * nd)

    kernel = functools.partial(_fused_transformer_kernel,
                               n_enc=n_enc, n_dec=n_dec, num_heads=num_heads)

    out = pl.pallas_call(
        kernel,
        out_shape=jax.ShapeDtypeStruct((N, T, C), jnp.float32),
        grid=(N,),
        in_specs=[
            pl.BlockSpec((None, S, E), lambda n: (n, 0, 0)),   # src slab for batch n
            pl.BlockSpec((None, T, E), lambda n: (n, 0, 0)),   # trg slab for batch n
            pl.BlockSpec((T, T), lambda n: (0, 0)),            # causal mask
        ] + [_const_spec(w) for w in weights],
        out_specs=pl.BlockSpec((None, T, C), lambda n: (n, 0, 0)),
        compiler_params=pltpu.CompilerParams(
            dimension_semantics=("parallel",)),                # batch -> v7x megacore
    )(src, trg, causal, *weights)
    return out                                                 # [N, T, C]


# ----------------------------------------------------------------------------- #
# Deterministic parameter initialization (stacked per layer, weights stored [in, out], f32)
# ----------------------------------------------------------------------------- #
def _init_params(key, E, num_cls, num_heads, n_enc, n_dec, ff, trg_len):
    keys = iter(jax.random.split(key, 64))

    def rnd(shape, scale=0.02):
        return (scale * jax.random.normal(next(keys), shape)).astype(jnp.float32)

    def zeros(shape):
        return jnp.zeros(shape, jnp.float32)

    def ones(shape):
        return jnp.ones(shape, jnp.float32)

    return {
        "trg_pos_emb": rnd((trg_len, E)),
        # ---- encoder ----
        "enc_qkv_w": rnd((n_enc, E, 3 * E)), "enc_qkv_b": zeros((n_enc, 1, 3 * E)),
        "enc_proj_w": rnd((n_enc, E, E)),    "enc_proj_b": zeros((n_enc, 1, E)),
        "enc_ln1_g": ones((n_enc, 1, E)),    "enc_ln1_b": zeros((n_enc, 1, E)),
        "enc_ff1_w": rnd((n_enc, E, ff)),    "enc_ff1_b": zeros((n_enc, 1, ff)),
        "enc_ff2_w": rnd((n_enc, ff, E)),    "enc_ff2_b": zeros((n_enc, 1, E)),
        "enc_ln2_g": ones((n_enc, 1, E)),    "enc_ln2_b": zeros((n_enc, 1, E)),
        "enc_norm_g": ones((1, E)),          "enc_norm_b": zeros((1, E)),
        # ---- decoder ----
        "dec_sa_qkv_w": rnd((n_dec, E, 3 * E)), "dec_sa_qkv_b": zeros((n_dec, 1, 3 * E)),
        "dec_sa_proj_w": rnd((n_dec, E, E)),    "dec_sa_proj_b": zeros((n_dec, 1, E)),
        "dec_ln1_g": ones((n_dec, 1, E)),       "dec_ln1_b": zeros((n_dec, 1, E)),
        "dec_ca_q_w": rnd((n_dec, E, E)),       "dec_ca_q_b": zeros((n_dec, 1, E)),
        "dec_ca_kv_w": rnd((n_dec, E, 2 * E)),  "dec_ca_kv_b": zeros((n_dec, 1, 2 * E)),
        "dec_ca_proj_w": rnd((n_dec, E, E)),    "dec_ca_proj_b": zeros((n_dec, 1, E)),
        "dec_ln2_g": ones((n_dec, 1, E)),       "dec_ln2_b": zeros((n_dec, 1, E)),
        "dec_ff1_w": rnd((n_dec, E, ff)),       "dec_ff1_b": zeros((n_dec, 1, ff)),
        "dec_ff2_w": rnd((n_dec, ff, E)),       "dec_ff2_b": zeros((n_dec, 1, E)),
        "dec_ln3_g": ones((n_dec, 1, E)),       "dec_ln3_b": zeros((n_dec, 1, E)),
        "dec_norm_g": ones((1, E)),             "dec_norm_b": zeros((1, E)),
        # ---- classifier ----
        "fc_w": rnd((E, num_cls)), "fc_b": zeros((1, num_cls)),
    }


# ----------------------------------------------------------------------------- #
if __name__ == "__main__":
    # module hyperparameters (small)
    E = 32           # embedding_size
    NUM_CLS = 12
    NUM_HEADS = 4
    N_ENC = 2
    N_DEC = 2
    FF = 64          # forward_expansion (dim_feedforward)
    TRG_LEN = 6

    # inputs: embed_src [src_seq, N, E], query_embed [trg_len, E]
    S, N = 10, 2
    key = jax.random.PRNGKey(0)
    k_param, k_src, k_qry = jax.random.split(key, 3)

    params = _init_params(k_param, E, NUM_CLS, NUM_HEADS, N_ENC, N_DEC, FF, TRG_LEN)
    embed_src = jax.random.normal(k_src, (S, N, E), dtype=jnp.float32)
    query_embed = jax.random.normal(k_qry, (TRG_LEN, E), dtype=jnp.float32)

    fwd = jax.jit(functools.partial(cot_transformer_forward,
                                    num_heads=NUM_HEADS, n_enc=N_ENC, n_dec=N_DEC))
    out = jax.block_until_ready(fwd(params, embed_src, query_embed))

    assert out.shape == (N, TRG_LEN, NUM_CLS), out.shape
    assert bool(jnp.all(jnp.isfinite(out)))
    print("KERNEL_OK")
</pallas_src>

<mosaic_0001>
module attributes {stable_mosaic.version = 11 : i64} {
  func.func @_fused_transformer_kernel(%arg0: i32, %arg1: memref<1x10x32xf32, #tpu.memory_space<vmem>>, %arg2: memref<1x6x32xf32, #tpu.memory_space<vmem>>, %arg3: memref<6x6xf32, #tpu.memory_space<vmem>>, %arg4: memref<2x32x96xf32, #tpu.memory_space<vmem>>, %arg5: memref<2x1x96xf32, #tpu.memory_space<vmem>>, %arg6: memref<2x32x32xf32, #tpu.memory_space<vmem>>, %arg7: memref<2x1x32xf32, #tpu.memory_space<vmem>>, %arg8: memref<2x1x32xf32, #tpu.memory_space<vmem>>, %arg9: memref<2x1x32xf32, #tpu.memory_space<vmem>>, %arg10: memref<2x32x64xf32, #tpu.memory_space<vmem>>, %arg11: memref<2x1x64xf32, #tpu.memory_space<vmem>>, %arg12: memref<2x64x32xf32, #tpu.memory_space<vmem>>, %arg13: memref<2x1x32xf32, #tpu.memory_space<vmem>>, %arg14: memref<2x1x32xf32, #tpu.memory_space<vmem>>, %arg15: memref<2x1x32xf32, #tpu.memory_space<vmem>>, %arg16: memref<1x32xf32, #tpu.memory_space<vmem>>, %arg17: memref<1x32xf32, #tpu.memory_space<vmem>>, %arg18: memref<2x32x96xf32, #tpu.memory_space<vmem>>, %arg19: memref<2x1x96xf32, #tpu.memory_space<vmem>>, %arg20: memref<2x32x32xf32, #tpu.memory_space<vmem>>, %arg21: memref<2x1x32xf32, #tpu.memory_space<vmem>>, %arg22: memref<2x1x32xf32, #tpu.memory_space<vmem>>, %arg23: memref<2x1x32xf32, #tpu.memory_space<vmem>>, %arg24: memref<2x32x32xf32, #tpu.memory_space<vmem>>, %arg25: memref<2x1x32xf32, #tpu.memory_space<vmem>>, %arg26: memref<2x32x64xf32, #tpu.memory_space<vmem>>, %arg27: memref<2x1x64xf32, #tpu.memory_space<vmem>>, %arg28: memref<2x32x32xf32, #tpu.memory_space<vmem>>, %arg29: memref<2x1x32xf32, #tpu.memory_space<vmem>>, %arg30: memref<2x1x32xf32, #tpu.memory_space<vmem>>, %arg31: memref<2x1x32xf32, #tpu.memory_space<vmem>>, %arg32: memref<2x32x64xf32, #tpu.memory_space<vmem>>, %arg33: memref<2x1x64xf32, #tpu.memory_space<vmem>>, %arg34: memref<2x64x32xf32, #tpu.memory_space<vmem>>, %arg35: memref<2x1x32xf32, #tpu.memory_space<vmem>>, %arg36: memref<2x1x32xf32, #tpu.memory_space<vmem>>, %arg37: memref<2x1x32xf32, #tpu.memory_space<vmem>>, %arg38: memref<1x32xf32, #tpu.memory_space<vmem>>, %arg39: memref<1x32xf32, #tpu.memory_space<vmem>>, %arg40: memref<32x12xf32, #tpu.memory_space<vmem>>, %arg41: memref<1x12xf32, #tpu.memory_space<vmem>>, %arg42: memref<1x6x12xf32, #tpu.memory_space<vmem>>) attributes {dimension_semantics = [#tpu.dimension_semantics<parallel>], iteration_bounds = array<i64: 2>, scalar_prefetch = 0 : i64, scratch_operands = 0 : i64, tpu.core_type = #tpu.core_type<tc>, window_params = [{transform_indices = @transform_0, window_bounds = array<i64: 1, 10, 32>}, {transform_indices = @transform_1, window_bounds = array<i64: 1, 6, 32>}, {pipeline_mode = #tpu.pipeline_mode<synchronous>, transform_indices = @transform_2, window_bounds = array<i64: 6, 6>}, {pipeline_mode = #tpu.pipeline_mode<synchronous>, transform_indices = @transform_3, window_bounds = array<i64: 2, 32, 96>}, {pipeline_mode = #tpu.pipeline_mode<synchronous>, transform_indices = @transform_4, window_bounds = array<i64: 2, 1, 96>}, {pipeline_mode = #tpu.pipeline_mode<synchronous>, transform_indices = @transform_5, window_bounds = array<i64: 2, 32, 32>}, {pipeline_mode = #tpu.pipeline_mode<synchronous>, transform_indices = @transform_6, window_bounds = array<i64: 2, 1, 32>}, {pipeline_mode = #tpu.pipeline_mode<synchronous>, transform_indices = @transform_7, window_bounds = array<i64: 2, 1, 32>}, {pipeline_mode = #tpu.pipeline_mode<synchronous>, transform_indices = @transform_8, window_bounds = array<i64: 2, 1, 32>}, {pipeline_mode = #tpu.pipeline_mode<synchronous>, transform_indices = @transform_9, window_bounds = array<i64: 2, 32, 64>}, {pipeline_mode = #tpu.pipeline_mode<synchronous>, transform_indices = @transform_10, window_bounds = array<i64: 2, 1, 64>}, {pipeline_mode = #tpu.pipeline_mode<synchronous>, transform_indices = @transform_11, window_bounds = array<i64: 2, 64, 32>}, {pipeline_mode = #tpu.pipeline_mode<synchronous>, transform_indices = @transform_12, window_bounds = array<i64: 2, 1, 32>}, {pipeline_mode = #tpu.pipeline_mode<synchronous>, transform_indices = @transform_13, window_bounds = array<i64: 2, 1, 32>}, {pipeline_mode = #tpu.pipeline_mode<synchronous>, transform_indices = @transform_14, window_bounds = array<i64: 2, 1, 32>}, {pipeline_mode = #tpu.pipeline_mode<synchronous>, transform_indices = @transform_15, window_bounds = array<i64: 1, 32>}, {pipeline_mode = #tpu.pipeline_mode<synchronous>, transform_indices = @transform_16, window_bounds = array<i64: 1, 32>}, {pipeline_mode = #tpu.pipeline_mode<synchronous>, transform_indices = @transform_17, window_bounds = array<i64: 2, 32, 96>}, {pipeline_mode = #tpu.pipeline_mode<synchronous>, transform_indices = @transform_18, window_bounds = array<i64: 2, 1, 96>}, {pipeline_mode = #tpu.pipeline_mode<synchronous>, transform_indices = @transform_19, window_bounds = array<i64: 2, 32, 32>}, {pipeline_mode = #tpu.pipeline_mode<synchronous>, transform_indices = @transform_20, window_bounds = array<i64: 2, 1, 32>}, {pipeline_mode = #tpu.pipeline_mode<synchronous>, transform_indices = @transform_21, window_bounds = array<i64: 2, 1, 32>}, {pipeline_mode = #tpu.pipeline_mode<synchronous>, transform_indices = @transform_22, window_bounds = array<i64: 2, 1, 32>}, {pipeline_mode = #tpu.pipeline_mode<synchronous>, transform_indices = @transform_23, window_bounds = array<i64: 2, 32, 32>}, {pipeline_mode = #tpu.pipeline_mode<synchronous>, transform_indices = @transform_24, window_bounds = array<i64: 2, 1, 32>}, {pipeline_mode = #tpu.pipeline_mode<synchronous>, transform_indices = @transform_25, window_bounds = array<i64: 2, 32, 64>}, {pipeline_mode = #tpu.pipeline_mode<synchronous>, transform_indices = @transform_26, window_bounds = array<i64: 2, 1, 64>}, {pipeline_mode = #tpu.pipeline_mode<synchronous>, transform_indices = @transform_27, window_bounds = array<i64: 2, 32, 32>}, {pipeline_mode = #tpu.pipeline_mode<synchronous>, transform_indices = @transform_28, window_bounds = array<i64: 2, 1, 32>}, {pipeline_mode = #tpu.pipeline_mode<synchronous>, transform_indices = @transform_29, window_bounds = array<i64: 2, 1, 32>}, {pipeline_mode = #tpu.pipeline_mode<synchronous>, transform_indices = @transform_30, window_bounds = array<i64: 2, 1, 32>}, {pipeline_mode = #tpu.pipeline_mode<synchronous>, transform_indices = @transform_31, window_bounds = array<i64: 2, 32, 64>}, {pipeline_mode = #tpu.pipeline_mode<synchronous>, transform_indices = @transform_32, window_bounds = array<i64: 2, 1, 64>}, {pipeline_mode = #tpu.pipeline_mode<synchronous>, transform_indices = @transform_33, window_bounds = array<i64: 2, 64, 32>}, {pipeline_mode = #tpu.pipeline_mode<synchronous>, transform_indices = @transform_34, window_bounds = array<i64: 2, 1, 32>}, {pipeline_mode = #tpu.pipeline_mode<synchronous>, transform_indices = @transform_35, window_bounds = array<i64: 2, 1, 32>}, {pipeline_mode = #tpu.pipeline_mode<synchronous>, transform_indices = @transform_36, window_bounds = array<i64: 2, 1, 32>}, {pipeline_mode = #tpu.pipeline_mode<synchronous>, transform_indices = @transform_37, window_bounds = array<i64: 1, 32>}, {pipeline_mode = #tpu.pipeline_mode<synchronous>, transform_indices = @transform_38, window_bounds = array<i64: 1, 32>}, {pipeline_mode = #tpu.pipeline_mode<synchronous>, transform_indices = @transform_39, window_bounds = array<i64: 32, 12>}, {pipeline_mode = #tpu.pipeline_mode<synchronous>, transform_indices = @transform_40, window_bounds = array<i64: 1, 12>}, {transform_indices = @transform_41, window_bounds = array<i64: 1, 6, 12>}]} {
    %c0 = arith.constant 0 : index
    %c0_0 = arith.constant 0 : index
    %c0_1 = arith.constant 0 : index
    %0 = vector.load %arg1[%c0, %c0_0, %c0_1] : memref<1x10x32xf32, #tpu.memory_space<vmem>>, vector<1x10x32xf32>
    %1 = vector.shape_cast %0 : vector<1x10x32xf32> to vector<10x32xf32>
    %c0_2 = arith.constant 0 : index
    %c0_3 = arith.constant 0 : index
    %c0_4 = arith.constant 0 : index
    %2 = vector.load %arg4[%c0_2, %c0_3, %c0_4] : memref<2x32x96xf32, #tpu.memory_space<vmem>>, vector<1x32x96xf32>
    %3 = vector.shape_cast %2 : vector<1x32x96xf32> to vector<32x96xf32>
    %c0_5 = arith.constant 0 : index
    %c0_6 = arith.constant 0 : index
    %c0_7 = arith.constant 0 : index
    %4 = vector.load %arg5[%c0_5, %c0_6, %c0_7] : memref<2x1x96xf32, #tpu.memory_space<vmem>>, vector<1x1x96xf32>
    %5 = vector.shape_cast %4 : vector<1x1x96xf32> to vector<1x96xf32>
    %cst = arith.constant dense<0.000000e+00> : vector<10x96xf32>
    %6 = tpu.matmul %1, %3, %cst {dimension_numbers = #tpu.dot_dimension_numbers<[1], [0], [0], [1], [0, 0, 1, 1], [], []>} : vector<10x32xf32>, vector<32x96xf32>, vector<10x96xf32> -> vector<10x96xf32>
    %7 = vector.broadcast %5 : vector<1x96xf32> to vector<10x96xf32>
    %8 = arith.addf %6, %7 : vector<10x96xf32>
    %9 = vector.extract_strided_slice %8 {offsets = [0, 0], sizes = [10, 32], strides = [1, 1]} : vector<10x96xf32> to vector<10x32xf32>
    %10 = vector.extract_strided_slice %8 {offsets = [0, 32], sizes = [10, 32], strides = [1, 1]} : vector<10x96xf32> to vector<10x32xf32>
    %11 = vector.extract_strided_slice %8 {offsets = [0, 64], sizes = [10, 32], strides = [1, 1]} : vector<10x96xf32> to vector<10x32xf32>
    %12 = vector.extract_strided_slice %9 {offsets = [0, 0], sizes = [10, 8], strides = [1, 1]} : vector<10x32xf32> to vector<10x8xf32>
    %13 = vector.extract_strided_slice %10 {offsets = [0, 0], sizes = [10, 8], strides = [1, 1]} : vector<10x32xf32> to vector<10x8xf32>
    %14 = vector.extract_strided_slice %11 {offsets = [0, 0], sizes = [10, 8], strides = [1, 1]} : vector<10x32xf32> to vector<10x8xf32>
    %cst_8 = arith.constant dense<0.000000e+00> : vector<10x10xf32>
    %15 = tpu.matmul %12, %13, %cst_8 {dimension_numbers = #tpu.dot_dimension_numbers<[1], [1], [0], [0], [0, 0, 1, 0], [], []>} : vector<10x8xf32>, vector<10x8xf32>, vector<10x10xf32> -> vector<10x10xf32>
    %cst_9 = arith.constant 0.353553385 : f32
    %16 = vector.broadcast %cst_9 : f32 to vector<10x10xf32>
    %17 = arith.mulf %15, %16 : vector<10x10xf32>
    %cst_10 = arith.constant dense<0xFF800000> : vector<10xf32>
    %18 = vector.multi_reduction <maximumf>, %17, %cst_10 [1] : vector<10x10xf32> to vector<10xf32>
    %19 = vector.shape_cast %18 : vector<10xf32> to vector<10x1xf32>
    %20 = vector.broadcast %19 : vector<10x1xf32> to vector<10x10xf32>
    %21 = arith.subf %17, %20 : vector<10x10xf32>
    %22 = math.exp %21 : vector<10x10xf32>
    %cst_11 = arith.constant dense<0.000000e+00> : vector<10xf32>
    %23 = vector.multi_reduction <add>, %22, %cst_11 [1] : vector<10x10xf32> to vector<10xf32>
    %24 = vector.shape_cast %23 : vector<10xf32> to vector<10x1xf32>
    %25 = tpu.reciprocal %24 {approx = true} : vector<10x1xf32> -> vector<10x1xf32>
    %26 = vector.broadcast %25 : vector<10x1xf32> to vector<10x10xf32>
    %27 = arith.mulf %22, %26 : vector<10x10xf32>
    %cst_12 = arith.constant dense<0.000000e+00> : vector<10x8xf32>
    %28 = tpu.matmul %27, %14, %cst_12 {dimension_numbers = #tpu.dot_dimension_numbers<[1], [0], [0], [1], [0, 0, 1, 1], [], []>} : vector<10x10xf32>, vector<10x8xf32>, vector<10x8xf32> -> vector<10x8xf32>
    %29 = vector.extract_strided_slice %9 {offsets = [0, 8], sizes = [10, 8], strides = [1, 1]} : vector<10x32xf32> to vector<10x8xf32>
    %30 = vector.extract_strided_slice %10 {offsets = [0, 8], sizes = [10, 8], strides = [1, 1]} : vector<10x32xf32> to vector<10x8xf32>
    %31 = vector.extract_strided_slice %11 {offsets = [0, 8], sizes = [10, 8], strides = [1, 1]} : vector<10x32xf32> to vector<10x8xf32>
    %cst_13 = arith.constant dense<0.000000e+00> : vector<10x10xf32>
    %32 = tpu.matmul %29, %30, %cst_13 {dimension_numbers = #tpu.dot_dimension_numbers<[1], [1], [0], [0], [0, 0, 1, 0], [], []>} : vector<10x8xf32>, vector<10x8xf32>, vector<10x10xf32> -> vector<10x10xf32>
    %cst_14 = arith.constant 0.353553385 : f32
    %33 = vector.broadcast %cst_14 : f32 to vector<10x10xf32>
    %34 = arith.mulf %32, %33 : vector<10x10xf32>
    %cst_15 = arith.constant dense<0xFF800000> : vector<10xf32>
    %35 = vector.multi_reduction <maximumf>, %34, %cst_15 [1] : vector<10x10xf32> to vector<10xf32>
    %36 = vector.shape_cast %35 : vector<10xf32> to vector<10x1xf32>
    %37 = vector.broadcast %36 : vector<10x1xf32> to vector<10x10xf32>
    %38 = arith.subf %34, %37 : vector<10x10xf32>
    %39 = math.exp %38 : vector<10x10xf32>
    %cst_16 = arith.constant dense<0.000000e+00> : vector<10xf32>
    %40 = vector.multi_reduction <add>, %39, %cst_16 [1] : vector<10x10xf32> to vector<10xf32>
    %41 = vector.shape_cast %40 : vector<10xf32> to vector<10x1xf32>
    %42 = tpu.reciprocal %41 {approx = true} : vector<10x1xf32> -> vector<10x1xf32>
    %43 = vector.broadcast %42 : vector<10x1xf32> to vector<10x10xf32>
    %44 = arith.mulf %39, %43 : vector<10x10xf32>
    %cst_17 = arith.constant dense<0.000000e+00> : vector<10x8xf32>
    %45 = tpu.matmul %44, %31, %cst_17 {dimension_numbers = #tpu.dot_dimension_numbers<[1], [0], [0], [1], [0, 0, 1, 1], [], []>} : vector<10x10xf32>, vector<10x8xf32>, vector<10x8xf32> -> vector<10x8xf32>
    %46 = vector.extract_strided_slice %9 {offsets = [0, 16], sizes = [10, 8], strides = [1, 1]} : vector<10x32xf32> to vector<10x8xf32>
    %47 = vector.extract_strided_slice %10 {offsets = [0, 16], sizes = [10, 8], strides = [1, 1]} : vector<10x32xf32> to vector<10x8xf32>
    %48 = vector.extract_strided_slice %11 {offsets = [0, 16], sizes = [10, 8], strides = [1, 1]} : vector<10x32xf32> to vector<10x8xf32>
    %cst_18 = arith.constant dense<0.000000e+00> : vector<10x10xf32>
    %49 = tpu.matmul %46, %47, %cst_18 {dimension_numbers = #tpu.dot_dimension_numbers<[1], [1], [0], [0], [0, 0, 1, 0], [], []>} : vector<10x8xf32>, vector<10x8xf32>, vector<10x10xf32> -> vector<10x10xf32>
    %cst_19 = arith.constant 0.353553385 : f32
    %50 = vector.broadcast %cst_19 : f32 to vector<10x10xf32>
    %51 = arith.mulf %49, %50 : vector<10x10xf32>
    %cst_20 = arith.constant dense<0xFF800000> : vector<10xf32>
    %52 = vector.multi_reduction <maximumf>, %51, %cst_20 [1] : vector<10x10xf32> to vector<10xf32>
    %53 = vector.shape_cast %52 : vector<10xf32> to vector<10x1xf32>
    %54 = vector.broadcast %53 : vector<10x1xf32> to vector<10x10xf32>
    %55 = arith.subf %51, %54 : vector<10x10xf32>
    %56 = math.exp %55 : vector<10x10xf32>
    %cst_21 = arith.constant dense<0.000000e+00> : vector<10xf32>
    %57 = vector.multi_reduction <add>, %56, %cst_21 [1] : vector<10x10xf32> to vector<10xf32>
    %58 = vector.shape_cast %57 : vector<10xf32> to vector<10x1xf32>
    %59 = tpu.reciprocal %58 {approx = true} : vector<10x1xf32> -> vector<10x1xf32>
    %60 = vector.broadcast %59 : vector<10x1xf32> to vector<10x10xf32>
    %61 = arith.mulf %56, %60 : vector<10x10xf32>
    %cst_22 = arith.constant dense<0.000000e+00> : vector<10x8xf32>
    %62 = tpu.matmul %61, %48, %cst_22 {dimension_numbers = #tpu.dot_dimension_numbers<[1], [0], [0], [1], [0, 0, 1, 1], [], []>} : vector<10x10xf32>, vector<10x8xf32>, vector<10x8xf32> -> vector<10x8xf32>
    %63 = vector.extract_strided_slice %9 {offsets = [0, 24], sizes = [10, 8], strides = [1, 1]} : vector<10x32xf32> to vector<10x8xf32>
    %64 = vector.extract_strided_slice %10 {offsets = [0, 24], sizes = [10, 8], strides = [1, 1]} : vector<10x32xf32> to vector<10x8xf32>
    %65 = vector.extract_strided_slice %11 {offsets = [0, 24], sizes = [10, 8], strides = [1, 1]} : vector<10x32xf32> to vector<10x8xf32>
    %cst_23 = arith.constant dense<0.000000e+00> : vector<10x10xf32>
    %66 = tpu.matmul %63, %64, %cst_23 {dimension_numbers = #tpu.dot_dimension_numbers<[1], [1], [0], [0], [0, 0, 1, 0], [], []>} : vector<10x8xf32>, vector<10x8xf32>, vector<10x10xf32> -> vector<10x10xf32>
    %cst_24 = arith.constant 0.353553385 : f32
    %67 = vector.broadcast %cst_24 : f32 to vector<10x10xf32>
    %68 = arith.mulf %66, %67 : vector<10x10xf32>
    %cst_25 = arith.constant dense<0xFF800000> : vector<10xf32>
    %69 = vector.multi_reduction <maximumf>, %68, %cst_25 [1] : vector<10x10xf32> to vector<10xf32>
    %70 = vector.shape_cast %69 : vector<10xf32> to vector<10x1xf32>
    %71 = vector.broadcast %70 : vector<10x1xf32> to vector<10x10xf32>
    %72 = arith.subf %68, %71 : vector<10x10xf32>
    %73 = math.exp %72 : vector<10x10xf32>
    %cst_26 = arith.constant dense<0.000000e+00> : vector<10xf32>
    %74 = vector.multi_reduction <add>, %73, %cst_26 [1] : vector<10x10xf32> to vector<10xf32>
    %75 = vector.shape_cast %74 : vector<10xf32> to vector<10x1xf32>
    %76 = tpu.reciprocal %75 {approx = true} : vector<10x1xf32> -> vector<10x1xf32>
    %77 = vector.broadcast %76 : vector<10x1xf32> to vector<10x10xf32>
    %78 = arith.mulf %73, %77 : vector<10x10xf32>
    %cst_27 = arith.constant dense<0.000000e+00> : vector<10x8xf32>
    %79 = tpu.matmul %78, %65, %cst_27 {dimension_numbers = #tpu.dot_dimension_numbers<[1], [0], [0], [1], [0, 0, 1, 1], [], []>} : vector<10x10xf32>, vector<10x8xf32>, vector<10x8xf32> -> vector<10x8xf32>
    %80 = tpu.concatenate %28, %45, %62, %79 in 1 : vector<10x8xf32>, vector<10x8xf32>, vector<10x8xf32>, vector<10x8xf32> -> vector<10x32xf32>
    %c0_28 = arith.constant 0 : index
    %c0_29 = arith.constant 0 : index
    %c0_30 = arith.constant 0 : index
    %81 = vector.load %arg6[%c0_28, %c0_29, %c0_30] : memref<2x32x32xf32, #tpu.memory_space<vmem>>, vector<1x32x32xf32>
    %82 = vector.shape_cast %81 : vector<1x32x32xf32> to vector<32x32xf32>
    %c0_31 = arith.constant 0 : index
    %c0_32 = arith.constant 0 : index
    %c0_33 = arith.constant 0 : index
    %83 = vector.load %arg7[%c0_31, %c0_32, %c0_33] : memref<2x1x32xf32, #tpu.memory_space<vmem>>, vector<1x1x32xf32>
    %84 = vector.shape_cast %83 : vector<1x1x32xf32> to vector<1x32xf32>
    %cst_34 = arith.constant dense<0.000000e+00> : vector<10x32xf32>
    %85 = tpu.matmul %80, %82, %cst_34 {dimension_numbers = #tpu.dot_dimension_numbers<[1], [0], [0], [1], [0, 0, 1, 1], [], []>} : vector<10x32xf32>, vector<32x32xf32>, vector<10x32xf32> -> vector<10x32xf32>
    %86 = vector.broadcast %84 : vector<1x32xf32> to vector<10x32xf32>
    %87 = arith.addf %85, %86 : vector<10x32xf32>
    %88 = arith.addf %1, %87 : vector<10x32xf32>
    %c0_35 = arith.constant 0 : index
    %c0_36 = arith.constant 0 : index
    %c0_37 = arith.constant 0 : index
    %89 = vector.load %arg8[%c0_35, %c0_36, %c0_37] : memref<2x1x32xf32, #tpu.memory_space<vmem>>, vector<1x1x32xf32>
    %90 = vector.shape_cast %89 : vector<1x1x32xf32> to vector<1x32xf32>
    %c0_38 = arith.constant 0 : index
    %c0_39 = arith.constant 0 : index
    %c0_40 = arith.constant 0 : index
    %91 = vector.load %arg9[%c0_38, %c0_39, %c0_40] : memref<2x1x32xf32, #tpu.memory_space<vmem>>, vector<1x1x32xf32>
    %92 = vector.shape_cast %91 : vector<1x1x32xf32> to vector<1x32xf32>
    %cst_41 = arith.constant dense<0.000000e+00> : vector<10xf32>
    %93 = vector.multi_reduction <add>, %88, %cst_41 [1] : vector<10x32xf32> to vector<10xf32>
    %94 = vector.shape_cast %93 : vector<10xf32> to vector<10x1xf32>
    %cst_42 = arith.constant 3.200000e+01 : f32
    %95 = vector.broadcast %cst_42 : f32 to vector<10x1xf32>
    %96 = arith.divf %94, %95 : vector<10x1xf32>
    %97 = vector.broadcast %96 : vector<10x1xf32> to vector<10x32xf32>
    %98 = arith.subf %88, %97 : vector<10x32xf32>
    %99 = arith.mulf %98, %98 : vector<10x32xf32>
    %cst_43 = arith.constant dense<0.000000e+00> : vector<10xf32>
    %100 = vector.multi_reduction <add>, %99, %cst_43 [1] : vector<10x32xf32> to vector<10xf32>
    %101 = vector.shape_cast %100 : vector<10xf32> to vector<10x1xf32>
    %cst_44 = arith.constant 3.200000e+01 : f32
    %102 = vector.broadcast %cst_44 : f32 to vector<10x1xf32>
    %103 = arith.divf %101, %102 : vector<10x1xf32>
    %104 = vector.broadcast %96 : vector<10x1xf32> to vector<10x32xf32>
    %105 = arith.subf %88, %104 : vector<10x32xf32>
    %cst_45 = arith.constant 9.99999974E-6 : f32
    %106 = vector.broadcast %cst_45 : f32 to vector<10x1xf32>
    %107 = arith.addf %103, %106 : vector<10x1xf32>
    %108 = math.rsqrt %107 : vector<10x1xf32>
    %109 = vector.broadcast %108 : vector<10x1xf32> to vector<10x32xf32>
    %110 = arith.mulf %105, %109 : vector<10x32xf32>
    %111 = vector.broadcast %90 : vector<1x32xf32> to vector<10x32xf32>
    %112 = arith.mulf %110, %111 : vector<10x32xf32>
    %113 = vector.broadcast %92 : vector<1x32xf32> to vector<10x32xf32>
    %114 = arith.addf %112, %113 : vector<10x32xf32>
    %c0_46 = arith.constant 0 : index
    %c0_47 = arith.constant 0 : index
    %c0_48 = arith.constant 0 : index
    %115 = vector.load %arg10[%c0_46, %c0_47, %c0_48] : memref<2x32x64xf32, #tpu.memory_space<vmem>>, vector<1x32x64xf32>
    %116 = vector.shape_cast %115 : vector<1x32x64xf32> to vector<32x64xf32>
    %c0_49 = arith.constant 0 : index
    %c0_50 = arith.constant 0 : index
    %c0_51 = arith.constant 0 : index
    %117 = vector.load %arg11[%c0_49, %c0_50, %c0_51] : memref<2x1x64xf32, #tpu.memory_space<vmem>>, vector<1x1x64xf32>
    %118 = vector.shape_cast %117 : vector<1x1x64xf32> to vector<1x64xf32>
    %cst_52 = arith.constant dense<0.000000e+00> : vector<10x64xf32>
    %119 = tpu.matmul %114, %116, %cst_52 {dimension_numbers = #tpu.dot_dimension_numbers<[1], [0], [0], [1], [0, 0, 1, 1], [], []>} : vector<10x32xf32>, vector<32x64xf32>, vector<10x64xf32> -> vector<10x64xf32>
    %120 = vector.broadcast %118 : vector<1x64xf32> to vector<10x64xf32>
    %121 = arith.addf %119, %120 : vector<10x64xf32>
    %cst_53 = arith.constant 0.000000e+00 : f32
    %122 = vector.broadcast %cst_53 : f32 to vector<10x64xf32>
    %123 = arith.maximumf %121, %122 : vector<10x64xf32>
    %c0_54 = arith.constant 0 : index
    %c0_55 = arith.constant 0 : index
    %c0_56 = arith.constant 0 : index
    %124 = vector.load %arg12[%c0_54, %c0_55, %c0_56] : memref<2x64x32xf32, #tpu.memory_space<vmem>>, vector<1x64x32xf32>
    %125 = vector.shape_cast %124 : vector<1x64x32xf32> to vector<64x32xf32>
    %c0_57 = arith.constant 0 : index
    %c0_58 = arith.constant 0 : index
    %c0_59 = arith.constant 0 : index
    %126 = vector.load %arg13[%c0_57, %c0_58, %c0_59] : memref<2x1x32xf32, #tpu.memory_space<vmem>>, vector<1x1x32xf32>
    %127 = vector.shape_cast %126 : vector<1x1x32xf32> to vector<1x32xf32>
    %cst_60 = arith.constant dense<0.000000e+00> : vector<10x32xf32>
    %128 = tpu.matmul %123, %125, %cst_60 {dimension_numbers = #tpu.dot_dimension_numbers<[1], [0], [0], [1], [0, 0, 1, 1], [], []>} : vector<10x64xf32>, vector<64x32xf32>, vector<10x32xf32> -> vector<10x32xf32>
    %129 = vector.broadcast %127 : vector<1x32xf32> to vector<10x32xf32>
    %130 = arith.addf %128, %129 : vector<10x32xf32>
    %131 = arith.addf %114, %130 : vector<10x32xf32>
    %c0_61 = arith.constant 0 : index
    %c0_62 = arith.constant 0 : index
    %c0_63 = arith.constant 0 : index
    %132 = vector.load %arg14[%c0_61, %c0_62, %c0_63] : memref<2x1x32xf32, #tpu.memory_space<vmem>>, vector<1x1x32xf32>
    %133 = vector.shape_cast %132 : vector<1x1x32xf32> to vector<1x32xf32>
    %c0_64 = arith.constant 0 : index
    %c0_65 = arith.constant 0 : index
    %c0_66 = arith.constant 0 : index
    %134 = vector.load %arg15[%c0_64, %c0_65, %c0_66] : memref<2x1x32xf32, #tpu.memory_space<vmem>>, vector<1x1x32xf32>
    %135 = vector.shape_cast %134 : vector<1x1x32xf32> to vector<1x32xf32>
    %cst_67 = arith.constant dense<0.000000e+00> : vector<10xf32>
    %136 = vector.multi_reduction <add>, %131, %cst_67 [1] : vector<10x32xf32> to vector<10xf32>
    %137 = vector.shape_cast %136 : vector<10xf32> to vector<10x1xf32>
    %cst_68 = arith.constant 3.200000e+01 : f32
    %138 = vector.broadcast %cst_68 : f32 to vector<10x1xf32>
    %139 = arith.divf %137, %138 : vector<10x1xf32>
    %140 = vector.broadcast %139 : vector<10x1xf32> to vector<10x32xf32>
    %141 = arith.subf %131, %140 : vector<10x32xf32>
    %142 = arith.mulf %141, %141 : vector<10x32xf32>
    %cst_69 = arith.constant dense<0.000000e+00> : vector<10xf32>
    %143 = vector.multi_reduction <add>, %142, %cst_69 [1] : vector<10x32xf32> to vector<10xf32>
    %144 = vector.shape_cast %143 : vector<10xf32> to vector<10x1xf32>
    %cst_70 = arith.constant 3.200000e+01 : f32
    %145 = vector.broadcast %cst_70 : f32 to vector<10x1xf32>
    %146 = arith.divf %144, %145 : vector<10x1xf32>
    %147 = vector.broadcast %139 : vector<10x1xf32> to vector<10x32xf32>
    %148 = arith.subf %131, %147 : vector<10x32xf32>
    %cst_71 = arith.constant 9.99999974E-6 : f32
    %149 = vector.broadcast %cst_71 : f32 to vector<10x1xf32>
    %150 = arith.addf %146, %149 : vector<10x1xf32>
    %151 = math.rsqrt %150 : vector<10x1xf32>
    %152 = vector.broadcast %151 : vector<10x1xf32> to vector<10x32xf32>
    %153 = arith.mulf %148, %152 : vector<10x32xf32>
    %154 = vector.broadcast %133 : vector<1x32xf32> to vector<10x32xf32>
    %155 = arith.mulf %153, %154 : vector<10x32xf32>
    %156 = vector.broadcast %135 : vector<1x32xf32> to vector<10x32xf32>
    %157 = arith.addf %155, %156 : vector<10x32xf32>
    %c1 = arith.constant 1 : index
    %c0_72 = arith.constant 0 : index
    %c0_73 = arith.constant 0 : index
    %158 = vector.load %arg4[%c1, %c0_72, %c0_73] : memref<2x32x96xf32, #tpu.memory_space<vmem>>, vector<1x32x96xf32>
    %159 = vector.shape_cast %158 : vector<1x32x96xf32> to vector<32x96xf32>
    %c1_74 = arith.constant 1 : index
    %c0_75 = arith.constant 0 : index
    %c0_76 = arith.constant 0 : index
    %160 = vector.load %arg5[%c1_74, %c0_75, %c0_76] : memref<2x1x96xf32, #tpu.memory_space<vmem>>, vector<1x1x96xf32>
    %161 = vector.shape_cast %160 : vector<1x1x96xf32> to vector<1x96xf32>
    %cst_77 = arith.constant dense<0.000000e+00> : vector<10x96xf32>
    %162 = tpu.matmul %157, %159, %cst_77 {dimension_numbers = #tpu.dot_dimension_numbers<[1], [0], [0], [1], [0, 0, 1, 1], [], []>} : vector<10x32xf32>, vector<32x96xf32>, vector<10x96xf32> -> vector<10x96xf32>
    %163 = vector.broadcast %161 : vector<1x96xf32> to vector<10x96xf32>
    %164 = arith.addf %162, %163 : vector<10x96xf32>
    %165 = vector.extract_strided_slice %164 {offsets = [0, 0], sizes = [10, 32], strides = [1, 1]} : vector<10x96xf32> to vector<10x32xf32>
    %166 = vector.extract_strided_slice %164 {offsets = [0, 32], sizes = [10, 32], strides = [1, 1]} : vector<10x96xf32> to vector<10x32xf32>
    %167 = vector.extract_strided_slice %164 {offsets = [0, 64], sizes = [10, 32], strides = [1, 1]} : vector<10x96xf32> to vector<10x32xf32>
    %168 = vector.extract_strided_slice %165 {offsets = [0, 0], sizes = [10, 8], strides = [1, 1]} : vector<10x32xf32> to vector<10x8xf32>
    %169 = vector.extract_strided_slice %166 {offsets = [0, 0], sizes = [10, 8], strides = [1, 1]} : vector<10x32xf32> to vector<10x8xf32>
    %170 = vector.extract_strided_slice %167 {offsets = [0, 0], sizes = [10, 8], strides = [1, 1]} : vector<10x32xf32> to vector<10x8xf32>
    %cst_78 = arith.constant dense<0.000000e+00> : vector<10x10xf32>
    %171 = tpu.matmul %168, %169, %cst_78 {dimension_numbers = #tpu.dot_dimension_numbers<[1], [1], [0], [0], [0, 0, 1, 0], [], []>} : vector<10x8xf32>, vector<10x8xf32>, vector<10x10xf32> -> vector<10x10xf32>
    %cst_79 = arith.constant 0.353553385 : f32
    %172 = vector.broadcast %cst_79 : f32 to vector<10x10xf32>
    %173 = arith.mulf %171, %172 : vector<10x10xf32>
    %cst_80 = arith.constant dense<0xFF800000> : vector<10xf32>
    %174 = vector.multi_reduction <maximumf>, %173, %cst_80 [1] : vector<10x10xf32> to vector<10xf32>
    %175 = vector.shape_cast %174 : vector<10xf32> to vector<10x1xf32>
    %176 = vector.broadcast %175 : vector<10x1xf32> to vector<10x10xf32>
    %177 = arith.subf %173, %176 : vector<10x10xf32>
    %178 = math.exp %177 : vector<10x10xf32>
    %cst_81 = arith.constant dense<0.000000e+00> : vector<10xf32>
    %179 = vector.multi_reduction <add>, %178, %cst_81 [1] : vector<10x10xf32> to vector<10xf32>
    %180 = vector.shape_cast %179 : vector<10xf32> to vector<10x1xf32>
    %181 = tpu.reciprocal %180 {approx = true} : vector<10x1xf32> -> vector<10x1xf32>
    %182 = vector.broadcast %181 : vector<10x1xf32> to vector<10x10xf32>
    %183 = arith.mulf %178, %182 : vector<10x10xf32>
    %cst_82 = arith.constant dense<0.000000e+00> : vector<10x8xf32>
    %184 = tpu.matmul %183, %170, %cst_82 {dimension_numbers = #tpu.dot_dimension_numbers<[1], [0], [0], [1], [0, 0, 1, 1], [], []>} : vector<10x10xf32>, vector<10x8xf32>, vector<10x8xf32> -> vector<10x8xf32>
    %185 = vector.extract_strided_slice %165 {offsets = [0, 8], sizes = [10, 8], strides = [1, 1]} : vector<10x32xf32> to vector<10x8xf32>
    %186 = vector.extract_strided_slice %166 {offsets = [0, 8], sizes = [10, 8], strides = [1, 1]} : vector<10x32xf32> to vector<10x8xf32>
    %187 = vector.extract_strided_slice %167 {offsets = [0, 8], sizes = [10, 8], strides = [1, 1]} : vector<10x32xf32> to vector<10x8xf32>
    %cst_83 = arith.constant dense<0.000000e+00> : vector<10x10xf32>
    %188 = tpu.matmul %185, %186, %cst_83 {dimension_numbers = #tpu.dot_dimension_numbers<[1], [1], [0], [0], [0, 0, 1, 0], [], []>} : vector<10x8xf32>, vector<10x8xf32>, vector<10x10xf32> -> vector<10x10xf32>
    %cst_84 = arith.constant 0.353553385 : f32
    %189 = vector.broadcast %cst_84 : f32 to vector<10x10xf32>
    %190 = arith.mulf %188, %189 : vector<10x10xf32>
    %cst_85 = arith.constant dense<0xFF800000> : vector<10xf32>
    %191 = vector.multi_reduction <maximumf>, %190, %cst_85 [1] : vector<10x10xf32> to vector<10xf32>
    %192 = vector.shape_cast %191 : vector<10xf32> to vector<10x1xf32>
    %193 = vector.broadcast %192 : vector<10x1xf32> to vector<10x10xf32>
    %194 = arith.subf %190, %193 : vector<10x10xf32>
    %195 = math.exp %194 : vector<10x10xf32>
    %cst_86 = arith.constant dense<0.000000e+00> : vector<10xf32>
    %196 = vector.multi_reduction <add>, %195, %cst_86 [1] : vector<10x10xf32> to vector<10xf32>
    %197 = vector.shape_cast %196 : vector<10xf32> to vector<10x1xf32>
    %198 = tpu.reciprocal %197 {approx = true} : vector<10x1xf32> -> vector<10x1xf32>
    %199 = vector.broadcast %198 : vector<10x1xf32> to vector<10x10xf32>
    %200 = arith.mulf %195, %199 : vector<10x10xf32>
    %cst_87 = arith.constant dense<0.000000e+00> : vector<10x8xf32>
    %201 = tpu.matmul %200, %187, %cst_87 {dimension_numbers = #tpu.dot_dimension_numbers<[1], [0], [0], [1], [0, 0, 1, 1], [], []>} : vector<10x10xf32>, vector<10x8xf32>, vector<10x8xf32> -> vector<10x8xf32>
    %202 = vector.extract_strided_slice %165 {offsets = [0, 16], sizes = [10, 8], strides = [1, 1]} : vector<10x32xf32> to vector<10x8xf32>
    %203 = vector.extract_strided_slice %166 {offsets = [0, 16], sizes = [10, 8], strides = [1, 1]} : vector<10x32xf32> to vector<10x8xf32>
    %204 = vector.extract_strided_slice %167 {offsets = [0, 16], sizes = [10, 8], strides = [1, 1]} : vector<10x32xf32> to vector<10x8xf32>
    %cst_88 = arith.constant dense<0.000000e+00> : vector<10x10xf32>
    %205 = tpu.matmul %202, %203, %cst_88 {dimension_numbers = #tpu.dot_dimension_numbers<[1], [1], [0], [0], [0, 0, 1, 0], [], []>} : vector<10x8xf32>, vector<10x8xf32>, vector<10x10xf32> -> vector<10x10xf32>
    %cst_89 = arith.constant 0.353553385 : f32
    %206 = vector.broadcast %cst_89 : f32 to vector<10x10xf32>
    %207 = arith.mulf %205, %206 : vector<10x10xf32>
    %cst_90 = arith.constant dense<0xFF800000> : vector<10xf32>
    %208 = vector.multi_reduction <maximumf>, %207, %cst_90 [1] : vector<10x10xf32> to vector<10xf32>
    %209 = vector.shape_cast %208 : vector<10xf32> to vector<10x1xf32>
    %210 = vector.broadcast %209 : vector<10x1xf32> to vector<10x10xf32>
    %211 = arith.subf %207, %210 : vector<10x10xf32>
    %212 = math.exp %211 : vector<10x10xf32>
    %cst_91 = arith.constant dense<0.000000e+00> : vector<10xf32>
    %213 = vector.multi_reduction <add>, %212, %cst_91 [1] : vector<10x10xf32> to vector<10xf32>
    %214 = vector.shape_cast %213 : vector<10xf32> to vector<10x1xf32>
    %215 = tpu.reciprocal %214 {approx = true} : vector<10x1xf32> -> vector<10x1xf32>
    %216 = vector.broadcast %215 : vector<10x1xf32> to vector<10x10xf32>
    %217 = arith.mulf %212, %216 : vector<10x10xf32>
    %cst_92 = arith.constant dense<0.000000e+00> : vector<10x8xf32>
    %218 = tpu.matmul %217, %204, %cst_92 {dimension_numbers = #tpu.dot_dimension_numbers<[1], [0], [0], [1], [0, 0, 1, 1], [], []>} : vector<10x10xf32>, vector<10x8xf32>, vector<10x8xf32> -> vector<10x8xf32>
    %219 = vector.extract_strided_slice %165 {offsets = [0, 24], sizes = [10, 8], strides = [1, 1]} : vector<10x32xf32> to vector<10x8xf32>
    %220 = vector.extract_strided_slice %166 {offsets = [0, 24], sizes = [10, 8], strides = [1, 1]} : vector<10x32xf32> to vector<10x8xf32>
    %221 = vector.extract_strided_slice %167 {offsets = [0, 24], sizes = [10, 8], strides = [1, 1]} : vector<10x32xf32> to vector<10x8xf32>
    %cst_93 = arith.constant dense<0.000000e+00> : vector<10x10xf32>
    %222 = tpu.matmul %219, %220, %cst_93 {dimension_numbers = #tpu.dot_dimension_numbers<[1], [1], [0], [0], [0, 0, 1, 0], [], []>} : vector<10x8xf32>, vector<10x8xf32>, vector<10x10xf32> -> vector<10x10xf32>
    %cst_94 = arith.constant 0.353553385 : f32
    %223 = vector.broadcast %cst_94 : f32 to vector<10x10xf32>
    %224 = arith.mulf %222, %223 : vector<10x10xf32>
    %cst_95 = arith.constant dense<0xFF800000> : vector<10xf32>
    %225 = vector.multi_reduction <maximumf>, %224, %cst_95 [1] : vector<10x10xf32> to vector<10xf32>
    %226 = vector.shape_cast %225 : vector<10xf32> to vector<10x1xf32>
    %227 = vector.broadcast %226 : vector<10x1xf32> to vector<10x10xf32>
    %228 = arith.subf %224, %227 : vector<10x10xf32>
    %229 = math.exp %228 : vector<10x10xf32>
    %cst_96 = arith.constant dense<0.000000e+00> : vector<10xf32>
    %230 = vector.multi_reduction <add>, %229, %cst_96 [1] : vector<10x10xf32> to vector<10xf32>
    %231 = vector.shape_cast %230 : vector<10xf32> to vector<10x1xf32>
    %232 = tpu.reciprocal %231 {approx = true} : vector<10x1xf32> -> vector<10x1xf32>
    %233 = vector.broadcast %232 : vector<10x1xf32> to vector<10x10xf32>
    %234 = arith.mulf %229, %233 : vector<10x10xf32>
    %cst_97 = arith.constant dense<0.000000e+00> : vector<10x8xf32>
    %235 = tpu.matmul %234, %221, %cst_97 {dimension_numbers = #tpu.dot_dimension_numbers<[1], [0], [0], [1], [0, 0, 1, 1], [], []>} : vector<10x10xf32>, vector<10x8xf32>, vector<10x8xf32> -> vector<10x8xf32>
    %236 = tpu.concatenate %184, %201, %218, %235 in 1 : vector<10x8xf32>, vector<10x8xf32>, vector<10x8xf32>, vector<10x8xf32> -> vector<10x32xf32>
    %c1_98 = arith.constant 1 : index
    %c0_99 = arith.constant 0 : index
    %c0_100 = arith.constant 0 : index
    %237 = vector.load %arg6[%c1_98, %c0_99, %c0_100] : memref<2x32x32xf32, #tpu.memory_space<vmem>>, vector<1x32x32xf32>
    %238 = vector.shape_cast %237 : vector<1x32x32xf32> to vector<32x32xf32>
    %c1_101 = arith.constant 1 : index
    %c0_102 = arith.constant 0 : index
    %c0_103 = arith.constant 0 : index
    %239 = vector.load %arg7[%c1_101, %c0_102, %c0_103] : memref<2x1x32xf32, #tpu.memory_space<vmem>>, vector<1x1x32xf32>
    %240 = vector.shape_cast %239 : vector<1x1x32xf32> to vector<1x32xf32>
    %cst_104 = arith.constant dense<0.000000e+00> : vector<10x32xf32>
    %241 = tpu.matmul %236, %238, %cst_104 {dimension_numbers = #tpu.dot_dimension_numbers<[1], [0], [0], [1], [0, 0, 1, 1], [], []>} : vector<10x32xf32>, vector<32x32xf32>, vector<10x32xf32> -> vector<10x32xf32>
    %242 = vector.broadcast %240 : vector<1x32xf32> to vector<10x32xf32>
    %243 = arith.addf %241, %242 : vector<10x32xf32>
    %244 = arith.addf %157, %243 : vector<10x32xf32>
    %c1_105 = arith.constant 1 : index
    %c0_106 = arith.constant 0 : index
    %c0_107 = arith.constant 0 : index
    %245 = vector.load %arg8[%c1_105, %c0_106, %c0_107] : memref<2x1x32xf32, #tpu.memory_space<vmem>>, vector<1x1x32xf32>
    %246 = vector.shape_cast %245 : vector<1x1x32xf32> to vector<1x32xf32>
    %c1_108 = arith.constant 1 : index
    %c0_109 = arith.constant 0 : index
    %c0_110 = arith.constant 0 : index
    %247 = vector.load %arg9[%c1_108, %c0_109, %c0_110] : memref<2x1x32xf32, #tpu.memory_space<vmem>>, vector<1x1x32xf32>
    %248 = vector.shape_cast %247 : vector<1x1x32xf32> to vector<1x32xf32>
    %cst_111 = arith.constant dense<0.000000e+00> : vector<10xf32>
    %249 = vector.multi_reduction <add>, %244, %cst_111 [1] : vector<10x32xf32> to vector<10xf32>
    %250 = vector.shape_cast %249 : vector<10xf32> to vector<10x1xf32>
    %cst_112 = arith.constant 3.200000e+01 : f32
    %251 = vector.broadcast %cst_112 : f32 to vector<10x1xf32>
    %252 = arith.divf %250, %251 : vector<10x1xf32>
    %253 = vector.broadcast %252 : vector<10x1xf32> to vector<10x32xf32>
    %254 = arith.subf %244, %253 : vector<10x32xf32>
    %255 = arith.mulf %254, %254 : vector<10x32xf32>
    %cst_113 = arith.constant dense<0.000000e+00> : vector<10xf32>
    %256 = vector.multi_reduction <add>, %255, %cst_113 [1] : vector<10x32xf32> to vector<10xf32>
    %257 = vector.shape_cast %256 : vector<10xf32> to vector<10x1xf32>
    %cst_114 = arith.constant 3.200000e+01 : f32
    %258 = vector.broadcast %cst_114 : f32 to vector<10x1xf32>
    %259 = arith.divf %257, %258 : vector<10x1xf32>
    %260 = vector.broadcast %252 : vector<10x1xf32> to vector<10x32xf32>
    %261 = arith.subf %244, %260 : vector<10x32xf32>
    %cst_115 = arith.constant 9.99999974E-6 : f32
    %262 = vector.broadcast %cst_115 : f32 to vector<10x1xf32>
    %263 = arith.addf %259, %262 : vector<10x1xf32>
    %264 = math.rsqrt %263 : vector<10x1xf32>
    %265 = vector.broadcast %264 : vector<10x1xf32> to vector<10x32xf32>
    %266 = arith.mulf %261, %265 : vector<10x32xf32>
    %267 = vector.broadcast %246 : vector<1x32xf32> to vector<10x32xf32>
    %268 = arith.mulf %266, %267 : vector<10x32xf32>
    %269 = vector.broadcast %248 : vector<1x32xf32> to vector<10x32xf32>
    %270 = arith.addf %268, %269 : vector<10x32xf32>
    %c1_116 = arith.constant 1 : index
    %c0_117 = arith.constant 0 : index
    %c0_118 = arith.constant 0 : index
    %271 = vector.load %arg10[%c1_116, %c0_117, %c0_118] : memref<2x32x64xf32, #tpu.memory_space<vmem>>, vector<1x32x64xf32>
    %272 = vector.shape_cast %271 : vector<1x32x64xf32> to vector<32x64xf32>
    %c1_119 = arith.constant 1 : index
    %c0_120 = arith.constant 0 : index
    %c0_121 = arith.constant 0 : index
    %273 = vector.load %arg11[%c1_119, %c0_120, %c0_121] : memref<2x1x64xf32, #tpu.memory_space<vmem>>, vector<1x1x64xf32>
    %274 = vector.shape_cast %273 : vector<1x1x64xf32> to vector<1x64xf32>
    %cst_122 = arith.constant dense<0.000000e+00> : vector<10x64xf32>
    %275 = tpu.matmul %270, %272, %cst_122 {dimension_numbers = #tpu.dot_dimension_numbers<[1], [0], [0], [1], [0, 0, 1, 1], [], []>} : vector<10x32xf32>, vector<32x64xf32>, vector<10x64xf32> -> vector<10x64xf32>
    %276 = vector.broadcast %274 : vector<1x64xf32> to vector<10x64xf32>
    %277 = arith.addf %275, %276 : vector<10x64xf32>
    %cst_123 = arith.constant 0.000000e+00 : f32
    %278 = vector.broadcast %cst_123 : f32 to vector<10x64xf32>
    %279 = arith.maximumf %277, %278 : vector<10x64xf32>
    %c1_124 = arith.constant 1 : index
    %c0_125 = arith.constant 0 : index
    %c0_126 = arith.constant 0 : index
    %280 = vector.load %arg12[%c1_124, %c0_125, %c0_126] : memref<2x64x32xf32, #tpu.memory_space<vmem>>, vector<1x64x32xf32>
    %281 = vector.shape_cast %280 : vector<1x64x32xf32> to vector<64x32xf32>
    %c1_127 = arith.constant 1 : index
    %c0_128 = arith.constant 0 : index
    %c0_129 = arith.constant 0 : index
    %282 = vector.load %arg13[%c1_127, %c0_128, %c0_129] : memref<2x1x32xf32, #tpu.memory_space<vmem>>, vector<1x1x32xf32>
    %283 = vector.shape_cast %282 : vector<1x1x32xf32> to vector<1x32xf32>
    %cst_130 = arith.constant dense<0.000000e+00> : vector<10x32xf32>
    %284 = tpu.matmul %279, %281, %cst_130 {dimension_numbers = #tpu.dot_dimension_numbers<[1], [0], [0], [1], [0, 0, 1, 1], [], []>} : vector<10x64xf32>, vector<64x32xf32>, vector<10x32xf32> -> vector<10x32xf32>
    %285 = vector.broadcast %283 : vector<1x32xf32> to vector<10x32xf32>
    %286 = arith.addf %284, %285 : vector<10x32xf32>
    %287 = arith.addf %270, %286 : vector<10x32xf32>
    %c1_131 = arith.constant 1 : index
    %c0_132 = arith.constant 0 : index
    %c0_133 = arith.constant 0 : index
    %288 = vector.load %arg14[%c1_131, %c0_132, %c0_133] : memref<2x1x32xf32, #tpu.memory_space<vmem>>, vector<1x1x32xf32>
    %289 = vector.shape_cast %288 : vector<1x1x32xf32> to vector<1x32xf32>
    %c1_134 = arith.constant 1 : index
    %c0_135 = arith.constant 0 : index
    %c0_136 = arith.constant 0 : index
    %290 = vector.load %arg15[%c1_134, %c0_135, %c0_136] : memref<2x1x32xf32, #tpu.memory_space<vmem>>, vector<1x1x32xf32>
    %291 = vector.shape_cast %290 : vector<1x1x32xf32> to vector<1x32xf32>
    %cst_137 = arith.constant dense<0.000000e+00> : vector<10xf32>
    %292 = vector.multi_reduction <add>, %287, %cst_137 [1] : vector<10x32xf32> to vector<10xf32>
    %293 = vector.shape_cast %292 : vector<10xf32> to vector<10x1xf32>
    %cst_138 = arith.constant 3.200000e+01 : f32
    %294 = vector.broadcast %cst_138 : f32 to vector<10x1xf32>
    %295 = arith.divf %293, %294 : vector<10x1xf32>
    %296 = vector.broadcast %295 : vector<10x1xf32> to vector<10x32xf32>
    %297 = arith.subf %287, %296 : vector<10x32xf32>
    %298 = arith.mulf %297, %297 : vector<10x32xf32>
    %cst_139 = arith.constant dense<0.000000e+00> : vector<10xf32>
    %299 = vector.multi_reduction <add>, %298, %cst_139 [1] : vector<10x32xf32> to vector<10xf32>
    %300 = vector.shape_cast %299 : vector<10xf32> to vector<10x1xf32>
    %cst_140 = arith.constant 3.200000e+01 : f32
    %301 = vector.broadcast %cst_140 : f32 to vector<10x1xf32>
    %302 = arith.divf %300, %301 : vector<10x1xf32>
    %303 = vector.broadcast %295 : vector<10x1xf32> to vector<10x32xf32>
    %304 = arith.subf %287, %303 : vector<10x32xf32>
    %cst_141 = arith.constant 9.99999974E-6 : f32
    %305 = vector.broadcast %cst_141 : f32 to vector<10x1xf32>
    %306 = arith.addf %302, %305 : vector<10x1xf32>
    %307 = math.rsqrt %306 : vector<10x1xf32>
    %308 = vector.broadcast %307 : vector<10x1xf32> to vector<10x32xf32>
    %309 = arith.mulf %304, %308 : vector<10x32xf32>
    %310 = vector.broadcast %289 : vector<1x32xf32> to vector<10x32xf32>
    %311 = arith.mulf %309, %310 : vector<10x32xf32>
    %312 = vector.broadcast %291 : vector<1x32xf32> to vector<10x32xf32>
    %313 = arith.addf %311, %312 : vector<10x32xf32>
    %c0_142 = arith.constant 0 : index
    %c0_143 = arith.constant 0 : index
    %314 = vector.load %arg16[%c0_142, %c0_143] : memref<1x32xf32, #tpu.memory_space<vmem>>, vector<1x32xf32>
    %c0_144 = arith.constant 0 : index
    %c0_145 = arith.constant 0 : index
    %315 = vector.load %arg17[%c0_144, %c0_145] : memref<1x32xf32, #tpu.memory_space<vmem>>, vector<1x32xf32>
    %cst_146 = arith.constant dense<0.000000e+00> : vector<10xf32>
    %316 = vector.multi_reduction <add>, %313, %cst_146 [1] : vector<10x32xf32> to vector<10xf32>
    %317 = vector.shape_cast %316 : vector<10xf32> to vector<10x1xf32>
    %cst_147 = arith.constant 3.200000e+01 : f32
    %318 = vector.broadcast %cst_147 : f32 to vector<10x1xf32>
    %319 = arith.divf %317, %318 : vector<10x1xf32>
    %320 = vector.broadcast %319 : vector<10x1xf32> to vector<10x32xf32>
    %321 = arith.subf %313, %320 : vector<10x32xf32>
    %322 = arith.mulf %321, %321 : vector<10x32xf32>
    %cst_148 = arith.constant dense<0.000000e+00> : vector<10xf32>
    %323 = vector.multi_reduction <add>, %322, %cst_148 [1] : vector<10x32xf32> to vector<10xf32>
    %324 = vector.shape_cast %323 : vector<10xf32> to vector<10x1xf32>
    %cst_149 = arith.constant 3.200000e+01 : f32
    %325 = vector.broadcast %cst_149 : f32 to vector<10x1xf32>
    %326 = arith.divf %324, %325 : vector<10x1xf32>
    %327 = vector.broadcast %319 : vector<10x1xf32> to vector<10x32xf32>
    %328 = arith.subf %313, %327 : vector<10x32xf32>
    %cst_150 = arith.constant 9.99999974E-6 : f32
    %329 = vector.broadcast %cst_150 : f32 to vector<10x1xf32>
    %330 = arith.addf %326, %329 : vector<10x1xf32>
    %331 = math.rsqrt %330 : vector<10x1xf32>
    %332 = vector.broadcast %331 : vector<10x1xf32> to vector<10x32xf32>
    %333 = arith.mulf %328, %332 : vector<10x32xf32>
    %334 = vector.broadcast %314 : vector<1x32xf32> to vector<10x32xf32>
    %335 = arith.mulf %333, %334 : vector<10x32xf32>
    %336 = vector.broadcast %315 : vector<1x32xf32> to vector<10x32xf32>
    %337 = arith.addf %335, %336 : vector<10x32xf32>
    %c0_151 = arith.constant 0 : index
    %c0_152 = arith.constant 0 : index
    %c0_153 = arith.constant 0 : index
    %338 = vector.load %arg2[%c0_151, %c0_152, %c0_153] : memref<1x6x32xf32, #tpu.memory_space<vmem>>, vector<1x6x32xf32>
    %339 = vector.shape_cast %338 : vector<1x6x32xf32> to vector<6x32xf32>
    %c0_154 = arith.constant 0 : index
    %c0_155 = arith.constant 0 : index
    %340 = vector.load %arg3[%c0_154, %c0_155] : memref<6x6xf32, #tpu.memory_space<vmem>>, vector<6x6xf32>
    %c0_156 = arith.constant 0 : index
    %c0_157 = arith.constant 0 : index
    %c0_158 = arith.constant 0 : index
    %341 = vector.load %arg18[%c0_156, %c0_157, %c0_158] : memref<2x32x96xf32, #tpu.memory_space<vmem>>, vector<1x32x96xf32>
    %342 = vector.shape_cast %341 : vector<1x32x96xf32> to vector<32x96xf32>
    %c0_159 = arith.constant 0 : index
    %c0_160 = arith.constant 0 : index
    %c0_161 = arith.constant 0 : index
    %343 = vector.load %arg19[%c0_159, %c0_160, %c0_161] : memref<2x1x96xf32, #tpu.memory_space<vmem>>, vector<1x1x96xf32>
    %344 = vector.shape_cast %343 : vector<1x1x96xf32> to vector<1x96xf32>
    %cst_162 = arith.constant dense<0.000000e+00> : vector<6x96xf32>
    %345 = tpu.matmul %339, %342, %cst_162 {dimension_numbers = #tpu.dot_dimension_numbers<[1], [0], [0], [1], [0, 0, 1, 1], [], []>} : vector<6x32xf32>, vector<32x96xf32>, vector<6x96xf32> -> vector<6x96xf32>
    %346 = vector.broadcast %344 : vector<1x96xf32> to vector<6x96xf32>
    %347 = arith.addf %345, %346 : vector<6x96xf32>
    %348 = vector.extract_strided_slice %347 {offsets = [0, 0], sizes = [6, 32], strides = [1, 1]} : vector<6x96xf32> to vector<6x32xf32>
    %349 = vector.extract_strided_slice %347 {offsets = [0, 32], sizes = [6, 32], strides = [1, 1]} : vector<6x96xf32> to vector<6x32xf32>
    %350 = vector.extract_strided_slice %347 {offsets = [0, 64], sizes = [6, 32], strides = [1, 1]} : vector<6x96xf32> to vector<6x32xf32>
    %351 = vector.extract_strided_slice %348 {offsets = [0, 0], sizes = [6, 8], strides = [1, 1]} : vector<6x32xf32> to vector<6x8xf32>
    %352 = vector.extract_strided_slice %349 {offsets = [0, 0], sizes = [6, 8], strides = [1, 1]} : vector<6x32xf32> to vector<6x8xf32>
    %353 = vector.extract_strided_slice %350 {offsets = [0, 0], sizes = [6, 8], strides = [1, 1]} : vector<6x32xf32> to vector<6x8xf32>
    %cst_163 = arith.constant dense<0.000000e+00> : vector<6x6xf32>
    %354 = tpu.matmul %351, %352, %cst_163 {dimension_numbers = #tpu.dot_dimension_numbers<[1], [1], [0], [0], [0, 0, 1, 0], [], []>} : vector<6x8xf32>, vector<6x8xf32>, vector<6x6xf32> -> vector<6x6xf32>
    %cst_164 = arith.constant 0.353553385 : f32
    %355 = vector.broadcast %cst_164 : f32 to vector<6x6xf32>
    %356 = arith.mulf %354, %355 : vector<6x6xf32>
    %357 = arith.addf %356, %340 : vector<6x6xf32>
    %cst_165 = arith.constant dense<0xFF800000> : vector<6xf32>
    %358 = vector.multi_reduction <maximumf>, %357, %cst_165 [1] : vector<6x6xf32> to vector<6xf32>
    %359 = vector.shape_cast %358 : vector<6xf32> to vector<6x1xf32>
    %360 = vector.broadcast %359 : vector<6x1xf32> to vector<6x6xf32>
    %361 = arith.subf %357, %360 : vector<6x6xf32>
    %362 = math.exp %361 : vector<6x6xf32>
    %cst_166 = arith.constant dense<0.000000e+00> : vector<6xf32>
    %363 = vector.multi_reduction <add>, %362, %cst_166 [1] : vector<6x6xf32> to vector<6xf32>
    %364 = vector.shape_cast %363 : vector<6xf32> to vector<6x1xf32>
    %365 = tpu.reciprocal %364 {approx = true} : vector<6x1xf32> -> vector<6x1xf32>
    %366 = vector.broadcast %365 : vector<6x1xf32> to vector<6x6xf32>
    %367 = arith.mulf %362, %366 : vector<6x6xf32>
    %cst_167 = arith.constant dense<0.000000e+00> : vector<6x8xf32>
    %368 = tpu.matmul %367, %353, %cst_167 {dimension_numbers = #tpu.dot_dimension_numbers<[1], [0], [0], [1], [0, 0, 1, 1], [], []>} : vector<6x6xf32>, vector<6x8xf32>, vector<6x8xf32> -> vector<6x8xf32>
    %369 = vector.extract_strided_slice %348 {offsets = [0, 8], sizes = [6, 8], strides = [1, 1]} : vector<6x32xf32> to vector<6x8xf32>
    %370 = vector.extract_strided_slice %349 {offsets = [0, 8], sizes = [6, 8], strides = [1, 1]} : vector<6x32xf32> to vector<6x8xf32>
    %371 = vector.extract_strided_slice %350 {offsets = [0, 8], sizes = [6, 8], strides = [1, 1]} : vector<6x32xf32> to vector<6x8xf32>
    %cst_168 = arith.constant dense<0.000000e+00> : vector<6x6xf32>
    %372 = tpu.matmul %369, %370, %cst_168 {dimension_numbers = #tpu.dot_dimension_numbers<[1], [1], [0], [0], [0, 0, 1, 0], [], []>} : vector<6x8xf32>, vector<6x8xf32>, vector<6x6xf32> -> vector<6x6xf32>
    %cst_169 = arith.constant 0.353553385 : f32
    %373 = vector.broadcast %cst_169 : f32 to vector<6x6xf32>
    %374 = arith.mulf %372, %373 : vector<6x6xf32>
    %375 = arith.addf %374, %340 : vector<6x6xf32>
    %cst_170 = arith.constant dense<0xFF800000> : vector<6xf32>
    %376 = vector.multi_reduction <maximumf>, %375, %cst_170 [1] : vector<6x6xf32> to vector<6xf32>
    %377 = vector.shape_cast %376 : vector<6xf32> to vector<6x1xf32>
    %378 = vector.broadcast %377 : vector<6x1xf32> to vector<6x6xf32>
    %379 = arith.subf %375, %378 : vector<6x6xf32>
    %380 = math.exp %379 : vector<6x6xf32>
    %cst_171 = arith.constant dense<0.000000e+00> : vector<6xf32>
    %381 = vector.multi_reduction <add>, %380, %cst_171 [1] : vector<6x6xf32> to vector<6xf32>
    %382 = vector.shape_cast %381 : vector<6xf32> to vector<6x1xf32>
    %383 = tpu.reciprocal %382 {approx = true} : vector<6x1xf32> -> vector<6x1xf32>
    %384 = vector.broadcast %383 : vector<6x1xf32> to vector<6x6xf32>
    %385 = arith.mulf %380, %384 : vector<6x6xf32>
    %cst_172 = arith.constant dense<0.000000e+00> : vector<6x8xf32>
    %386 = tpu.matmul %385, %371, %cst_172 {dimension_numbers = #tpu.dot_dimension_numbers<[1], [0], [0], [1], [0, 0, 1, 1], [], []>} : vector<6x6xf32>, vector<6x8xf32>, vector<6x8xf32> -> vector<6x8xf32>
    %387 = vector.extract_strided_slice %348 {offsets = [0, 16], sizes = [6, 8], strides = [1, 1]} : vector<6x32xf32> to vector<6x8xf32>
    %388 = vector.extract_strided_slice %349 {offsets = [0, 16], sizes = [6, 8], strides = [1, 1]} : vector<6x32xf32> to vector<6x8xf32>
    %389 = vector.extract_strided_slice %350 {offsets = [0, 16], sizes = [6, 8], strides = [1, 1]} : vector<6x32xf32> to vector<6x8xf32>
    %cst_173 = arith.constant dense<0.000000e+00> : vector<6x6xf32>
    %390 = tpu.matmul %387, %388, %cst_173 {dimension_numbers = #tpu.dot_dimension_numbers<[1], [1], [0], [0], [0, 0, 1, 0], [], []>} : vector<6x8xf32>, vector<6x8xf32>, vector<6x6xf32> -> vector<6x6xf32>
    %cst_174 = arith.constant 0.353553385 : f32
    %391 = vector.broadcast %cst_174 : f32 to vector<6x6xf32>
    %392 = arith.mulf %390, %391 : vector<6x6xf32>
    %393 = arith.addf %392, %340 : vector<6x6xf32>
    %cst_175 = arith.constant dense<0xFF800000> : vector<6xf32>
    %394 = vector.multi_reduction <maximumf>, %393, %cst_175 [1] : vector<6x6xf32> to vector<6xf32>
    %395 = vector.shape_cast %394 : vector<6xf32> to vector<6x1xf32>
    %396 = vector.broadcast %395 : vector<6x1xf32> to vector<6x6xf32>
    %397 = arith.subf %393, %396 : vector<6x6xf32>
    %398 = math.exp %397 : vector<6x6xf32>
    %cst_176 = arith.constant dense<0.000000e+00> : vector<6xf32>
    %399 = vector.multi_reduction <add>, %398, %cst_176 [1] : vector<6x6xf32> to vector<6xf32>
    %400 = vector.shape_cast %399 : vector<6xf32> to vector<6x1xf32>
    %401 = tpu.reciprocal %400 {approx = true} : vector<6x1xf32> -> vector<6x1xf32>
    %402 = vector.broadcast %401 : vector<6x1xf32> to vector<6x6xf32>
    %403 = arith.mulf %398, %402 : vector<6x6xf32>
    %cst_177 = arith.constant dense<0.000000e+00> : vector<6x8xf32>
    %404 = tpu.matmul %403, %389, %cst_177 {dimension_numbers = #tpu.dot_dimension_numbers<[1], [0], [0], [1], [0, 0, 1, 1], [], []>} : vector<6x6xf32>, vector<6x8xf32>, vector<6x8xf32> -> vector<6x8xf32>
    %405 = vector.extract_strided_slice %348 {offsets = [0, 24], sizes = [6, 8], strides = [1, 1]} : vector<6x32xf32> to vector<6x8xf32>
    %406 = vector.extract_strided_slice %349 {offsets = [0, 24], sizes = [6, 8], strides = [1, 1]} : vector<6x32xf32> to vector<6x8xf32>
    %407 = vector.extract_strided_slice %350 {offsets = [0, 24], sizes = [6, 8], strides = [1, 1]} : vector<6x32xf32> to vector<6x8xf32>
    %cst_178 = arith.constant dense<0.000000e+00> : vector<6x6xf32>
    %408 = tpu.matmul %405, %406, %cst_178 {dimension_numbers = #tpu.dot_dimension_numbers<[1], [1], [0], [0], [0, 0, 1, 0], [], []>} : vector<6x8xf32>, vector<6x8xf32>, vector<6x6xf32> -> vector<6x6xf32>
    %cst_179 = arith.constant 0.353553385 : f32
    %409 = vector.broadcast %cst_179 : f32 to vector<6x6xf32>
    %410 = arith.mulf %408, %409 : vector<6x6xf32>
    %411 = arith.addf %410, %340 : vector<6x6xf32>
    %cst_180 = arith.constant dense<0xFF800000> : vector<6xf32>
    %412 = vector.multi_reduction <maximumf>, %411, %cst_180 [1] : vector<6x6xf32> to vector<6xf32>
    %413 = vector.shape_cast %412 : vector<6xf32> to vector<6x1xf32>
    %414 = vector.broadcast %413 : vector<6x1xf32> to vector<6x6xf32>
    %415 = arith.subf %411, %414 : vector<6x6xf32>
    %416 = math.exp %415 : vector<6x6xf32>
    %cst_181 = arith.constant dense<0.000000e+00> : vector<6xf32>
    %417 = vector.multi_reduction <add>, %416, %cst_181 [1] : vector<6x6xf32> to vector<6xf32>
    %418 = vector.shape_cast %417 : vector<6xf32> to vector<6x1xf32>
    %419 = tpu.reciprocal %418 {approx = true} : vector<6x1xf32> -> vector<6x1xf32>
    %420 = vector.broadcast %419 : vector<6x1xf32> to vector<6x6xf32>
    %421 = arith.mulf %416, %420 : vector<6x6xf32>
    %cst_182 = arith.constant dense<0.000000e+00> : vector<6x8xf32>
    %422 = tpu.matmul %421, %407, %cst_182 {dimension_numbers = #tpu.dot_dimension_numbers<[1], [0], [0], [1], [0, 0, 1, 1], [], []>} : vector<6x6xf32>, vector<6x8xf32>, vector<6x8xf32> -> vector<6x8xf32>
    %423 = tpu.concatenate %368, %386, %404, %422 in 1 : vector<6x8xf32>, vector<6x8xf32>, vector<6x8xf32>, vector<6x8xf32> -> vector<6x32xf32>
    %c0_183 = arith.constant 0 : index
    %c0_184 = arith.constant 0 : index
    %c0_185 = arith.constant 0 : index
    %424 = vector.load %arg20[%c0_183, %c0_184, %c0_185] : memref<2x32x32xf32, #tpu.memory_space<vmem>>, vector<1x32x32xf32>
    %425 = vector.shape_cast %424 : vector<1x32x32xf32> to vector<32x32xf32>
    %c0_186 = arith.constant 0 : index
    %c0_187 = arith.constant 0 : index
    %c0_188 = arith.constant 0 : index
    %426 = vector.load %arg21[%c0_186, %c0_187, %c0_188] : memref<2x1x32xf32, #tpu.memory_space<vmem>>, vector<1x1x32xf32>
    %427 = vector.shape_cast %426 : vector<1x1x32xf32> to vector<1x32xf32>
    %cst_189 = arith.constant dense<0.000000e+00> : vector<6x32xf32>
    %428 = tpu.matmul %423, %425, %cst_189 {dimension_numbers = #tpu.dot_dimension_numbers<[1], [0], [0], [1], [0, 0, 1, 1], [], []>} : vector<6x32xf32>, vector<32x32xf32>, vector<6x32xf32> -> vector<6x32xf32>
    %429 = vector.broadcast %427 : vector<1x32xf32> to vector<6x32xf32>
    %430 = arith.addf %428, %429 : vector<6x32xf32>
    %431 = arith.addf %339, %430 : vector<6x32xf32>
    %c0_190 = arith.constant 0 : index
    %c0_191 = arith.constant 0 : index
    %c0_192 = arith.constant 0 : index
    %432 = vector.load %arg22[%c0_190, %c0_191, %c0_192] : memref<2x1x32xf32, #tpu.memory_space<vmem>>, vector<1x1x32xf32>
    %433 = vector.shape_cast %432 : vector<1x1x32xf32> to vector<1x32xf32>
    %c0_193 = arith.constant 0 : index
    %c0_194 = arith.constant 0 : index
    %c0_195 = arith.constant 0 : index
    %434 = vector.load %arg23[%c0_193, %c0_194, %c0_195] : memref<2x1x32xf32, #tpu.memory_space<vmem>>, vector<1x1x32xf32>
    %435 = vector.shape_cast %434 : vector<1x1x32xf32> to vector<1x32xf32>
    %cst_196 = arith.constant dense<0.000000e+00> : vector<6xf32>
    %436 = vector.multi_reduction <add>, %431, %cst_196 [1] : vector<6x32xf32> to vector<6xf32>
    %437 = vector.shape_cast %436 : vector<6xf32> to vector<6x1xf32>
    %cst_197 = arith.constant 3.200000e+01 : f32
    %438 = vector.broadcast %cst_197 : f32 to vector<6x1xf32>
    %439 = arith.divf %437, %438 : vector<6x1xf32>
    %440 = vector.broadcast %439 : vector<6x1xf32> to vector<6x32xf32>
    %441 = arith.subf %431, %440 : vector<6x32xf32>
    %442 = arith.mulf %441, %441 : vector<6x32xf32>
    %cst_198 = arith.constant dense<0.000000e+00> : vector<6xf32>
    %443 = vector.multi_reduction <add>, %442, %cst_198 [1] : vector<6x32xf32> to vector<6xf32>
    %444 = vector.shape_cast %443 : vector<6xf32> to vector<6x1xf32>
    %cst_199 = arith.constant 3.200000e+01 : f32
    %445 = vector.broadcast %cst_199 : f32 to vector<6x1xf32>
    %446 = arith.divf %444, %445 : vector<6x1xf32>
    %447 = vector.broadcast %439 : vector<6x1xf32> to vector<6x32xf32>
    %448 = arith.subf %431, %447 : vector<6x32xf32>
    %cst_200 = arith.constant 9.99999974E-6 : f32
    %449 = vector.broadcast %cst_200 : f32 to vector<6x1xf32>
    %450 = arith.addf %446, %449 : vector<6x1xf32>
    %451 = math.rsqrt %450 : vector<6x1xf32>
    %452 = vector.broadcast %451 : vector<6x1xf32> to vector<6x32xf32>
    %453 = arith.mulf %448, %452 : vector<6x32xf32>
    %454 = vector.broadcast %433 : vector<1x32xf32> to vector<6x32xf32>
    %455 = arith.mulf %453, %454 : vector<6x32xf32>
    %456 = vector.broadcast %435 : vector<1x32xf32> to vector<6x32xf32>
    %457 = arith.addf %455, %456 : vector<6x32xf32>
    %c0_201 = arith.constant 0 : index
    %c0_202 = arith.constant 0 : index
    %c0_203 = arith.constant 0 : index
    %458 = vector.load %arg24[%c0_201, %c0_202, %c0_203] : memref<2x32x32xf32, #tpu.memory_space<vmem>>, vector<1x32x32xf32>
    %459 = vector.shape_cast %458 : vector<1x32x32xf32> to vector<32x32xf32>
    %c0_204 = arith.constant 0 : index
    %c0_205 = arith.constant 0 : index
    %c0_206 = arith.constant 0 : index
    %460 = vector.load %arg25[%c0_204, %c0_205, %c0_206] : memref<2x1x32xf32, #tpu.memory_space<vmem>>, vector<1x1x32xf32>
    %461 = vector.shape_cast %460 : vector<1x1x32xf32> to vector<1x32xf32>
    %cst_207 = arith.constant dense<0.000000e+00> : vector<6x32xf32>
    %462 = tpu.matmul %457, %459, %cst_207 {dimension_numbers = #tpu.dot_dimension_numbers<[1], [0], [0], [1], [0, 0, 1, 1], [], []>} : vector<6x32xf32>, vector<32x32xf32>, vector<6x32xf32> -> vector<6x32xf32>
    %463 = vector.broadcast %461 : vector<1x32xf32> to vector<6x32xf32>
    %464 = arith.addf %462, %463 : vector<6x32xf32>
    %c0_208 = arith.constant 0 : index
    %c0_209 = arith.constant 0 : index
    %c0_210 = arith.constant 0 : index
    %465 = vector.load %arg26[%c0_208, %c0_209, %c0_210] : memref<2x32x64xf32, #tpu.memory_space<vmem>>, vector<1x32x64xf32>
    %466 = vector.shape_cast %465 : vector<1x32x64xf32> to vector<32x64xf32>
    %c0_211 = arith.constant 0 : index
    %c0_212 = arith.constant 0 : index
    %c0_213 = arith.constant 0 : index
    %467 = vector.load %arg27[%c0_211, %c0_212, %c0_213] : memref<2x1x64xf32, #tpu.memory_space<vmem>>, vector<1x1x64xf32>
    %468 = vector.shape_cast %467 : vector<1x1x64xf32> to vector<1x64xf32>
    %cst_214 = arith.constant dense<0.000000e+00> : vector<10x64xf32>
    %469 = tpu.matmul %337, %466, %cst_214 {dimension_numbers = #tpu.dot_dimension_numbers<[1], [0], [0], [1], [0, 0, 1, 1], [], []>} : vector<10x32xf32>, vector<32x64xf32>, vector<10x64xf32> -> vector<10x64xf32>
    %470 = vector.broadcast %468 : vector<1x64xf32> to vector<10x64xf32>
    %471 = arith.addf %469, %470 : vector<10x64xf32>
    %472 = vector.extract_strided_slice %471 {offsets = [0, 0], sizes = [10, 32], strides = [1, 1]} : vector<10x64xf32> to vector<10x32xf32>
    %473 = vector.extract_strided_slice %471 {offsets = [0, 32], sizes = [10, 32], strides = [1, 1]} : vector<10x64xf32> to vector<10x32xf32>
    %474 = vector.extract_strided_slice %464 {offsets = [0, 0], sizes = [6, 8], strides = [1, 1]} : vector<6x32xf32> to vector<6x8xf32>
    %475 = vector.extract_strided_slice %472 {offsets = [0, 0], sizes = [10, 8], strides = [1, 1]} : vector<10x32xf32> to vector<10x8xf32>
    %476 = vector.extract_strided_slice %473 {offsets = [0, 0], sizes = [10, 8], strides = [1, 1]} : vector<10x32xf32> to vector<10x8xf32>
    %cst_215 = arith.constant dense<0.000000e+00> : vector<6x10xf32>
    %477 = tpu.matmul %474, %475, %cst_215 {dimension_numbers = #tpu.dot_dimension_numbers<[1], [1], [0], [0], [0, 0, 1, 0], [], []>} : vector<6x8xf32>, vector<10x8xf32>, vector<6x10xf32> -> vector<6x10xf32>
    %cst_216 = arith.constant 0.353553385 : f32
    %478 = vector.broadcast %cst_216 : f32 to vector<6x10xf32>
    %479 = arith.mulf %477, %478 : vector<6x10xf32>
    %cst_217 = arith.constant dense<0xFF800000> : vector<6xf32>
    %480 = vector.multi_reduction <maximumf>, %479, %cst_217 [1] : vector<6x10xf32> to vector<6xf32>
    %481 = vector.shape_cast %480 : vector<6xf32> to vector<6x1xf32>
    %482 = vector.broadcast %481 : vector<6x1xf32> to vector<6x10xf32>
    %483 = arith.subf %479, %482 : vector<6x10xf32>
    %484 = math.exp %483 : vector<6x10xf32>
    %cst_218 = arith.constant dense<0.000000e+00> : vector<6xf32>
    %485 = vector.multi_reduction <add>, %484, %cst_218 [1] : vector<6x10xf32> to vector<6xf32>
    %486 = vector.shape_cast %485 : vector<6xf32> to vector<6x1xf32>
    %487 = tpu.reciprocal %486 {approx = true} : vector<6x1xf32> -> vector<6x1xf32>
    %488 = vector.broadcast %487 : vector<6x1xf32> to vector<6x10xf32>
    %489 = arith.mulf %484, %488 : vector<6x10xf32>
    %cst_219 = arith.constant dense<0.000000e+00> : vector<6x8xf32>
    %490 = tpu.matmul %489, %476, %cst_219 {dimension_numbers = #tpu.dot_dimension_numbers<[1], [0], [0], [1], [0, 0, 1, 1], [], []>} : vector<6x10xf32>, vector<10x8xf32>, vector<6x8xf32> -> vector<6x8xf32>
    %491 = vector.extract_strided_slice %464 {offsets = [0, 8], sizes = [6, 8], strides = [1, 1]} : vector<6x32xf32> to vector<6x8xf32>
    %492 = vector.extract_strided_slice %472 {offsets = [0, 8], sizes = [10, 8], strides = [1, 1]} : vector<10x32xf32> to vector<10x8xf32>
    %493 = vector.extract_strided_slice %473 {offsets = [0, 8], sizes = [10, 8], strides = [1, 1]} : vector<10x32xf32> to vector<10x8xf32>
    %cst_220 = arith.constant dense<0.000000e+00> : vector<6x10xf32>
    %494 = tpu.matmul %491, %492, %cst_220 {dimension_numbers = #tpu.dot_dimension_numbers<[1], [1], [0], [0], [0, 0, 1, 0], [], []>} : vector<6x8xf32>, vector<10x8xf32>, vector<6x10xf32> -> vector<6x10xf32>
    %cst_221 = arith.constant 0.353553385 : f32
    %495 = vector.broadcast %cst_221 : f32 to vector<6x10xf32>
    %496 = arith.mulf %494, %495 : vector<6x10xf32>
    %cst_222 = arith.constant dense<0xFF800000> : vector<6xf32>
    %497 = vector.multi_reduction <maximumf>, %496, %cst_222 [1] : vector<6x10xf32> to vector<6xf32>
    %498 = vector.shape_cast %497 : vector<6xf32> to vector<6x1xf32>
    %499 = vector.broadcast %498 : vector<6x1xf32> to vector<6x10xf32>
    %500 = arith.subf %496, %499 : vector<6x10xf32>
    %501 = math.exp %500 : vector<6x10xf32>
    %cst_223 = arith.constant dense<0.000000e+00> : vector<6xf32>
    %502 = vector.multi_reduction <add>, %501, %cst_223 [1] : vector<6x10xf32> to vector<6xf32>
    %503 = vector.shape_cast %502 : vector<6xf32> to vector<6x1xf32>
    %504 = tpu.reciprocal %503 {approx = true} : vector<6x1xf32> -> vector<6x1xf32>
    %505 = vector.broadcast %504 : vector<6x1xf32> to vector<6x10xf32>
    %506 = arith.mulf %501, %505 : vector<6x10xf32>
    %cst_224 = arith.constant dense<0.000000e+00> : vector<6x8xf32>
    %507 = tpu.matmul %506, %493, %cst_224 {dimension_numbers = #tpu.dot_dimension_numbers<[1], [0], [0], [1], [0, 0, 1, 1], [], []>} : vector<6x10xf32>, vector<10x8xf32>, vector<6x8xf32> -> vector<6x8xf32>
    %508 = vector.extract_strided_slice %464 {offsets = [0, 16], sizes = [6, 8], strides = [1, 1]} : vector<6x32xf32> to vector<6x8xf32>
    %509 = vector.extract_strided_slice %472 {offsets = [0, 16], sizes = [10, 8], strides = [1, 1]} : vector<10x32xf32> to vector<10x8xf32>
    %510 = vector.extract_strided_slice %473 {offsets = [0, 16], sizes = [10, 8], strides = [1, 1]} : vector<10x32xf32> to vector<10x8xf32>
    %cst_225 = arith.constant dense<0.000000e+00> : vector<6x10xf32>
    %511 = tpu.matmul %508, %509, %cst_225 {dimension_numbers = #tpu.dot_dimension_numbers<[1], [1], [0], [0], [0, 0, 1, 0], [], []>} : vector<6x8xf32>, vector<10x8xf32>, vector<6x10xf32> -> vector<6x10xf32>
    %cst_226 = arith.constant 0.353553385 : f32
    %512 = vector.broadcast %cst_226 : f32 to vector<6x10xf32>
    %513 = arith.mulf %511, %512 : vector<6x10xf32>
    %cst_227 = arith.constant dense<0xFF800000> : vector<6xf32>
    %514 = vector.multi_reduction <maximumf>, %513, %cst_227 [1] : vector<6x10xf32> to vector<6xf32>
    %515 = vector.shape_cast %514 : vector<6xf32> to vector<6x1xf32>
    %516 = vector.broadcast %515 : vector<6x1xf32> to vector<6x10xf32>
    %517 = arith.subf %513, %516 : vector<6x10xf32>
    %518 = math.exp %517 : vector<6x10xf32>
    %cst_228 = arith.constant dense<0.000000e+00> : vector<6xf32>
    %519 = vector.multi_reduction <add>, %518, %cst_228 [1] : vector<6x10xf32> to vector<6xf32>
    %520 = vector.shape_cast %519 : vector<6xf32> to vector<6x1xf32>
    %521 = tpu.reciprocal %520 {approx = true} : vector<6x1xf32> -> vector<6x1xf32>
    %522 = vector.broadcast %521 : vector<6x1xf32> to vector<6x10xf32>
    %523 = arith.mulf %518, %522 : vector<6x10xf32>
    %cst_229 = arith.constant dense<0.000000e+00> : vector<6x8xf32>
    %524 = tpu.matmul %523, %510, %cst_229 {dimension_numbers = #tpu.dot_dimension_numbers<[1], [0], [0], [1], [0, 0, 1, 1], [], []>} : vector<6x10xf32>, vector<10x8xf32>, vector<6x8xf32> -> vector<6x8xf32>
    %525 = vector.extract_strided_slice %464 {offsets = [0, 24], sizes = [6, 8], strides = [1, 1]} : vector<6x32xf32> to vector<6x8xf32>
    %526 = vector.extract_strided_slice %472 {offsets = [0, 24], sizes = [10, 8], strides = [1, 1]} : vector<10x32xf32> to vector<10x8xf32>
    %527 = vector.extract_strided_slice %473 {offsets = [0, 24], sizes = [10, 8], strides = [1, 1]} : vector<10x32xf32> to vector<10x8xf32>
    %cst_230 = arith.constant dense<0.000000e+00> : vector<6x10xf32>
    %528 = tpu.matmul %525, %526, %cst_230 {dimension_numbers = #tpu.dot_dimension_numbers<[1], [1], [0], [0], [0, 0, 1, 0], [], []>} : vector<6x8xf32>, vector<10x8xf32>, vector<6x10xf32> -> vector<6x10xf32>
    %cst_231 = arith.constant 0.353553385 : f32
    %529 = vector.broadcast %cst_231 : f32 to vector<6x10xf32>
    %530 = arith.mulf %528, %529 : vector<6x10xf32>
    %cst_232 = arith.constant dense<0xFF800000> : vector<6xf32>
    %531 = vector.multi_reduction <maximumf>, %530, %cst_232 [1] : vector<6x10xf32> to vector<6xf32>
    %532 = vector.shape_cast %531 : vector<6xf32> to vector<6x1xf32>
    %533 = vector.broadcast %532 : vector<6x1xf32> to vector<6x10xf32>
    %534 = arith.subf %530, %533 : vector<6x10xf32>
    %535 = math.exp %534 : vector<6x10xf32>
    %cst_233 = arith.constant dense<0.000000e+00> : vector<6xf32>
    %536 = vector.multi_reduction <add>, %535, %cst_233 [1] : vector<6x10xf32> to vector<6xf32>
    %537 = vector.shape_cast %536 : vector<6xf32> to vector<6x1xf32>
    %538 = tpu.reciprocal %537 {approx = true} : vector<6x1xf32> -> vector<6x1xf32>
    %539 = vector.broadcast %538 : vector<6x1xf32> to vector<6x10xf32>
    %540 = arith.mulf %535, %539 : vector<6x10xf32>
    %cst_234 = arith.constant dense<0.000000e+00> : vector<6x8xf32>
    %541 = tpu.matmul %540, %527, %cst_234 {dimension_numbers = #tpu.dot_dimension_numbers<[1], [0], [0], [1], [0, 0, 1, 1], [], []>} : vector<6x10xf32>, vector<10x8xf32>, vector<6x8xf32> -> vector<6x8xf32>
    %542 = tpu.concatenate %490, %507, %524, %541 in 1 : vector<6x8xf32>, vector<6x8xf32>, vector<6x8xf32>, vector<6x8xf32> -> vector<6x32xf32>
    %c0_235 = arith.constant 0 : index
    %c0_236 = arith.constant 0 : index
    %c0_237 = arith.constant 0 : index
    %543 = vector.load %arg28[%c0_235, %c0_236, %c0_237] : memref<2x32x32xf32, #tpu.memory_space<vmem>>, vector<1x32x32xf32>
    %544 = vector.shape_cast %543 : vector<1x32x32xf32> to vector<32x32xf32>
    %c0_238 = arith.constant 0 : index
    %c0_239 = arith.constant 0 : index
    %c0_240 = arith.constant 0 : index
    %545 = vector.load %arg29[%c0_238, %c0_239, %c0_240] : memref<2x1x32xf32, #tpu.memory_space<vmem>>, vector<1x1x32xf32>
    %546 = vector.shape_cast %545 : vector<1x1x32xf32> to vector<1x32xf32>
    %cst_241 = arith.constant dense<0.000000e+00> : vector<6x32xf32>
    %547 = tpu.matmul %542, %544, %cst_241 {dimension_numbers = #tpu.dot_dimension_numbers<[1], [0], [0], [1], [0, 0, 1, 1], [], []>} : vector<6x32xf32>, vector<32x32xf32>, vector<6x32xf32> -> vector<6x32xf32>
    %548 = vector.broadcast %546 : vector<1x32xf32> to vector<6x32xf32>
    %549 = arith.addf %547, %548 : vector<6x32xf32>
    %550 = arith.addf %457, %549 : vector<6x32xf32>
    %c0_242 = arith.constant 0 : index
    %c0_243 = arith.constant 0 : index
    %c0_244 = arith.constant 0 : index
    %551 = vector.load %arg30[%c0_242, %c0_243, %c0_244] : memref<2x1x32xf32, #tpu.memory_space<vmem>>, vector<1x1x32xf32>
    %552 = vector.shape_cast %551 : vector<1x1x32xf32> to vector<1x32xf32>
    %c0_245 = arith.constant 0 : index
    %c0_246 = arith.constant 0 : index
    %c0_247 = arith.constant 0 : index
    %553 = vector.load %arg31[%c0_245, %c0_246, %c0_247] : memref<2x1x32xf32, #tpu.memory_space<vmem>>, vector<1x1x32xf32>
    %554 = vector.shape_cast %553 : vector<1x1x32xf32> to vector<1x32xf32>
    %cst_248 = arith.constant dense<0.000000e+00> : vector<6xf32>
    %555 = vector.multi_reduction <add>, %550, %cst_248 [1] : vector<6x32xf32> to vector<6xf32>
    %556 = vector.shape_cast %555 : vector<6xf32> to vector<6x1xf32>
    %cst_249 = arith.constant 3.200000e+01 : f32
    %557 = vector.broadcast %cst_249 : f32 to vector<6x1xf32>
    %558 = arith.divf %556, %557 : vector<6x1xf32>
    %559 = vector.broadcast %558 : vector<6x1xf32> to vector<6x32xf32>
    %560 = arith.subf %550, %559 : vector<6x32xf32>
    %561 = arith.mulf %560, %560 : vector<6x32xf32>
    %cst_250 = arith.constant dense<0.000000e+00> : vector<6xf32>
    %562 = vector.multi_reduction <add>, %561, %cst_250 [1] : vector<6x32xf32> to vector<6xf32>
    %563 = vector.shape_cast %562 : vector<6xf32> to vector<6x1xf32>
    %cst_251 = arith.constant 3.200000e+01 : f32
    %564 = vector.broadcast %cst_251 : f32 to vector<6x1xf32>
    %565 = arith.divf %563, %564 : vector<6x1xf32>
    %566 = vector.broadcast %558 : vector<6x1xf32> to vector<6x32xf32>
    %567 = arith.subf %550, %566 : vector<6x32xf32>
    %cst_252 = arith.constant 9.99999974E-6 : f32
    %568 = vector.broadcast %cst_252 : f32 to vector<6x1xf32>
    %569 = arith.addf %565, %568 : vector<6x1xf32>
    %570 = math.rsqrt %569 : vector<6x1xf32>
    %571 = vector.broadcast %570 : vector<6x1xf32> to vector<6x32xf32>
    %572 = arith.mulf %567, %571 : vector<6x32xf32>
    %573 = vector.broadcast %552 : vector<1x32xf32> to vector<6x32xf32>
    %574 = arith.mulf %572, %573 : vector<6x32xf32>
    %575 = vector.broadcast %554 : vector<1x32xf32> to vector<6x32xf32>
    %576 = arith.addf %574, %575 : vector<6x32xf32>
    %c0_253 = arith.constant 0 : index
    %c0_254 = arith.constant 0 : index
    %c0_255 = arith.constant 0 : index
    %577 = vector.load %arg32[%c0_253, %c0_254, %c0_255] : memref<2x32x64xf32, #tpu.memory_space<vmem>>, vector<1x32x64xf32>
    %578 = vector.shape_cast %577 : vector<1x32x64xf32> to vector<32x64xf32>
    %c0_256 = arith.constant 0 : index
    %c0_257 = arith.constant 0 : index
    %c0_258 = arith.constant 0 : index
    %579 = vector.load %arg33[%c0_256, %c0_257, %c0_258] : memref<2x1x64xf32, #tpu.memory_space<vmem>>, vector<1x1x64xf32>
    %580 = vector.shape_cast %579 : vector<1x1x64xf32> to vector<1x64xf32>
    %cst_259 = arith.constant dense<0.000000e+00> : vector<6x64xf32>
    %581 = tpu.matmul %576, %578, %cst_259 {dimension_numbers = #tpu.dot_dimension_numbers<[1], [0], [0], [1], [0, 0, 1, 1], [], []>} : vector<6x32xf32>, vector<32x64xf32>, vector<6x64xf32> -> vector<6x64xf32>
    %582 = vector.broadcast %580 : vector<1x64xf32> to vector<6x64xf32>
    %583 = arith.addf %581, %582 : vector<6x64xf32>
    %cst_260 = arith.constant 0.000000e+00 : f32
    %584 = vector.broadcast %cst_260 : f32 to vector<6x64xf32>
    %585 = arith.maximumf %583, %584 : vector<6x64xf32>
    %c0_261 = arith.constant 0 : index
    %c0_262 = arith.constant 0 : index
    %c0_263 = arith.constant 0 : index
    %586 = vector.load %arg34[%c0_261, %c0_262, %c0_263] : memref<2x64x32xf32, #tpu.memory_space<vmem>>, vector<1x64x32xf32>
    %587 = vector.shape_cast %586 : vector<1x64x32xf32> to vector<64x32xf32>
    %c0_264 = arith.constant 0 : index
    %c0_265 = arith.constant 0 : index
    %c0_266 = arith.constant 0 : index
    %588 = vector.load %arg35[%c0_264, %c0_265, %c0_266] : memref<2x1x32xf32, #tpu.memory_space<vmem>>, vector<1x1x32xf32>
    %589 = vector.shape_cast %588 : vector<1x1x32xf32> to vector<1x32xf32>
    %cst_267 = arith.constant dense<0.000000e+00> : vector<6x32xf32>
    %590 = tpu.matmul %585, %587, %cst_267 {dimension_numbers = #tpu.dot_dimension_numbers<[1], [0], [0], [1], [0, 0, 1, 1], [], []>} : vector<6x64xf32>, vector<64x32xf32>, vector<6x32xf32> -> vector<6x32xf32>
    %591 = vector.broadcast %589 : vector<1x32xf32> to vector<6x32xf32>
    %592 = arith.addf %590, %591 : vector<6x32xf32>
    %593 = arith.addf %576, %592 : vector<6x32xf32>
    %c0_268 = arith.constant 0 : index
    %c0_269 = arith.constant 0 : index
    %c0_270 = arith.constant 0 : index
    %594 = vector.load %arg36[%c0_268, %c0_269, %c0_270] : memref<2x1x32xf32, #tpu.memory_space<vmem>>, vector<1x1x32xf32>
    %595 = vector.shape_cast %594 : vector<1x1x32xf32> to vector<1x32xf32>
    %c0_271 = arith.constant 0 : index
    %c0_272 = arith.constant 0 : index
    %c0_273 = arith.constant 0 : index
    %596 = vector.load %arg37[%c0_271, %c0_272, %c0_273] : memref<2x1x32xf32, #tpu.memory_space<vmem>>, vector<1x1x32xf32>
    %597 = vector.shape_cast %596 : vector<1x1x32xf32> to vector<1x32xf32>
    %cst_274 = arith.constant dense<0.000000e+00> : vector<6xf32>
    %598 = vector.multi_reduction <add>, %593, %cst_274 [1] : vector<6x32xf32> to vector<6xf32>
    %599 = vector.shape_cast %598 : vector<6xf32> to vector<6x1xf32>
    %cst_275 = arith.constant 3.200000e+01 : f32
    %600 = vector.broadcast %cst_275 : f32 to vector<6x1xf32>
    %601 = arith.divf %599, %600 : vector<6x1xf32>
    %602 = vector.broadcast %601 : vector<6x1xf32> to vector<6x32xf32>
    %603 = arith.subf %593, %602 : vector<6x32xf32>
    %604 = arith.mulf %603, %603 : vector<6x32xf32>
    %cst_276 = arith.constant dense<0.000000e+00> : vector<6xf32>
    %605 = vector.multi_reduction <add>, %604, %cst_276 [1] : vector<6x32xf32> to vector<6xf32>
    %606 = vector.shape_cast %605 : vector<6xf32> to vector<6x1xf32>
    %cst_277 = arith.constant 3.200000e+01 : f32
    %607 = vector.broadcast %cst_277 : f32 to vector<6x1xf32>
    %608 = arith.divf %606, %607 : vector<6x1xf32>
    %609 = vector.broadcast %601 : vector<6x1xf32> to vector<6x32xf32>
    %610 = arith.subf %593, %609 : vector<6x32xf32>
    %cst_278 = arith.constant 9.99999974E-6 : f32
    %611 = vector.broadcast %cst_278 : f32 to vector<6x1xf32>
    %612 = arith.addf %608, %611 : vector<6x1xf32>
    %613 = math.rsqrt %612 : vector<6x1xf32>
    %614 = vector.broadcast %613 : vector<6x1xf32> to vector<6x32xf32>
    %615 = arith.mulf %610, %614 : vector<6x32xf32>
    %616 = vector.broadcast %595 : vector<1x32xf32> to vector<6x32xf32>
    %617 = arith.mulf %615, %616 : vector<6x32xf32>
    %618 = vector.broadcast %597 : vector<1x32xf32> to vector<6x32xf32>
    %619 = arith.addf %617, %618 : vector<6x32xf32>
    %c1_279 = arith.constant 1 : index
    %c0_280 = arith.constant 0 : index
    %c0_281 = arith.constant 0 : index
    %620 = vector.load %arg18[%c1_279, %c0_280, %c0_281] : memref<2x32x96xf32, #tpu.memory_space<vmem>>, vector<1x32x96xf32>
    %621 = vector.shape_cast %620 : vector<1x32x96xf32> to vector<32x96xf32>
    %c1_282 = arith.constant 1 : index
    %c0_283 = arith.constant 0 : index
    %c0_284 = arith.constant 0 : index
    %622 = vector.load %arg19[%c1_282, %c0_283, %c0_284] : memref<2x1x96xf32, #tpu.memory_space<vmem>>, vector<1x1x96xf32>
    %623 = vector.shape_cast %622 : vector<1x1x96xf32> to vector<1x96xf32>
    %cst_285 = arith.constant dense<0.000000e+00> : vector<6x96xf32>
    %624 = tpu.matmul %619, %621, %cst_285 {dimension_numbers = #tpu.dot_dimension_numbers<[1], [0], [0], [1], [0, 0, 1, 1], [], []>} : vector<6x32xf32>, vector<32x96xf32>, vector<6x96xf32> -> vector<6x96xf32>
    %625 = vector.broadcast %623 : vector<1x96xf32> to vector<6x96xf32>
    %626 = arith.addf %624, %625 : vector<6x96xf32>
    %627 = vector.extract_strided_slice %626 {offsets = [0, 0], sizes = [6, 32], strides = [1, 1]} : vector<6x96xf32> to vector<6x32xf32>
    %628 = vector.extract_strided_slice %626 {offsets = [0, 32], sizes = [6, 32], strides = [1, 1]} : vector<6x96xf32> to vector<6x32xf32>
    %629 = vector.extract_strided_slice %626 {offsets = [0, 64], sizes = [6, 32], strides = [1, 1]} : vector<6x96xf32> to vector<6x32xf32>
    %630 = vector.extract_strided_slice %627 {offsets = [0, 0], sizes = [6, 8], strides = [1, 1]} : vector<6x32xf32> to vector<6x8xf32>
    %631 = vector.extract_strided_slice %628 {offsets = [0, 0], sizes = [6, 8], strides = [1, 1]} : vector<6x32xf32> to vector<6x8xf32>
    %632 = vector.extract_strided_slice %629 {offsets = [0, 0], sizes = [6, 8], strides = [1, 1]} : vector<6x32xf32> to vector<6x8xf32>
    %cst_286 = arith.constant dense<0.000000e+00> : vector<6x6xf32>
    %633 = tpu.matmul %630, %631, %cst_286 {dimension_numbers = #tpu.dot_dimension_numbers<[1], [1], [0], [0], [0, 0, 1, 0], [], []>} : vector<6x8xf32>, vector<6x8xf32>, vector<6x6xf32> -> vector<6x6xf32>
    %cst_287 = arith.constant 0.353553385 : f32
    %634 = vector.broadcast %cst_287 : f32 to vector<6x6xf32>
    %635 = arith.mulf %633, %634 : vector<6x6xf32>
    %636 = arith.addf %635, %340 : vector<6x6xf32>
    %cst_288 = arith.constant dense<0xFF800000> : vector<6xf32>
    %637 = vector.multi_reduction <maximumf>, %636, %cst_288 [1] : vector<6x6xf32> to vector<6xf32>
    %638 = vector.shape_cast %637 : vector<6xf32> to vector<6x1xf32>
    %639 = vector.broadcast %638 : vector<6x1xf32> to vector<6x6xf32>
    %640 = arith.subf %636, %639 : vector<6x6xf32>
    %641 = math.exp %640 : vector<6x6xf32>
    %cst_289 = arith.constant dense<0.000000e+00> : vector<6xf32>
    %642 = vector.multi_reduction <add>, %641, %cst_289 [1] : vector<6x6xf32> to vector<6xf32>
    %643 = vector.shape_cast %642 : vector<6xf32> to vector<6x1xf32>
    %644 = tpu.reciprocal %643 {approx = true} : vector<6x1xf32> -> vector<6x1xf32>
    %645 = vector.broadcast %644 : vector<6x1xf32> to vector<6x6xf32>
    %646 = arith.mulf %641, %645 : vector<6x6xf32>
    %cst_290 = arith.constant dense<0.000000e+00> : vector<6x8xf32>
    %647 = tpu.matmul %646, %632, %cst_290 {dimension_numbers = #tpu.dot_dimension_numbers<[1], [0], [0], [1], [0, 0, 1, 1], [], []>} : vector<6x6xf32>, vector<6x8xf32>, vector<6x8xf32> -> vector<6x8xf32>
    %648 = vector.extract_strided_slice %627 {offsets = [0, 8], sizes = [6, 8], strides = [1, 1]} : vector<6x32xf32> to vector<6x8xf32>
    %649 = vector.extract_strided_slice %628 {offsets = [0, 8], sizes = [6, 8], strides = [1, 1]} : vector<6x32xf32> to vector<6x8xf32>
    %650 = vector.extract_strided_slice %629 {offsets = [0, 8], sizes = [6, 8], strides = [1, 1]} : vector<6x32xf32> to vector<6x8xf32>
    %cst_291 = arith.constant dense<0.000000e+00> : vector<6x6xf32>
    %651 = tpu.matmul %648, %649, %cst_291 {dimension_numbers = #tpu.dot_dimension_numbers<[1], [1], [0], [0], [0, 0, 1, 0], [], []>} : vector<6x8xf32>, vector<6x8xf32>, vector<6x6xf32> -> vector<6x6xf32>
    %cst_292 = arith.constant 0.353553385 : f32
    %652 = vector.broadcast %cst_292 : f32 to vector<6x6xf32>
    %653 = arith.mulf %651, %652 : vector<6x6xf32>
    %654 = arith.addf %653, %340 : vector<6x6xf32>
    %cst_293 = arith.constant dense<0xFF800000> : vector<6xf32>
    %655 = vector.multi_reduction <maximumf>, %654, %cst_293 [1] : vector<6x6xf32> to vector<6xf32>
    %656 = vector.shape_cast %655 : vector<6xf32> to vector<6x1xf32>
    %657 = vector.broadcast %656 : vector<6x1xf32> to vector<6x6xf32>
    %658 = arith.subf %654, %657 : vector<6x6xf32>
    %659 = math.exp %658 : vector<6x6xf32>
    %cst_294 = arith.constant dense<0.000000e+00> : vector<6xf32>
    %660 = vector.multi_reduction <add>, %659, %cst_294 [1] : vector<6x6xf32> to vector<6xf32>
    %661 = vector.shape_cast %660 : vector<6xf32> to vector<6x1xf32>
    %662 = tpu.reciprocal %661 {approx = true} : vector<6x1xf32> -> vector<6x1xf32>
    %663 = vector.broadcast %662 : vector<6x1xf32> to vector<6x6xf32>
    %664 = arith.mulf %659, %663 : vector<6x6xf32>
    %cst_295 = arith.constant dense<0.000000e+00> : vector<6x8xf32>
    %665 = tpu.matmul %664, %650, %cst_295 {dimension_numbers = #tpu.dot_dimension_numbers<[1], [0], [0], [1], [0, 0, 1, 1], [], []>} : vector<6x6xf32>, vector<6x8xf32>, vector<6x8xf32> -> vector<6x8xf32>
    %666 = vector.extract_strided_slice %627 {offsets = [0, 16], sizes = [6, 8], strides = [1, 1]} : vector<6x32xf32> to vector<6x8xf32>
    %667 = vector.extract_strided_slice %628 {offsets = [0, 16], sizes = [6, 8], strides = [1, 1]} : vector<6x32xf32> to vector<6x8xf32>
    %668 = vector.extract_strided_slice %629 {offsets = [0, 16], sizes = [6, 8], strides = [1, 1]} : vector<6x32xf32> to vector<6x8xf32>
    %cst_296 = arith.constant dense<0.000000e+00> : vector<6x6xf32>
    %669 = tpu.matmul %666, %667, %cst_296 {dimension_numbers = #tpu.dot_dimension_numbers<[1], [1], [0], [0], [0, 0, 1, 0], [], []>} : vector<6x8xf32>, vector<6x8xf32>, vector<6x6xf32> -> vector<6x6xf32>
    %cst_297 = arith.constant 0.353553385 : f32
    %670 = vector.broadcast %cst_297 : f32 to vector<6x6xf32>
    %671 = arith.mulf %669, %670 : vector<6x6xf32>
    %672 = arith.addf %671, %340 : vector<6x6xf32>
    %cst_298 = arith.constant dense<0xFF800000> : vector<6xf32>
    %673 = vector.multi_reduction <maximumf>, %672, %cst_298 [1] : vector<6x6xf32> to vector<6xf32>
    %674 = vector.shape_cast %673 : vector<6xf32> to vector<6x1xf32>
    %675 = vector.broadcast %674 : vector<6x1xf32> to vector<6x6xf32>
    %676 = arith.subf %672, %675 : vector<6x6xf32>
    %677 = math.exp %676 : vector<6x6xf32>
    %cst_299 = arith.constant dense<0.000000e+00> : vector<6xf32>
    %678 = vector.multi_reduction <add>, %677, %cst_299 [1] : vector<6x6xf32> to vector<6xf32>
    %679 = vector.shape_cast %678 : vector<6xf32> to vector<6x1xf32>
    %680 = tpu.reciprocal %679 {approx = true} : vector<6x1xf32> -> vector<6x1xf32>
    %681 = vector.broadcast %680 : vector<6x1xf32> to vector<6x6xf32>
    %682 = arith.mulf %677, %681 : vector<6x6xf32>
    %cst_300 = arith.constant dense<0.000000e+00> : vector<6x8xf32>
    %683 = tpu.matmul %682, %668, %cst_300 {dimension_numbers = #tpu.dot_dimension_numbers<[1], [0], [0], [1], [0, 0, 1, 1], [], []>} : vector<6x6xf32>, vector<6x8xf32>, vector<6x8xf32> -> vector<6x8xf32>
    %684 = vector.extract_strided_slice %627 {offsets = [0, 24], sizes = [6, 8], strides = [1, 1]} : vector<6x32xf32> to vector<6x8xf32>
    %685 = vector.extract_strided_slice %628 {offsets = [0, 24], sizes = [6, 8], strides = [1, 1]} : vector<6x32xf32> to vector<6x8xf32>
    %686 = vector.extract_strided_slice %629 {offsets = [0, 24], sizes = [6, 8], strides = [1, 1]} : vector<6x32xf32> to vector<6x8xf32>
    %cst_301 = arith.constant dense<0.000000e+00> : vector<6x6xf32>
    %687 = tpu.matmul %684, %685, %cst_301 {dimension_numbers = #tpu.dot_dimension_numbers<[1], [1], [0], [0], [0, 0, 1, 0], [], []>} : vector<6x8xf32>, vector<6x8xf32>, vector<6x6xf32> -> vector<6x6xf32>
    %cst_302 = arith.constant 0.353553385 : f32
    %688 = vector.broadcast %cst_302 : f32 to vector<6x6xf32>
    %689 = arith.mulf %687, %688 : vector<6x6xf32>
    %690 = arith.addf %689, %340 : vector<6x6xf32>
    %cst_303 = arith.constant dense<0xFF800000> : vector<6xf32>
    %691 = vector.multi_reduction <maximumf>, %690, %cst_303 [1] : vector<6x6xf32> to vector<6xf32>
    %692 = vector.shape_cast %691 : vector<6xf32> to vector<6x1xf32>
    %693 = vector.broadcast %692 : vector<6x1xf32> to vector<6x6xf32>
    %694 = arith.subf %690, %693 : vector<6x6xf32>
    %695 = math.exp %694 : vector<6x6xf32>
    %cst_304 = arith.constant dense<0.000000e+00> : vector<6xf32>
    %696 = vector.multi_reduction <add>, %695, %cst_304 [1] : vector<6x6xf32> to vector<6xf32>
    %697 = vector.shape_cast %696 : vector<6xf32> to vector<6x1xf32>
    %698 = tpu.reciprocal %697 {approx = true} : vector<6x1xf32> -> vector<6x1xf32>
    %699 = vector.broadcast %698 : vector<6x1xf32> to vector<6x6xf32>
    %700 = arith.mulf %695, %699 : vector<6x6xf32>
    %cst_305 = arith.constant dense<0.000000e+00> : vector<6x8xf32>
    %701 = tpu.matmul %700, %686, %cst_305 {dimension_numbers = #tpu.dot_dimension_numbers<[1], [0], [0], [1], [0, 0, 1, 1], [], []>} : vector<6x6xf32>, vector<6x8xf32>, vector<6x8xf32> -> vector<6x8xf32>
    %702 = tpu.concatenate %647, %665, %683, %701 in 1 : vector<6x8xf32>, vector<6x8xf32>, vector<6x8xf32>, vector<6x8xf32> -> vector<6x32xf32>
    %c1_306 = arith.constant 1 : index
    %c0_307 = arith.constant 0 : index
    %c0_308 = arith.constant 0 : index
    %703 = vector.load %arg20[%c1_306, %c0_307, %c0_308] : memref<2x32x32xf32, #tpu.memory_space<vmem>>, vector<1x32x32xf32>
    %704 = vector.shape_cast %703 : vector<1x32x32xf32> to vector<32x32xf32>
    %c1_309 = arith.constant 1 : index
    %c0_310 = arith.constant 0 : index
    %c0_311 = arith.constant 0 : index
    %705 = vector.load %arg21[%c1_309, %c0_310, %c0_311] : memref<2x1x32xf32, #tpu.memory_space<vmem>>, vector<1x1x32xf32>
    %706 = vector.shape_cast %705 : vector<1x1x32xf32> to vector<1x32xf32>
    %cst_312 = arith.constant dense<0.000000e+00> : vector<6x32xf32>
    %707 = tpu.matmul %702, %704, %cst_312 {dimension_numbers = #tpu.dot_dimension_numbers<[1], [0], [0], [1], [0, 0, 1, 1], [], []>} : vector<6x32xf32>, vector<32x32xf32>, vector<6x32xf32> -> vector<6x32xf32>
    %708 = vector.broadcast %706 : vector<1x32xf32> to vector<6x32xf32>
    %709 = arith.addf %707, %708 : vector<6x32xf32>
    %710 = arith.addf %619, %709 : vector<6x32xf32>
    %c1_313 = arith.constant 1 : index
    %c0_314 = arith.constant 0 : index
    %c0_315 = arith.constant 0 : index
    %711 = vector.load %arg22[%c1_313, %c0_314, %c0_315] : memref<2x1x32xf32, #tpu.memory_space<vmem>>, vector<1x1x32xf32>
    %712 = vector.shape_cast %711 : vector<1x1x32xf32> to vector<1x32xf32>
    %c1_316 = arith.constant 1 : index
    %c0_317 = arith.constant 0 : index
    %c0_318 = arith.constant 0 : index
    %713 = vector.load %arg23[%c1_316, %c0_317, %c0_318] : memref<2x1x32xf32, #tpu.memory_space<vmem>>, vector<1x1x32xf32>
    %714 = vector.shape_cast %713 : vector<1x1x32xf32> to vector<1x32xf32>
    %cst_319 = arith.constant dense<0.000000e+00> : vector<6xf32>
    %715 = vector.multi_reduction <add>, %710, %cst_319 [1] : vector<6x32xf32> to vector<6xf32>
    %716 = vector.shape_cast %715 : vector<6xf32> to vector<6x1xf32>
    %cst_320 = arith.constant 3.200000e+01 : f32
    %717 = vector.broadcast %cst_320 : f32 to vector<6x1xf32>
    %718 = arith.divf %716, %717 : vector<6x1xf32>
    %719 = vector.broadcast %718 : vector<6x1xf32> to vector<6x32xf32>
    %720 = arith.subf %710, %719 : vector<6x32xf32>
    %721 = arith.mulf %720, %720 : vector<6x32xf32>
    %cst_321 = arith.constant dense<0.000000e+00> : vector<6xf32>
    %722 = vector.multi_reduction <add>, %721, %cst_321 [1] : vector<6x32xf32> to vector<6xf32>
    %723 = vector.shape_cast %722 : vector<6xf32> to vector<6x1xf32>
    %cst_322 = arith.constant 3.200000e+01 : f32
    %724 = vector.broadcast %cst_322 : f32 to vector<6x1xf32>
    %725 = arith.divf %723, %724 : vector<6x1xf32>
    %726 = vector.broadcast %718 : vector<6x1xf32> to vector<6x32xf32>
    %727 = arith.subf %710, %726 : vector<6x32xf32>
    %cst_323 = arith.constant 9.99999974E-6 : f32
    %728 = vector.broadcast %cst_323 : f32 to vector<6x1xf32>
    %729 = arith.addf %725, %728 : vector<6x1xf32>
    %730 = math.rsqrt %729 : vector<6x1xf32>
    %731 = vector.broadcast %730 : vector<6x1xf32> to vector<6x32xf32>
    %732 = arith.mulf %727, %731 : vector<6x32xf32>
    %733 = vector.broadcast %712 : vector<1x32xf32> to vector<6x32xf32>
    %734 = arith.mulf %732, %733 : vector<6x32xf32>
    %735 = vector.broadcast %714 : vector<1x32xf32> to vector<6x32xf32>
    %736 = arith.addf %734, %735 : vector<6x32xf32>
    %c1_324 = arith.constant 1 : index
    %c0_325 = arith.constant 0 : index
    %c0_326 = arith.constant 0 : index
    %737 = vector.load %arg24[%c1_324, %c0_325, %c0_326] : memref<2x32x32xf32, #tpu.memory_space<vmem>>, vector<1x32x32xf32>
    %738 = vector.shape_cast %737 : vector<1x32x32xf32> to vector<32x32xf32>
    %c1_327 = arith.constant 1 : index
    %c0_328 = arith.constant 0 : index
    %c0_329 = arith.constant 0 : index
    %739 = vector.load %arg25[%c1_327, %c0_328, %c0_329] : memref<2x1x32xf32, #tpu.memory_space<vmem>>, vector<1x1x32xf32>
    %740 = vector.shape_cast %739 : vector<1x1x32xf32> to vector<1x32xf32>
    %cst_330 = arith.constant dense<0.000000e+00> : vector<6x32xf32>
    %741 = tpu.matmul %736, %738, %cst_330 {dimension_numbers = #tpu.dot_dimension_numbers<[1], [0], [0], [1], [0, 0, 1, 1], [], []>} : vector<6x32xf32>, vector<32x32xf32>, vector<6x32xf32> -> vector<6x32xf32>
    %742 = vector.broadcast %740 : vector<1x32xf32> to vector<6x32xf32>
    %743 = arith.addf %741, %742 : vector<6x32xf32>
    %c1_331 = arith.constant 1 : index
    %c0_332 = arith.constant 0 : index
    %c0_333 = arith.constant 0 : index
    %744 = vector.load %arg26[%c1_331, %c0_332, %c0_333] : memref<2x32x64xf32, #tpu.memory_space<vmem>>, vector<1x32x64xf32>
    %745 = vector.shape_cast %744 : vector<1x32x64xf32> to vector<32x64xf32>
    %c1_334 = arith.constant 1 : index
    %c0_335 = arith.constant 0 : index
    %c0_336 = arith.constant 0 : index
    %746 = vector.load %arg27[%c1_334, %c0_335, %c0_336] : memref<2x1x64xf32, #tpu.memory_space<vmem>>, vector<1x1x64xf32>
    %747 = vector.shape_cast %746 : vector<1x1x64xf32> to vector<1x64xf32>
    %cst_337 = arith.constant dense<0.000000e+00> : vector<10x64xf32>
    %748 = tpu.matmul %337, %745, %cst_337 {dimension_numbers = #tpu.dot_dimension_numbers<[1], [0], [0], [1], [0, 0, 1, 1], [], []>} : vector<10x32xf32>, vector<32x64xf32>, vector<10x64xf32> -> vector<10x64xf32>
    %749 = vector.broadcast %747 : vector<1x64xf32> to vector<10x64xf32>
    %750 = arith.addf %748, %749 : vector<10x64xf32>
    %751 = vector.extract_strided_slice %750 {offsets = [0, 0], sizes = [10, 32], strides = [1, 1]} : vector<10x64xf32> to vector<10x32xf32>
    %752 = vector.extract_strided_slice %750 {offsets = [0, 32], sizes = [10, 32], strides = [1, 1]} : vector<10x64xf32> to vector<10x32xf32>
    %753 = vector.extract_strided_slice %743 {offsets = [0, 0], sizes = [6, 8], strides = [1, 1]} : vector<6x32xf32> to vector<6x8xf32>
    %754 = vector.extract_strided_slice %751 {offsets = [0, 0], sizes = [10, 8], strides = [1, 1]} : vector<10x32xf32> to vector<10x8xf32>
    %755 = vector.extract_strided_slice %752 {offsets = [0, 0], sizes = [10, 8], strides = [1, 1]} : vector<10x32xf32> to vector<10x8xf32>
    %cst_338 = arith.constant dense<0.000000e+00> : vector<6x10xf32>
    %756 = tpu.matmul %753, %754, %cst_338 {dimension_numbers = #tpu.dot_dimension_numbers<[1], [1], [0], [0], [0, 0, 1, 0], [], []>} : vector<6x8xf32>, vector<10x8xf32>, vector<6x10xf32> -> vector<6x10xf32>
    %cst_339 = arith.constant 0.353553385 : f32
    %757 = vector.broadcast %cst_339 : f32 to vector<6x10xf32>
    %758 = arith.mulf %756, %757 : vector<6x10xf32>
    %cst_340 = arith.constant dense<0xFF800000> : vector<6xf32>
    %759 = vector.multi_reduction <maximumf>, %758, %cst_340 [1] : vector<6x10xf32> to vector<6xf32>
    %760 = vector.shape_cast %759 : vector<6xf32> to vector<6x1xf32>
    %761 = vector.broadcast %760 : vector<6x1xf32> to vector<6x10xf32>
    %762 = arith.subf %758, %761 : vector<6x10xf32>
    %763 = math.exp %762 : vector<6x10xf32>
    %cst_341 = arith.constant dense<0.000000e+00> : vector<6xf32>
    %764 = vector.multi_reduction <add>, %763, %cst_341 [1] : vector<6x10xf32> to vector<6xf32>
    %765 = vector.shape_cast %764 : vector<6xf32> to vector<6x1xf32>
    %766 = tpu.reciprocal %765 {approx = true} : vector<6x1xf32> -> vector<6x1xf32>
    %767 = vector.broadcast %766 : vector<6x1xf32> to vector<6x10xf32>
    %768 = arith.mulf %763, %767 : vector<6x10xf32>
    %cst_342 = arith.constant dense<0.000000e+00> : vector<6x8xf32>
    %769 = tpu.matmul %768, %755, %cst_342 {dimension_numbers = #tpu.dot_dimension_numbers<[1], [0], [0], [1], [0, 0, 1, 1], [], []>} : vector<6x10xf32>, vector<10x8xf32>, vector<6x8xf32> -> vector<6x8xf32>
    %770 = vector.extract_strided_slice %743 {offsets = [0, 8], sizes = [6, 8], strides = [1, 1]} : vector<6x32xf32> to vector<6x8xf32>
    %771 = vector.extract_strided_slice %751 {offsets = [0, 8], sizes = [10, 8], strides = [1, 1]} : vector<10x32xf32> to vector<10x8xf32>
    %772 = vector.extract_strided_slice %752 {offsets = [0, 8], sizes = [10, 8], strides = [1, 1]} : vector<10x32xf32> to vector<10x8xf32>
    %cst_343 = arith.constant dense<0.000000e+00> : vector<6x10xf32>
    %773 = tpu.matmul %770, %771, %cst_343 {dimension_numbers = #tpu.dot_dimension_numbers<[1], [1], [0], [0], [0, 0, 1, 0], [], []>} : vector<6x8xf32>, vector<10x8xf32>, vector<6x10xf32> -> vector<6x10xf32>
    %cst_344 = arith.constant 0.353553385 : f32
    %774 = vector.broadcast %cst_344 : f32 to vector<6x10xf32>
    %775 = arith.mulf %773, %774 : vector<6x10xf32>
    %cst_345 = arith.constant dense<0xFF800000> : vector<6xf32>
    %776 = vector.multi_reduction <maximumf>, %775, %cst_345 [1] : vector<6x10xf32> to vector<6xf32>
    %777 = vector.shape_cast %776 : vector<6xf32> to vector<6x1xf32>
    %778 = vector.broadcast %777 : vector<6x1xf32> to vector<6x10xf32>
    %779 = arith.subf %775, %778 : vector<6x10xf32>
    %780 = math.exp %779 : vector<6x10xf32>
    %cst_346 = arith.constant dense<0.000000e+00> : vector<6xf32>
    %781 = vector.multi_reduction <add>, %780, %cst_346 [1] : vector<6x10xf32> to vector<6xf32>
    %782 = vector.shape_cast %781 : vector<6xf32> to vector<6x1xf32>
    %783 = tpu.reciprocal %782 {approx = true} : vector<6x1xf32> -> vector<6x1xf32>
    %784 = vector.broadcast %783 : vector<6x1xf32> to vector<6x10xf32>
    %785 = arith.mulf %780, %784 : vector<6x10xf32>
    %cst_347 = arith.constant dense<0.000000e+00> : vector<6x8xf32>
    %786 = tpu.matmul %785, %772, %cst_347 {dimension_numbers = #tpu.dot_dimension_numbers<[1], [0], [0], [1], [0, 0, 1, 1], [], []>} : vector<6x10xf32>, vector<10x8xf32>, vector<6x8xf32> -> vector<6x8xf32>
    %787 = vector.extract_strided_slice %743 {offsets = [0, 16], sizes = [6, 8], strides = [1, 1]} : vector<6x32xf32> to vector<6x8xf32>
    %788 = vector.extract_strided_slice %751 {offsets = [0, 16], sizes = [10, 8], strides = [1, 1]} : vector<10x32xf32> to vector<10x8xf32>
    %789 = vector.extract_strided_slice %752 {offsets = [0, 16], sizes = [10, 8], strides = [1, 1]} : vector<10x32xf32> to vector<10x8xf32>
    %cst_348 = arith.constant dense<0.000000e+00> : vector<6x10xf32>
    %790 = tpu.matmul %787, %788, %cst_348 {dimension_numbers = #tpu.dot_dimension_numbers<[1], [1], [0], [0], [0, 0, 1, 0], [], []>} : vector<6x8xf32>, vector<10x8xf32>, vector<6x10xf32> -> vector<6x10xf32>
    %cst_349 = arith.constant 0.353553385 : f32
    %791 = vector.broadcast %cst_349 : f32 to vector<6x10xf32>
    %792 = arith.mulf %790, %791 : vector<6x10xf32>
    %cst_350 = arith.constant dense<0xFF800000> : vector<6xf32>
    %793 = vector.multi_reduction <maximumf>, %792, %cst_350 [1] : vector<6x10xf32> to vector<6xf32>
    %794 = vector.shape_cast %793 : vector<6xf32> to vector<6x1xf32>
    %795 = vector.broadcast %794 : vector<6x1xf32> to vector<6x10xf32>
    %796 = arith.subf %792, %795 : vector<6x10xf32>
    %797 = math.exp %796 : vector<6x10xf32>
    %cst_351 = arith.constant dense<0.000000e+00> : vector<6xf32>
    %798 = vector.multi_reduction <add>, %797, %cst_351 [1] : vector<6x10xf32> to vector<6xf32>
    %799 = vector.shape_cast %798 : vector<6xf32> to vector<6x1xf32>
    %800 = tpu.reciprocal %799 {approx = true} : vector<6x1xf32> -> vector<6x1xf32>
    %801 = vector.broadcast %800 : vector<6x1xf32> to vector<6x10xf32>
    %802 = arith.mulf %797, %801 : vector<6x10xf32>
    %cst_352 = arith.constant dense<0.000000e+00> : vector<6x8xf32>
    %803 = tpu.matmul %802, %789, %cst_352 {dimension_numbers = #tpu.dot_dimension_numbers<[1], [0], [0], [1], [0, 0, 1, 1], [], []>} : vector<6x10xf32>, vector<10x8xf32>, vector<6x8xf32> -> vector<6x8xf32>
    %804 = vector.extract_strided_slice %743 {offsets = [0, 24], sizes = [6, 8], strides = [1, 1]} : vector<6x32xf32> to vector<6x8xf32>
    %805 = vector.extract_strided_slice %751 {offsets = [0, 24], sizes = [10, 8], strides = [1, 1]} : vector<10x32xf32> to vector<10x8xf32>
    %806 = vector.extract_strided_slice %752 {offsets = [0, 24], sizes = [10, 8], strides = [1, 1]} : vector<10x32xf32> to vector<10x8xf32>
    %cst_353 = arith.constant dense<0.000000e+00> : vector<6x10xf32>
    %807 = tpu.matmul %804, %805, %cst_353 {dimension_numbers = #tpu.dot_dimension_numbers<[1], [1], [0], [0], [0, 0, 1, 0], [], []>} : vector<6x8xf32>, vector<10x8xf32>, vector<6x10xf32> -> vector<6x10xf32>
    %cst_354 = arith.constant 0.353553385 : f32
    %808 = vector.broadcast %cst_354 : f32 to vector<6x10xf32>
    %809 = arith.mulf %807, %808 : vector<6x10xf32>
    %cst_355 = arith.constant dense<0xFF800000> : vector<6xf32>
    %810 = vector.multi_reduction <maximumf>, %809, %cst_355 [1] : vector<6x10xf32> to vector<6xf32>
    %811 = vector.shape_cast %810 : vector<6xf32> to vector<6x1xf32>
    %812 = vector.broadcast %811 : vector<6x1xf32> to vector<6x10xf32>
    %813 = arith.subf %809, %812 : vector<6x10xf32>
    %814 = math.exp %813 : vector<6x10xf32>
    %cst_356 = arith.constant dense<0.000000e+00> : vector<6xf32>
    %815 = vector.multi_reduction <add>, %814, %cst_356 [1] : vector<6x10xf32> to vector<6xf32>
    %816 = vector.shape_cast %815 : vector<6xf32> to vector<6x1xf32>
    %817 = tpu.reciprocal %816 {approx = true} : vector<6x1xf32> -> vector<6x1xf32>
    %818 = vector.broadcast %817 : vector<6x1xf32> to vector<6x10xf32>
    %819 = arith.mulf %814, %818 : vector<6x10xf32>
    %cst_357 = arith.constant dense<0.000000e+00> : vector<6x8xf32>
    %820 = tpu.matmul %819, %806, %cst_357 {dimension_numbers = #tpu.dot_dimension_numbers<[1], [0], [0], [1], [0, 0, 1, 1], [], []>} : vector<6x10xf32>, vector<10x8xf32>, vector<6x8xf32> -> vector<6x8xf32>
    %821 = tpu.concatenate %769, %786, %803, %820 in 1 : vector<6x8xf32>, vector<6x8xf32>, vector<6x8xf32>, vector<6x8xf32> -> vector<6x32xf32>
    %c1_358 = arith.constant 1 : index
    %c0_359 = arith.constant 0 : index
    %c0_360 = arith.constant 0 : index
    %822 = vector.load %arg28[%c1_358, %c0_359, %c0_360] : memref<2x32x32xf32, #tpu.memory_space<vmem>>, vector<1x32x32xf32>
    %823 = vector.shape_cast %822 : vector<1x32x32xf32> to vector<32x32xf32>
    %c1_361 = arith.constant 1 : index
    %c0_362 = arith.constant 0 : index
    %c0_363 = arith.constant 0 : index
    %824 = vector.load %arg29[%c1_361, %c0_362, %c0_363] : memref<2x1x32xf32, #tpu.memory_space<vmem>>, vector<1x1x32xf32>
    %825 = vector.shape_cast %824 : vector<1x1x32xf32> to vector<1x32xf32>
    %cst_364 = arith.constant dense<0.000000e+00> : vector<6x32xf32>
    %826 = tpu.matmul %821, %823, %cst_364 {dimension_numbers = #tpu.dot_dimension_numbers<[1], [0], [0], [1], [0, 0, 1, 1], [], []>} : vector<6x32xf32>, vector<32x32xf32>, vector<6x32xf32> -> vector<6x32xf32>
    %827 = vector.broadcast %825 : vector<1x32xf32> to vector<6x32xf32>
    %828 = arith.addf %826, %827 : vector<6x32xf32>
    %829 = arith.addf %736, %828 : vector<6x32xf32>
    %c1_365 = arith.constant 1 : index
    %c0_366 = arith.constant 0 : index
    %c0_367 = arith.constant 0 : index
    %830 = vector.load %arg30[%c1_365, %c0_366, %c0_367] : memref<2x1x32xf32, #tpu.memory_space<vmem>>, vector<1x1x32xf32>
    %831 = vector.shape_cast %830 : vector<1x1x32xf32> to vector<1x32xf32>
    %c1_368 = arith.constant 1 : index
    %c0_369 = arith.constant 0 : index
    %c0_370 = arith.constant 0 : index
    %832 = vector.load %arg31[%c1_368, %c0_369, %c0_370] : memref<2x1x32xf32, #tpu.memory_space<vmem>>, vector<1x1x32xf32>
    %833 = vector.shape_cast %832 : vector<1x1x32xf32> to vector<1x32xf32>
    %cst_371 = arith.constant dense<0.000000e+00> : vector<6xf32>
    %834 = vector.multi_reduction <add>, %829, %cst_371 [1] : vector<6x32xf32> to vector<6xf32>
    %835 = vector.shape_cast %834 : vector<6xf32> to vector<6x1xf32>
    %cst_372 = arith.constant 3.200000e+01 : f32
    %836 = vector.broadcast %cst_372 : f32 to vector<6x1xf32>
    %837 = arith.divf %835, %836 : vector<6x1xf32>
    %838 = vector.broadcast %837 : vector<6x1xf32> to vector<6x32xf32>
    %839 = arith.subf %829, %838 : vector<6x32xf32>
    %840 = arith.mulf %839, %839 : vector<6x32xf32>
    %cst_373 = arith.constant dense<0.000000e+00> : vector<6xf32>
    %841 = vector.multi_reduction <add>, %840, %cst_373 [1] : vector<6x32xf32> to vector<6xf32>
    %842 = vector.shape_cast %841 : vector<6xf32> to vector<6x1xf32>
    %cst_374 = arith.constant 3.200000e+01 : f32
    %843 = vector.broadcast %cst_374 : f32 to vector<6x1xf32>
    %844 = arith.divf %842, %843 : vector<6x1xf32>
    %845 = vector.broadcast %837 : vector<6x1xf32> to vector<6x32xf32>
    %846 = arith.subf %829, %845 : vector<6x32xf32>
    %cst_375 = arith.constant 9.99999974E-6 : f32
    %847 = vector.broadcast %cst_375 : f32 to vector<6x1xf32>
    %848 = arith.addf %844, %847 : vector<6x1xf32>
    %849 = math.rsqrt %848 : vector<6x1xf32>
    %850 = vector.broadcast %849 : vector<6x1xf32> to vector<6x32xf32>
    %851 = arith.mulf %846, %850 : vector<6x32xf32>
    %852 = vector.broadcast %831 : vector<1x32xf32> to vector<6x32xf32>
    %853 = arith.mulf %851, %852 : vector<6x32xf32>
    %854 = vector.broadcast %833 : vector<1x32xf32> to vector<6x32xf32>
    %855 = arith.addf %853, %854 : vector<6x32xf32>
    %c1_376 = arith.constant 1 : index
    %c0_377 = arith.constant 0 : index
    %c0_378 = arith.constant 0 : index
    %856 = vector.load %arg32[%c1_376, %c0_377, %c0_378] : memref<2x32x64xf32, #tpu.memory_space<vmem>>, vector<1x32x64xf32>
    %857 = vector.shape_cast %856 : vector<1x32x64xf32> to vector<32x64xf32>
    %c1_379 = arith.constant 1 : index
    %c0_380 = arith.constant 0 : index
    %c0_381 = arith.constant 0 : index
    %858 = vector.load %arg33[%c1_379, %c0_380, %c0_381] : memref<2x1x64xf32, #tpu.memory_space<vmem>>, vector<1x1x64xf32>
    %859 = vector.shape_cast %858 : vector<1x1x64xf32> to vector<1x64xf32>
    %cst_382 = arith.constant dense<0.000000e+00> : vector<6x64xf32>
    %860 = tpu.matmul %855, %857, %cst_382 {dimension_numbers = #tpu.dot_dimension_numbers<[1], [0], [0], [1], [0, 0, 1, 1], [], []>} : vector<6x32xf32>, vector<32x64xf32>, vector<6x64xf32> -> vector<6x64xf32>
    %861 = vector.broadcast %859 : vector<1x64xf32> to vector<6x64xf32>
    %862 = arith.addf %860, %861 : vector<6x64xf32>
    %cst_383 = arith.constant 0.000000e+00 : f32
    %863 = vector.broadcast %cst_383 : f32 to vector<6x64xf32>
    %864 = arith.maximumf %862, %863 : vector<6x64xf32>
    %c1_384 = arith.constant 1 : index
    %c0_385 = arith.constant 0 : index
    %c0_386 = arith.constant 0 : index
    %865 = vector.load %arg34[%c1_384, %c0_385, %c0_386] : memref<2x64x32xf32, #tpu.memory_space<vmem>>, vector<1x64x32xf32>
    %866 = vector.shape_cast %865 : vector<1x64x32xf32> to vector<64x32xf32>
    %c1_387 = arith.constant 1 : index
    %c0_388 = arith.constant 0 : index
    %c0_389 = arith.constant 0 : index
    %867 = vector.load %arg35[%c1_387, %c0_388, %c0_389] : memref<2x1x32xf32, #tpu.memory_space<vmem>>, vector<1x1x32xf32>
    %868 = vector.shape_cast %867 : vector<1x1x32xf32> to vector<1x32xf32>
    %cst_390 = arith.constant dense<0.000000e+00> : vector<6x32xf32>
    %869 = tpu.matmul %864, %866, %cst_390 {dimension_numbers = #tpu.dot_dimension_numbers<[1], [0], [0], [1], [0, 0, 1, 1], [], []>} : vector<6x64xf32>, vector<64x32xf32>, vector<6x32xf32> -> vector<6x32xf32>
    %870 = vector.broadcast %868 : vector<1x32xf32> to vector<6x32xf32>
    %871 = arith.addf %869, %870 : vector<6x32xf32>
    %872 = arith.addf %855, %871 : vector<6x32xf32>
    %c1_391 = arith.constant 1 : index
    %c0_392 = arith.constant 0 : index
    %c0_393 = arith.constant 0 : index
    %873 = vector.load %arg36[%c1_391, %c0_392, %c0_393] : memref<2x1x32xf32, #tpu.memory_space<vmem>>, vector<1x1x32xf32>
    %874 = vector.shape_cast %873 : vector<1x1x32xf32> to vector<1x32xf32>
    %c1_394 = arith.constant 1 : index
    %c0_395 = arith.constant 0 : index
    %c0_396 = arith.constant 0 : index
    %875 = vector.load %arg37[%c1_394, %c0_395, %c0_396] : memref<2x1x32xf32, #tpu.memory_space<vmem>>, vector<1x1x32xf32>
    %876 = vector.shape_cast %875 : vector<1x1x32xf32> to vector<1x32xf32>
    %cst_397 = arith.constant dense<0.000000e+00> : vector<6xf32>
    %877 = vector.multi_reduction <add>, %872, %cst_397 [1] : vector<6x32xf32> to vector<6xf32>
    %878 = vector.shape_cast %877 : vector<6xf32> to vector<6x1xf32>
    %cst_398 = arith.constant 3.200000e+01 : f32
    %879 = vector.broadcast %cst_398 : f32 to vector<6x1xf32>
    %880 = arith.divf %878, %879 : vector<6x1xf32>
    %881 = vector.broadcast %880 : vector<6x1xf32> to vector<6x32xf32>
    %882 = arith.subf %872, %881 : vector<6x32xf32>
    %883 = arith.mulf %882, %882 : vector<6x32xf32>
    %cst_399 = arith.constant dense<0.000000e+00> : vector<6xf32>
    %884 = vector.multi_reduction <add>, %883, %cst_399 [1] : vector<6x32xf32> to vector<6xf32>
    %885 = vector.shape_cast %884 : vector<6xf32> to vector<6x1xf32>
    %cst_400 = arith.constant 3.200000e+01 : f32
    %886 = vector.broadcast %cst_400 : f32 to vector<6x1xf32>
    %887 = arith.divf %885, %886 : vector<6x1xf32>
    %888 = vector.broadcast %880 : vector<6x1xf32> to vector<6x32xf32>
    %889 = arith.subf %872, %888 : vector<6x32xf32>
    %cst_401 = arith.constant 9.99999974E-6 : f32
    %890 = vector.broadcast %cst_401 : f32 to vector<6x1xf32>
    %891 = arith.addf %887, %890 : vector<6x1xf32>
    %892 = math.rsqrt %891 : vector<6x1xf32>
    %893 = vector.broadcast %892 : vector<6x1xf32> to vector<6x32xf32>
    %894 = arith.mulf %889, %893 : vector<6x32xf32>
    %895 = vector.broadcast %874 : vector<1x32xf32> to vector<6x32xf32>
    %896 = arith.mulf %894, %895 : vector<6x32xf32>
    %897 = vector.broadcast %876 : vector<1x32xf32> to vector<6x32xf32>
    %898 = arith.addf %896, %897 : vector<6x32xf32>
    %c0_402 = arith.constant 0 : index
    %c0_403 = arith.constant 0 : index
    %899 = vector.load %arg38[%c0_402, %c0_403] : memref<1x32xf32, #tpu.memory_space<vmem>>, vector<1x32xf32>
    %c0_404 = arith.constant 0 : index
    %c0_405 = arith.constant 0 : index
    %900 = vector.load %arg39[%c0_404, %c0_405] : memref<1x32xf32, #tpu.memory_space<vmem>>, vector<1x32xf32>
    %cst_406 = arith.constant dense<0.000000e+00> : vector<6xf32>
    %901 = vector.multi_reduction <add>, %898, %cst_406 [1] : vector<6x32xf32> to vector<6xf32>
    %902 = vector.shape_cast %901 : vector<6xf32> to vector<6x1xf32>
    %cst_407 = arith.constant 3.200000e+01 : f32
    %903 = vector.broadcast %cst_407 : f32 to vector<6x1xf32>
    %904 = arith.divf %902, %903 : vector<6x1xf32>
    %905 = vector.broadcast %904 : vector<6x1xf32> to vector<6x32xf32>
    %906 = arith.subf %898, %905 : vector<6x32xf32>
    %907 = arith.mulf %906, %906 : vector<6x32xf32>
    %cst_408 = arith.constant dense<0.000000e+00> : vector<6xf32>
    %908 = vector.multi_reduction <add>, %907, %cst_408 [1] : vector<6x32xf32> to vector<6xf32>
    %909 = vector.shape_cast %908 : vector<6xf32> to vector<6x1xf32>
    %cst_409 = arith.constant 3.200000e+01 : f32
    %910 = vector.broadcast %cst_409 : f32 to vector<6x1xf32>
    %911 = arith.divf %909, %910 : vector<6x1xf32>
    %912 = vector.broadcast %904 : vector<6x1xf32> to vector<6x32xf32>
    %913 = arith.subf %898, %912 : vector<6x32xf32>
    %cst_410 = arith.constant 9.99999974E-6 : f32
    %914 = vector.broadcast %cst_410 : f32 to vector<6x1xf32>
    %915 = arith.addf %911, %914 : vector<6x1xf32>
    %916 = math.rsqrt %915 : vector<6x1xf32>
    %917 = vector.broadcast %916 : vector<6x1xf32> to vector<6x32xf32>
    %918 = arith.mulf %913, %917 : vector<6x32xf32>
    %919 = vector.broadcast %899 : vector<1x32xf32> to vector<6x32xf32>
    %920 = arith.mulf %918, %919 : vector<6x32xf32>
    %921 = vector.broadcast %900 : vector<1x32xf32> to vector<6x32xf32>
    %922 = arith.addf %920, %921 : vector<6x32xf32>
    %c0_411 = arith.constant 0 : index
    %c0_412 = arith.constant 0 : index
    %923 = vector.load %arg40[%c0_411, %c0_412] : memref<32x12xf32, #tpu.memory_space<vmem>>, vector<32x12xf32>
    %c0_413 = arith.constant 0 : index
    %c0_414 = arith.constant 0 : index
    %924 = vector.load %arg41[%c0_413, %c0_414] : memref<1x12xf32, #tpu.memory_space<vmem>>, vector<1x12xf32>
    %cst_415 = arith.constant dense<0.000000e+00> : vector<6x12xf32>
    %925 = tpu.matmul %922, %923, %cst_415 {dimension_numbers = #tpu.dot_dimension_numbers<[1], [0], [0], [1], [0, 0, 1, 1], [], []>} : vector<6x32xf32>, vector<32x12xf32>, vector<6x12xf32> -> vector<6x12xf32>
    %926 = vector.broadcast %924 : vector<1x12xf32> to vector<6x12xf32>
    %927 = arith.addf %925, %926 : vector<6x12xf32>
    %c0_416 = arith.constant 0 : index
    %c0_417 = arith.constant 0 : index
    %c0_418 = arith.constant 0 : index
    %928 = vector.load %arg42[%c0_416, %c0_417, %c0_418] : memref<1x6x12xf32, #tpu.memory_space<vmem>>, vector<1x6x12xf32>
    %929 = vector.shape_cast %928 : vector<1x6x12xf32> to vector<6x12xf32>
    %930 = vector.shape_cast %927 : vector<6x12xf32> to vector<1x6x12xf32>
    tpu.vector_store %arg42[%c0_416, %c0_417, %c0_418], %930 {strides = array<i32>} : memref<1x6x12xf32, #tpu.memory_space<vmem>>, vector<1x6x12xf32>,
    return
  }
  func.func @transform_0(%arg0: i32) -> (i32, i32, i32) {
    %c0_i32 = arith.constant 0 : i32
    %c0_i32_0 = arith.constant 0 : i32
    %c0_i32_1 = arith.constant 0 : i32
    return %arg0, %c0_i32, %c0_i32_0 : i32, i32, i32
  }
  func.func @transform_1(%arg0: i32) -> (i32, i32, i32) {
    %c0_i32 = arith.constant 0 : i32
    %c0_i32_0 = arith.constant 0 : i32
    %c0_i32_1 = arith.constant 0 : i32
    return %arg0, %c0_i32, %c0_i32_0 : i32, i32, i32
  }
  func.func @transform_2(%arg0: i32) -> (i32, i32) {
    %c0_i32 = arith.constant 0 : i32
    %c0_i32_0 = arith.constant 0 : i32
    %c0_i32_1 = arith.constant 0 : i32
    return %c0_i32, %c0_i32_0 : i32, i32
  }
  func.func @transform_3(%arg0: i32) -> (i32, i32, i32) {
    %c0_i32 = arith.constant 0 : i32
    %c0_i32_0 = arith.constant 0 : i32
    %c0_i32_1 = arith.constant 0 : i32
    %c0_i32_2 = arith.constant 0 : i32
    return %c0_i32, %c0_i32_0, %c0_i32_1 : i32, i32, i32
  }
  func.func @transform_4(%arg0: i32) -> (i32, i32, i32) {
    %c0_i32 = arith.constant 0 : i32
    %c0_i32_0 = arith.constant 0 : i32
    %c0_i32_1 = arith.constant 0 : i32
    %c0_i32_2 = arith.constant 0 : i32
    return %c0_i32, %c0_i32_0, %c0_i32_1 : i32, i32, i32
  }
  func.func @transform_5(%arg0: i32) -> (i32, i32, i32) {
    %c0_i32 = arith.constant 0 : i32
    %c0_i32_0 = arith.constant 0 : i32
    %c0_i32_1 = arith.constant 0 : i32
    %c0_i32_2 = arith.constant 0 : i32
    return %c0_i32, %c0_i32_0, %c0_i32_1 : i32, i32, i32
  }
  func.func @transform_6(%arg0: i32) -> (i32, i32, i32) {
    %c0_i32 = arith.constant 0 : i32
    %c0_i32_0 = arith.constant 0 : i32
    %c0_i32_1 = arith.constant 0 : i32
    %c0_i32_2 = arith.constant 0 : i32
    return %c0_i32, %c0_i32_0, %c0_i32_1 : i32, i32, i32
  }
  func.func @transform_7(%arg0: i32) -> (i32, i32, i32) {
    %c0_i32 = arith.constant 0 : i32
    %c0_i32_0 = arith.constant 0 : i32
    %c0_i32_1 = arith.constant 0 : i32
    %c0_i32_2 = arith.constant 0 : i32
    return %c0_i32, %c0_i32_0, %c0_i32_1 : i32, i32, i32
  }
  func.func @transform_8(%arg0: i32) -> (i32, i32, i32) {
    %c0_i32 = arith.constant 0 : i32
    %c0_i32_0 = arith.constant 0 : i32
    %c0_i32_1 = arith.constant 0 : i32
    %c0_i32_2 = arith.constant 0 : i32
    return %c0_i32, %c0_i32_0, %c0_i32_1 : i32, i32, i32
  }
  func.func @transform_9(%arg0: i32) -> (i32, i32, i32) {
    %c0_i32 = arith.constant 0 : i32
    %c0_i32_0 = arith.constant 0 : i32
    %c0_i32_1 = arith.constant 0 : i32
    %c0_i32_2 = arith.constant 0 : i32
    return %c0_i32, %c0_i32_0, %c0_i32_1 : i32, i32, i32
  }
  func.func @transform_10(%arg0: i32) -> (i32, i32, i32) {
    %c0_i32 = arith.constant 0 : i32
    %c0_i32_0 = arith.constant 0 : i32
    %c0_i32_1 = arith.constant 0 : i32
    %c0_i32_2 = arith.constant 0 : i32
    return %c0_i32, %c0_i32_0, %c0_i32_1 : i32, i32, i32
  }
  func.func @transform_11(%arg0: i32) -> (i32, i32, i32) {
    %c0_i32 = arith.constant 0 : i32
    %c0_i32_0 = arith.constant 0 : i32
    %c0_i32_1 = arith.constant 0 : i32
    %c0_i32_2 = arith.constant 0 : i32
    return %c0_i32, %c0_i32_0, %c0_i32_1 : i32, i32, i32
  }
  func.func @transform_12(%arg0: i32) -> (i32, i32, i32) {
    %c0_i32 = arith.constant 0 : i32
    %c0_i32_0 = arith.constant 0 : i32
    %c0_i32_1 = arith.constant 0 : i32
    %c0_i32_2 = arith.constant 0 : i32
    return %c0_i32, %c0_i32_0, %c0_i32_1 : i32, i32, i32
  }
  func.func @transform_13(%arg0: i32) -> (i32, i32, i32) {
    %c0_i32 = arith.constant 0 : i32
    %c0_i32_0 = arith.constant 0 : i32
    %c0_i32_1 = arith.constant 0 : i32
    %c0_i32_2 = arith.constant 0 : i32
    return %c0_i32, %c0_i32_0, %c0_i32_1 : i32, i32, i32
  }
  func.func @transform_14(%arg0: i32) -> (i32, i32, i32) {
    %c0_i32 = arith.constant 0 : i32
    %c0_i32_0 = arith.constant 0 : i32
    %c0_i32_1 = arith.constant 0 : i32
    %c0_i32_2 = arith.constant 0 : i32
    return %c0_i32, %c0_i32_0, %c0_i32_1 : i32, i32, i32
  }
  func.func @transform_15(%arg0: i32) -> (i32, i32) {
    %c0_i32 = arith.constant 0 : i32
    %c0_i32_0 = arith.constant 0 : i32
    %c0_i32_1 = arith.constant 0 : i32
    return %c0_i32, %c0_i32_0 : i32, i32
  }
  func.func @transform_16(%arg0: i32) -> (i32, i32) {
    %c0_i32 = arith.constant 0 : i32
    %c0_i32_0 = arith.constant 0 : i32
    %c0_i32_1 = arith.constant 0 : i32
    return %c0_i32, %c0_i32_0 : i32, i32
  }
  func.func @transform_17(%arg0: i32) -> (i32, i32, i32) {
    %c0_i32 = arith.constant 0 : i32
    %c0_i32_0 = arith.constant 0 : i32
    %c0_i32_1 = arith.constant 0 : i32
    %c0_i32_2 = arith.constant 0 : i32
    return %c0_i32, %c0_i32_0, %c0_i32_1 : i32, i32, i32
  }
  func.func @transform_18(%arg0: i32) -> (i32, i32, i32) {
    %c0_i32 = arith.constant 0 : i32
    %c0_i32_0 = arith.constant 0 : i32
    %c0_i32_1 = arith.constant 0 : i32
    %c0_i32_2 = arith.constant 0 : i32
    return %c0_i32, %c0_i32_0, %c0_i32_1 : i32, i32, i32
  }
  func.func @transform_19(%arg0: i32) -> (i32, i32, i32) {
    %c0_i32 = arith.constant 0 : i32
    %c0_i32_0 = arith.constant 0 : i32
    %c0_i32_1 = arith.constant 0 : i32
    %c0_i32_2 = arith.constant 0 : i32
    return %c0_i32, %c0_i32_0, %c0_i32_1 : i32, i32, i32
  }
  func.func @transform_20(%arg0: i32) -> (i32, i32, i32) {
    %c0_i32 = arith.constant 0 : i32
    %c0_i32_0 = arith.constant 0 : i32
    %c0_i32_1 = arith.constant 0 : i32
    %c0_i32_2 = arith.constant 0 : i32
    return %c0_i32, %c0_i32_0, %c0_i32_1 : i32, i32, i32
  }
  func.func @transform_21(%arg0: i32) -> (i32, i32, i32) {
    %c0_i32 = arith.constant 0 : i32
    %c0_i32_0 = arith.constant 0 : i32
    %c0_i32_1 = arith.constant 0 : i32
    %c0_i32_2 = arith.constant 0 : i32
    return %c0_i32, %c0_i32_0, %c0_i32_1 : i32, i32, i32
  }
  func.func @transform_22(%arg0: i32) -> (i32, i32, i32) {
    %c0_i32 = arith.constant 0 : i32
    %c0_i32_0 = arith.constant 0 : i32
    %c0_i32_1 = arith.constant 0 : i32
    %c0_i32_2 = arith.constant 0 : i32
    return %c0_i32, %c0_i32_0, %c0_i32_1 : i32, i32, i32
  }
  func.func @transform_23(%arg0: i32) -> (i32, i32, i32) {
    %c0_i32 = arith.constant 0 : i32
    %c0_i32_0 = arith.constant 0 : i32
    %c0_i32_1 = arith.constant 0 : i32
    %c0_i32_2 = arith.constant 0 : i32
    return %c0_i32, %c0_i32_0, %c0_i32_1 : i32, i32, i32
  }
  func.func @transform_24(%arg0: i32) -> (i32, i32, i32) {
    %c0_i32 = arith.constant 0 : i32
    %c0_i32_0 = arith.constant 0 : i32
    %c0_i32_1 = arith.constant 0 : i32
    %c0_i32_2 = arith.constant 0 : i32
    return %c0_i32, %c0_i32_0, %c0_i32_1 : i32, i32, i32
  }
  func.func @transform_25(%arg0: i32) -> (i32, i32, i32) {
    %c0_i32 = arith.constant 0 : i32
    %c0_i32_0 = arith.constant 0 : i32
    %c0_i32_1 = arith.constant 0 : i32
    %c0_i32_2 = arith.constant 0 : i32
    return %c0_i32, %c0_i32_0, %c0_i32_1 : i32, i32, i32
  }
  func.func @transform_26(%arg0: i32) -> (i32, i32, i32) {
    %c0_i32 = arith.constant 0 : i32
    %c0_i32_0 = arith.constant 0 : i32
    %c0_i32_1 = arith.constant 0 : i32
    %c0_i32_2 = arith.constant 0 : i32
    return %c0_i32, %c0_i32_0, %c0_i32_1 : i32, i32, i32
  }
  func.func @transform_27(%arg0: i32) -> (i32, i32, i32) {
    %c0_i32 = arith.constant 0 : i32
    %c0_i32_0 = arith.constant 0 : i32
    %c0_i32_1 = arith.constant 0 : i32
    %c0_i32_2 = arith.constant 0 : i32
    return %c0_i32, %c0_i32_0, %c0_i32_1 : i32, i32, i32
  }
  func.func @transform_28(%arg0: i32) -> (i32, i32, i32) {
    %c0_i32 = arith.constant 0 : i32
    %c0_i32_0 = arith.constant 0 : i32
    %c0_i32_1 = arith.constant 0 : i32
    %c0_i32_2 = arith.constant 0 : i32
    return %c0_i32, %c0_i32_0, %c0_i32_1 : i32, i32, i32
  }
  func.func @transform_29(%arg0: i32) -> (i32, i32, i32) {
    %c0_i32 = arith.constant 0 : i32
    %c0_i32_0 = arith.constant 0 : i32
    %c0_i32_1 = arith.constant 0 : i32
    %c0_i32_2 = arith.constant 0 : i32
    return %c0_i32, %c0_i32_0, %c0_i32_1 : i32, i32, i32
  }
  func.func @transform_30(%arg0: i32) -> (i32, i32, i32) {
    %c0_i32 = arith.constant 0 : i32
    %c0_i32_0 = arith.constant 0 : i32
    %c0_i32_1 = arith.constant 0 : i32
    %c0_i32_2 = arith.constant 0 : i32
    return %c0_i32, %c0_i32_0, %c0_i32_1 : i32, i32, i32
  }
  func.func @transform_31(%arg0: i32) -> (i32, i32, i32) {
    %c0_i32 = arith.constant 0 : i32
    %c0_i32_0 = arith.constant 0 : i32
    %c0_i32_1 = arith.constant 0 : i32
    %c0_i32_2 = arith.constant 0 : i32
    return %c0_i32, %c0_i32_0, %c0_i32_1 : i32, i32, i32
  }
  func.func @transform_32(%arg0: i32) -> (i32, i32, i32) {
    %c0_i32 = arith.constant 0 : i32
    %c0_i32_0 = arith.constant 0 : i32
    %c0_i32_1 = arith.constant 0 : i32
    %c0_i32_2 = arith.constant 0 : i32
    return %c0_i32, %c0_i32_0, %c0_i32_1 : i32, i32, i32
  }
  func.func @transform_33(%arg0: i32) -> (i32, i32, i32) {
    %c0_i32 = arith.constant 0 : i32
    %c0_i32_0 = arith.constant 0 : i32
    %c0_i32_1 = arith.constant 0 : i32
    %c0_i32_2 = arith.constant 0 : i32
    return %c0_i32, %c0_i32_0, %c0_i32_1 : i32, i32, i32
  }
  func.func @transform_34(%arg0: i32) -> (i32, i32, i32) {
    %c0_i32 = arith.constant 0 : i32
    %c0_i32_0 = arith.constant 0 : i32
    %c0_i32_1 = arith.constant 0 : i32
    %c0_i32_2 = arith.constant 0 : i32
    return %c0_i32, %c0_i32_0, %c0_i32_1 : i32, i32, i32
  }
  func.func @transform_35(%arg0: i32) -> (i32, i32, i32) {
    %c0_i32 = arith.constant 0 : i32
    %c0_i32_0 = arith.constant 0 : i32
    %c0_i32_1 = arith.constant 0 : i32
    %c0_i32_2 = arith.constant 0 : i32
    return %c0_i32, %c0_i32_0, %c0_i32_1 : i32, i32, i32
  }
  func.func @transform_36(%arg0: i32) -> (i32, i32, i32) {
    %c0_i32 = arith.constant 0 : i32
    %c0_i32_0 = arith.constant 0 : i32
    %c0_i32_1 = arith.constant 0 : i32
    %c0_i32_2 = arith.constant 0 : i32
    return %c0_i32, %c0_i32_0, %c0_i32_1 : i32, i32, i32
  }
  func.func @transform_37(%arg0: i32) -> (i32, i32) {
    %c0_i32 = arith.constant 0 : i32
    %c0_i32_0 = arith.constant 0 : i32
    %c0_i32_1 = arith.constant 0 : i32
    return %c0_i32, %c0_i32_0 : i32, i32
  }
  func.func @transform_38(%arg0: i32) -> (i32, i32) {
    %c0_i32 = arith.constant 0 : i32
    %c0_i32_0 = arith.constant 0 : i32
    %c0_i32_1 = arith.constant 0 : i32
    return %c0_i32, %c0_i32_0 : i32, i32
  }
  func.func @transform_39(%arg0: i32) -> (i32, i32) {
    %c0_i32 = arith.constant 0 : i32
    %c0_i32_0 = arith.constant 0 : i32
    %c0_i32_1 = arith.constant 0 : i32
    return %c0_i32, %c0_i32_0 : i32, i32
  }
  func.func @transform_40(%arg0: i32) -> (i32, i32) {
    %c0_i32 = arith.constant 0 : i32
    %c0_i32_0 = arith.constant 0 : i32
    %c0_i32_1 = arith.constant 0 : i32
    return %c0_i32, %c0_i32_0 : i32, i32
  }
  func.func @transform_41(%arg0: i32) -> (i32, i32, i32) {
    %c0_i32 = arith.constant 0 : i32
    %c0_i32_0 = arith.constant 0 : i32
    %c0_i32_1 = arith.constant 0 : i32
    return %arg0, %c0_i32, %c0_i32_0 : i32, i32, i32
  }
}

</mosaic_0001>

<bundles_post_ra>
// kernel: cot_transformer_forward.1
= control target key start
LH: loop header
LB: loop body
LE: loop exit
PB: predicated region body
PF: predicated region fallthrough
CT: control target
= control target key end

     0   :  { %s11031_s6 = smov 1   ;;  %s11032_s10 = smov 2   ;;  %s12461_s0 = inlined_call_operand.smem [shape: u32[42], index: -1, kind: input, shape index: {}] }
   0x1   :  { %s11114_s5 = sld [smem:[%s12461_s0]]   ;;  %s11033_s14 = smov 3  }
   0x2   :  { %s11119_s9 = sld [smem:[%s12461_s0 + %s11031_s6]]   ;;  %s11034_s18 = smov 4  }
   0x3   :  { %s11124_s13 = sld [smem:[%s12461_s0 + %s11032_s10]]   ;;  %s11035_s22 = smov 5  }
   0x4   :  { %s11129_s17 = sld [smem:[%s12461_s0 + %s11033_s14]]   ;;  %s11036_s26 = smov 6  }
   0x5   :  { %s11134_s21 = sld [smem:[%s12461_s0 + %s11034_s18]]   ;;  %s11037_s30 = smov 7  }
   0x6   :  { %s11139_s25 = sld [smem:[%s12461_s0 + %s11035_s22]]   ;;  %s11038_s4 = smov 8  }
   0x7   :  { %12541 = sst [smem:[#allocation28_spill]] %s11114_s5  ;;  %s11039_s10 = smov 9  }
   0x8   :  { %12542 = sst [smem:[#allocation29_spill]] %s11119_s9  ;;  %s11040_s15 = smov 10  }
   0x9   :  { %12543 = sst [smem:[#allocation30_spill]] %s11124_s13  ;;  %s11041_s20 = smov 11  }
   0xa   :  { %12544 = sst [smem:[#allocation31_spill]] %s11129_s17  ;;  %s11043_s1 = smov 13  }
   0xb   :  { %12545 = sst [smem:[#allocation32_spill]] %s11134_s21  ;;  %s11044_s7 = smov 14  }
   0xc   :  { %12546 = sst [smem:[#allocation33_spill]] %s11139_s25  ;;  %s11046_s22 = smov 16  }
   0xd   :  { %s11144_s29 = sld [smem:[%s12461_s0 + %s11036_s26]]   ;;  %s11042_s26 = smov 12  }
   0xe   :  { %s11149_s3 = sld [smem:[%s12461_s0 + %s11037_s30]]   ;;  %s11047_s28 = smov 17  }
   0xf   :  { %s11154_s8 = sld [smem:[%s12461_s0 + %s11038_s4]]  }
  0x10   :  { %s11159_s14 = sld [smem:[%s12461_s0 + %s11039_s10]]  }
  0x11   :  { %s11164_s19 = sld [smem:[%s12461_s0 + %s11040_s15]]   ;;  %s11045_s15 = smov 15  }
  0x12   :  { %s11169_s24 = sld [smem:[%s12461_s0 + %s11041_s20]]  }
  0x13   :  { %12547 = sst [smem:[#allocation34_spill]] %s11144_s29 }
  0x14   :  { %12548 = sst [smem:[#allocation35_spill]] %s11149_s3 }
  0x15   :  { %12549 = sst [smem:[#allocation36_spill]] %s11154_s8 }
  0x16   :  { %12550 = sst [smem:[#allocation37_spill]] %s11159_s14 }
  0x17   :  { %12551 = sst [smem:[#allocation38_spill]] %s11164_s19 }
  0x18   :  { %12552 = sst [smem:[#allocation39_spill]] %s11169_s24 }
  0x19   :  { %s11174_s30 = sld [smem:[%s12461_s0 + %s11042_s26]]  }
  0x1a   :  { %s11179_s6 = sld [smem:[%s12461_s0 + %s11043_s1]]  }
  0x1b   :  { %s11184_s12 = sld [smem:[%s12461_s0 + %s11044_s7]]   ;;  %s11048_s7 = smov 18  }
  0x1c   :  { %s11189_s20 = sld [smem:[%s12461_s0 + %s11045_s15]]   ;;  %s11049_s15 = smov 19  }
  0x1d   :  { %s11194_s27 = sld [smem:[%s12461_s0 + %s11046_s22]]   ;;  %s11050_s22 = smov 20  }
  0x1e   :  { %s11199_s4 = sld [smem:[%s12461_s0 + %s11047_s28]]   ;;  %s11051_s28 = smov 21  }
  0x1f   :  { %12553 = sst [smem:[#allocation40_spill]] %s11174_s30 }
  0x20   :  { %12554 = sst [smem:[#allocation41_spill]] %s11179_s6 }
  0x21   :  { %12555 = sst [smem:[#allocation42_spill]] %s11184_s12 }
  0x22   :  { %12556 = sst [smem:[#allocation43_spill]] %s11189_s20 }
  0x23   :  { %12557 = sst [smem:[#allocation44_spill]] %s11194_s27 }
  0x24   :  { %12558 = sst [smem:[#allocation45_spill]] %s11199_s4 }
  0x25   :  { %s11204_s13 = sld [smem:[%s12461_s0 + %s11048_s7]]   ;;  %s11052_s7 = smov 22  }
  0x26   :  { %s11209_s20 = sld [smem:[%s12461_s0 + %s11049_s15]]   ;;  %s11053_s15 = smov 23  }
  0x27   :  { %s11214_s27 = sld [smem:[%s12461_s0 + %s11050_s22]]   ;;  %s11054_s22 = smov 24  }
  0x28   :  { %s11219_s9 = sld [smem:[%s12461_s0 + %s11051_s28]]   ;;  %s11055_s28 = smov 25  }
  0x29   :  { %s11239_s4 = sld [smem:[%s12461_s0 + %s11055_s28]]   ;;  %s11059_s28 = smov 29  }
  0x2a   :  { %s11259_s30 = sld [smem:[%s12461_s0 + %s11059_s28]]   ;;  %s11063_s28 = smov 33  }
  0x2b   :  { %12559 = sst [smem:[#allocation46_spill]] %s11204_s13 }
  0x2c   :  { %12560 = sst [smem:[#allocation47_spill]] %s11209_s20 }
  0x2d   :  { %12561 = sst [smem:[#allocation48_spill]] %s11214_s27 }
  0x2e   :  { %12562 = sst [smem:[#allocation49_spill]] %s11219_s9 }
  0x2f   :  { %s11224_s13 = sld [smem:[%s12461_s0 + %s11052_s7]]   ;;  %s11056_s7 = smov 26  }
  0x30   :  { %s11229_s20 = sld [smem:[%s12461_s0 + %s11053_s15]]   ;;  %s11057_s15 = smov 27  }
  0x31   :  { %s11234_s27 = sld [smem:[%s12461_s0 + %s11054_s22]]   ;;  %s11058_s22 = smov 28  }
  0x32   :  { %12566 = sst [smem:[#allocation53_spill]] %s11239_s4 }
  0x33   :  { %s11244_s12 = sld [smem:[%s12461_s0 + %s11056_s7]]   ;;  %s11060_s7 = smov 30  }
  0x34   :  { %s11254_s6 = sld [smem:[%s12461_s0 + %s11058_s22]]   ;;  %s11062_s22 = smov 32  }
  0x35   :  { %12563 = sst [smem:[#allocation50_spill]] %s11224_s13 }
  0x36   :  { %12564 = sst [smem:[#allocation51_spill]] %s11229_s20 }
  0x37   :  { %12565 = sst [smem:[#allocation52_spill]] %s11234_s27 }
  0x38   :  { %s11249_s20 = sld [smem:[%s12461_s0 + %s11057_s15]]   ;;  %s11061_s15 = smov 31  }
  0x39   :  { %12567 = sst [smem:[#allocation54_spill]] %s11244_s12 }
  0x3a   :  { %12569 = sst [smem:[#allocation56_spill]] %s11254_s6 }
  0x3b   :  { %s11264_s19 = sld [smem:[%s12461_s0 + %s11060_s7]]   ;;  %s11064_s7 = smov 34  }
  0x3c   :  { %s11269_s8 = sld [smem:[%s12461_s0 + %s11061_s15]]   ;;  %s11065_s15 = smov 35  }
  0x3d   :  { %s11274_s3 = sld [smem:[%s12461_s0 + %s11062_s22]]   ;;  %s11066_s22 = smov 36  }
  0x3e   :  { %12568 = sst [smem:[#allocation55_spill]] %s11249_s20 }
  0x3f   :  { %s11279_s24 = sld [smem:[%s12461_s0 + %s11063_s28]]   ;;  %s11067_s28 = smov 37  }
  0x40   :  { %s11284_s14 = sld [smem:[%s12461_s0 + %s11064_s7]]   ;;  %s11068_s7 = smov 38  }
  0x41   :  { %12570 = sst [smem:[#allocation57_spill]] %s11264_s19 }
  0x42   :  { %12571 = sst [smem:[#allocation58_spill]] %s11269_s8 }
  0x43   :  { %12572 = sst [smem:[#allocation59_spill]] %s11274_s3 }
  0x44   :  { %s11289_s29 = sld [smem:[%s12461_s0 + %s11065_s15]]   ;;  %s11069_s15 = smov 39  }
  0x45   :  { %12573 = sst [smem:[#allocation60_spill]] %s11279_s24 }
  0x46   :  { %12574 = sst [smem:[#allocation61_spill]] %s11284_s14 }
  0x47   :  { %s11294_s25 = sld [smem:[%s12461_s0 + %s11066_s22]]   ;;  %s11070_s22 = smov 40  }
  0x48   :  { %s11299_s24 = sld [smem:[%s12461_s0 + %s11067_s28]]   ;;  %s11071_s28 = smov 41  }
  0x49   :  { %s11304_s21 = sld [smem:[%s12461_s0 + %s11068_s7]]  }
  0x4a   :  { %12575 = sst [smem:[#allocation62_spill]] %s11289_s29 }
  0x4b   :  { %s11309_s29 = sld [smem:[%s12461_s0 + %s11069_s15]]  }
  0x4d   :  { %12576 = sst [smem:[#allocation63_spill]] %s11294_s25 }
  0x4e   :  { %12577 = sst [smem:[#allocation64_spill]] %s11299_s24 }
  0x4f   :  { %s11314_s25 = sld [smem:[%s12461_s0 + %s11070_s22]]  }
  0x50   :  { %s11319_s24 = sld [smem:[%s12461_s0 + %s11071_s28]]  }
  0x51   :  { %88 = vsyncpa [#allocation3], 0 }
  0x52   :  { %89 = vsyncpa [#allocation5], 0 }
  0x53   :  { %90 = vsyncpa [#allocation8], 0 }
  0x54   :  { %91 = vsyncpa [#allocation11], 0 }
  0x55   :  { %92 = vsyncpa [#allocation14], 0 }
  0x56   :  { %93 = vsyncpa [#allocation17], 0 }
  0x57   :  { %94 = vsyncpa [#allocation20], 0  ;;  %s11321_s7 = smov 0  }
  0x58 LB: > { %s12578_s27 = sld [smem:[#allocation52_spill]]  ;;  %s12579_s20 = sld [smem:[#allocation55_spill]]  ;;  %s11029_s7 = sphi %s11321_s7, %s100_s7  }
  0x59   : > { %s12580_s19 = sld [smem:[#allocation57_spill]]  ;;  %s12581_s17 = sld [smem:[#allocation31_spill]] }
  0x5a   : > { %s12582_s14 = sld [smem:[#allocation61_spill]]  ;;  %s12583_s13 = sld [smem:[#allocation50_spill]] }
  0x5b   : > { %s12584_s12 = sld [smem:[#allocation54_spill]]  ;;  %s12585_s9 = sld [smem:[#allocation49_spill]] }
  0x5c   : > { %s12586_s8 = sld [smem:[#allocation58_spill]]  ;;  %s12587_s6 = sld [smem:[#allocation56_spill]] }
  0x5d   : > { %s12588_s3 = sld [smem:[#allocation59_spill]]  ;;  %s12589_s4 = sld [smem:[#allocation53_spill]] }
  0x5e   : > { %s11327_s0 = sadd.s32 4294967295, %s11029_s7   ;;  %p8640_p0 = scmp.ge.s32.totalorder %s11029_s7, 1 }
  0x5f   : > { %p1002_p1 = scmp.lt.s32.totalorder %s11029_s7, 3  ;;  %p12482_p2 = scmp.eq.s32.totalorder %s11327_s0, 0 }
  0x60   : > { %s11072_s11 = smov [#allocation4]   ;;  %s11073_s16 = smov [#allocation7]  }
  0x61   : > { %p11332_p3 = pnand %p8640_p0, %p1002_p1  ;;  %s1084_s15 = sshll.u32 %s11072_s11, 4  ;;  %s11336_s15 = int_to_ptr.vmem [resolvable:$true] %s1084_s15 }
  0x62   : > { %s1113_s18 = sshll.u32 %s11073_s16, 4  ;;  %s11074_s23 = smov [#allocation10]   ;;  %s11340_s18 = int_to_ptr.vmem [resolvable:$true] %s1113_s18 }
  0x63   : > { %s12590_s10 = scalar_select %p11332_p3, 1, 0 }
  0x64   : > { %p10202_p4 = pneg %p11332_p3  ;;  %s11348_s26 = sshll.u32 %s11074_s23, 4  ;;  %s1140_s26 = int_to_ptr.vmem [resolvable:$true] %s11348_s26 }
  0x65   : > { %s10659_s28 = scalar_lea.hbm %s12583_s13, 32 }
  0x66   : > { %p11344_p5 = pnand %p12482_p2, %p10202_p4  ;;  %p10660_p6 = scmp.ne.s32.totalorder %s12583_s13, %s10659_s28 }
  0x67   : > { %p10666_p10 = scmp.lt.u32.totalorder %s10659_s28, %s12583_s13 }
  0x68   : > { %p11354_p7 = pneg %p11344_p5 }
  0x6a   : > { %p10662_p8 = pnand %p11354_p7, %p10660_p6 }
  0x6c   : > { %p10663_p9 = pneg %p10662_p8 }
  0x6e   : > { %p10668_p11 = pnand %p10666_p10, %p10663_p9 }
  0x70   : > { %10671 = shalt.err (!%p10668_p11)
}
  0x71   : > { %s10672_s2 = scalar_lea.vmem %s11336_s15, 32  ;;  %p10680_p1 = scmp.lt.s32.totalorder %s11336_s15, %s11336_s15 }
  0x72   : > { %p10673_p12 = scmp.ne.s32.totalorder %s11336_s15, %s10672_s2  ;;  %p10681_p4 = scmp.lt.s32.totalorder %s10672_s2, %s10672_s2 }
  0x74   : > { %p10675_p13 = pnand %p10673_p12, %p11354_p7  ;;  %p10682_p2 = por %p10681_p4, %p10680_p1 }
  0x76   : > { %p10676_p0 = pneg %p10675_p13 }
  0x78   : > { %p10683_p3 = pnand %p10682_p2, %p10676_p0 }
  0x7a   : > { %10686 = shalt.err (!%p10683_p3)
}
  0x7b   : > { %s12484_s11 = smov 16   ;;  %s12486_s16 = smov 1  }
  0x7c   : > { %10208 = dma.hbm_to_vmem [thread:$0]  (!%p11344_p5), %s12583_s13, 32, %s11336_s15, [#allocation5], %s12484_s11, %s12484_s11, %s12486_s16  }
  0x7d   : > { %s10687_s23 = scalar_lea.hbm %s12589_s4, 1024 }
  0x7e   : > { %p10688_p6 = scmp.ne.s32.totalorder %s12589_s4, %s10687_s23  ;;  %p10694_p3 = scmp.lt.u32.totalorder %s10687_s23, %s12589_s4 }
  0x80   : > { %p10690_p8 = pnand %p10688_p6, %p11354_p7 }
  0x82   : > { %p10691_p2 = pneg %p10690_p8 }
  0x84   : > { %p10696_p9 = pnand %p10694_p3, %p10691_p2 }
  0x86   : > { %10699 = shalt.err (!%p10696_p9)
}
  0x87   : > { %s10700_s28 = scalar_lea.vmem %s11340_s18, 1024  ;;  %p10708_p13 = scmp.lt.s32.totalorder %s11340_s18, %s11340_s18 }
  0x88   : > { %p10701_p10 = scmp.ne.s32.totalorder %s11340_s18, %s10700_s28  ;;  %p10709_p0 = scmp.lt.s32.totalorder %s10700_s28, %s10700_s28 }
  0x8a   : > { %p10703_p11 = pnand %p10701_p10, %p11354_p7  ;;  %p10710_p1 = por %p10709_p0, %p10708_p13 }
  0x8c   : > { %p10704_p12 = pneg %p10703_p11 }
  0x8e   : > { %p10711_p4 = pnand %p10710_p1, %p10704_p12 }
  0x90   : > { %10714 = shalt.err (!%p10711_p4)
}
  0x91   : > { %s12488_s15 = smov 128   ;;  %s12489_s2 = smov 8  }
  0x92   : > { %10214 = dma.hbm_to_vmem [thread:$0]  (!%p11344_p5), %s12589_s4, 1024, %s11340_s18, [#allocation8], %s12488_s15, %s12488_s15, %s12489_s2  }
  0x93   : > { %s11079_s23 = smov [#allocation13]   ;;  %s10715_s11 = scalar_lea.hbm %s12579_s20, 1024 }
  0x94   : > { %s1165_s28 = sshll.u32 %s11079_s23, 4  ;;  %p10716_p6 = scmp.ne.s32.totalorder %s12579_s20, %s10715_s11  ;;  %s1166_s28 = int_to_ptr.vmem [resolvable:$true] %s1165_s28 }
  0x95   : > { %p10722_p3 = scmp.lt.u32.totalorder %s10715_s11, %s12579_s20 }
  0x96   : > { %p10718_p8 = pnand %p10716_p6, %p11354_p7 }
  0x98   : > { %p10719_p2 = pneg %p10718_p8 }
  0x9a   : > { %p10724_p9 = pnand %p10722_p3, %p10719_p2 }
  0x9c   : > { %10727 = shalt.err (!%p10724_p9)
}
  0x9d   : > { %s10728_s16 = scalar_lea.vmem %s1140_s26, 1024  ;;  %p10736_p13 = scmp.lt.s32.totalorder %s1140_s26, %s1140_s26 }
  0x9e   : > { %p10729_p10 = scmp.ne.s32.totalorder %s1140_s26, %s10728_s16  ;;  %p10737_p0 = scmp.lt.s32.totalorder %s10728_s16, %s10728_s16 }
  0xa0   : > { %p10731_p11 = pnand %p10729_p10, %p11354_p7  ;;  %p10738_p1 = por %p10737_p0, %p10736_p13 }
  0xa2   : > { %p10732_p12 = pneg %p10731_p11 }
  0xa4   : > { %p10739_p4 = pnand %p10738_p1, %p10732_p12 }
  0xa6   : > { %10742 = shalt.err (!%p10739_p4)
}
  0xa7   : > { %10220 = dma.hbm_to_vmem [thread:$0]  (!%p11344_p5), %s12579_s20, 1024, %s1140_s26, [#allocation11], %s12488_s15, %s12488_s15, %s12489_s2  }
  0xa8   : > { %s10743_s18 = scalar_lea.hbm %s11259_s30, 32 }
  0xa9   : > { %p10744_p6 = scmp.ne.s32.totalorder %s11259_s30, %s10743_s18  ;;  %p10750_p3 = scmp.lt.u32.totalorder %s10743_s18, %s11259_s30 }
  0xab   : > { %p10746_p8 = pnand %p10744_p6, %p11354_p7 }
  0xad   : > { %p10747_p2 = pneg %p10746_p8 }
  0xaf   : > { %p10752_p9 = pnand %p10750_p3, %p10747_p2 }
  0xb1   : > { %10755 = shalt.err (!%p10752_p9)
}
  0xb2   : > { %s10756_s11 = scalar_lea.vmem %s1166_s28, 32  ;;  %p10764_p13 = scmp.lt.s32.totalorder %s1166_s28, %s1166_s28 }
  0xb3   : > { %p10757_p10 = scmp.ne.s32.totalorder %s1166_s28, %s10756_s11  ;;  %p10765_p0 = scmp.lt.s32.totalorder %s10756_s11, %s10756_s11 }
  0xb5   : > { %p10759_p11 = pnand %p10757_p10, %p11354_p7  ;;  %p10766_p1 = por %p10765_p0, %p10764_p13 }
  0xb7   : > { %p10760_p12 = pneg %p10759_p11 }
  0xb9   : > { %p10767_p4 = pnand %p10766_p1, %p10760_p12 }
  0xbb   : > { %10770 = shalt.err (!%p10767_p4)
}
  0xbc   : > { %s12593_s26 = smov 1   ;;  %s12594_s16 = smov 16  }
  0xbd   : > { %10226 = dma.hbm_to_vmem [thread:$0]  (!%p11344_p5), %s11259_s30, 32, %s1166_s28, [#allocation14], %s12594_s16, %s12594_s16, %s12593_s26  }
  0xbe   : > { %s11080_s23 = smov [#allocation16]   ;;  %s11081_s15 = smov [#allocation2]  }
  0xbf   : > { %s1191_s18 = sshll.u32 %s11080_s23, 4  ;;  %s1071_s2 = sshll.u32 %s11081_s15, 4  ;;  %s1192_s18 = int_to_ptr.vmem [resolvable:$true] %s1191_s18  ;;  %s1072_s2 = int_to_ptr.vmem [resolvable:$true] %s1071_s2 }
  0xc0   : > { %s10771_s11 = scalar_lea.hbm %s12586_s8, 1024 }
  0xc1   : > { %p10772_p6 = scmp.ne.s32.totalorder %s12586_s8, %s10771_s11  ;;  %p10778_p3 = scmp.lt.u32.totalorder %s10771_s11, %s12586_s8 }
  0xc3   : > { %p10774_p8 = pnand %p10772_p6, %p11354_p7 }
  0xc5   : > { %p10775_p2 = pneg %p10774_p8 }
  0xc7   : > { %p10780_p9 = pnand %p10778_p3, %p10775_p2 }
  0xc9   : > { %10783 = shalt.err (!%p10780_p9)
}
  0xca   : > { %s10784_s4 = scalar_lea.vmem %s1192_s18, 1024  ;;  %p10792_p13 = scmp.lt.s32.totalorder %s1192_s18, %s1192_s18 }
  0xcb   : > { %p10785_p10 = scmp.ne.s32.totalorder %s1192_s18, %s10784_s4  ;;  %p10793_p0 = scmp.lt.s32.totalorder %s10784_s4, %s10784_s4 }
  0xcd   : > { %p10787_p11 = pnand %p10785_p10, %p11354_p7  ;;  %p10794_p1 = por %p10793_p0, %p10792_p13 }
  0xcf   : > { %p10788_p12 = pneg %p10787_p11 }
  0xd1   : > { %p10795_p4 = pnand %p10794_p1, %p10788_p12 }
  0xd3   : > { %10798 = shalt.err (!%p10795_p4)
}
  0xd4   : > { %s12595_s15 = smov 8   ;;  %s12596_s28 = smov 128  }
  0xd5   : > { %10232 = dma.hbm_to_vmem [thread:$0]  (!%p11344_p5), %s12586_s8, 1024, %s1192_s18, [#allocation17], %s12596_s28, %s12596_s28, %s12595_s15  }
  0xd6   : > { %s10799_s23 = scalar_lea.hbm %s12585_s9, 32 }
  0xd7   : > { %p10800_p6 = scmp.ne.s32.totalorder %s12585_s9, %s10799_s23  ;;  %p10806_p3 = scmp.lt.u32.totalorder %s10799_s23, %s12585_s9 }
  0xd9   : > { %p10802_p8 = pnand %p10800_p6, %p11354_p7 }
  0xdb   : > { %p10803_p2 = pneg %p10802_p8 }
  0xdd   : > { %p10808_p9 = pnand %p10806_p3, %p10803_p2 }
  0xdf   : > { %10811 = shalt.err (!%p10808_p9)
}
  0xe0   : > { %s10812_s4 = scalar_lea.vmem %s1072_s2, 32  ;;  %p10820_p13 = scmp.lt.s32.totalorder %s1072_s2, %s1072_s2 }
  0xe1   : > { %p10813_p10 = scmp.ne.s32.totalorder %s1072_s2, %s10812_s4  ;;  %p10821_p0 = scmp.lt.s32.totalorder %s10812_s4, %s10812_s4 }
  0xe3   : > { %p10815_p11 = pnand %p10813_p10, %p11354_p7  ;;  %p10822_p1 = por %p10821_p0, %p10820_p13 }
  0xe5   : > { %p10816_p12 = pneg %p10815_p11 }
  0xe7   : > { %p10823_p4 = pnand %p10822_p1, %p10816_p12 }
  0xe9   : > { %10826 = shalt.err (!%p10823_p4)
}
  0xea   : > { %10205 = dma.hbm_to_vmem [thread:$0]  (!%p11344_p5), %s12585_s9, 32, %s1072_s2, [#allocation3], %s12594_s16, %s12594_s16, %s12593_s26  }
  0xeb   : > { %s11082_s18 = smov [#allocation6]   ;;  %s11083_s15 = smov [#allocation9]  }
  0xec   : > { %s1100_s11 = sshll.u32 %s11082_s18, 4  ;;  %s1126_s28 = sshll.u32 %s11083_s15, 4  ;;  %s1101_s11 = int_to_ptr.vmem [resolvable:$true] %s1100_s11  ;;  %s1127_s28 = int_to_ptr.vmem [resolvable:$true] %s1126_s28 }
  0xed   : > { %s10827_s23 = scalar_lea.hbm %s12578_s27, 32 }
  0xee   : > { %p10828_p6 = scmp.ne.s32.totalorder %s12578_s27, %s10827_s23  ;;  %p10834_p3 = scmp.lt.u32.totalorder %s10827_s23, %s12578_s27 }
  0xf0   : > { %p10830_p8 = pnand %p10828_p6, %p11354_p7 }
  0xf2   : > { %p10831_p2 = pneg %p10830_p8 }
  0xf4   : > { %p10836_p9 = pnand %p10834_p3, %p10831_p2 }
  0xf6   : > { %10839 = shalt.err (!%p10836_p9)
}
  0xf7   : > { %s10840_s4 = scalar_lea.vmem %s1101_s11, 32  ;;  %p10848_p13 = scmp.lt.s32.totalorder %s1101_s11, %s1101_s11 }
  0xf8   : > { %p10841_p10 = scmp.ne.s32.totalorder %s1101_s11, %s10840_s4  ;;  %p10849_p0 = scmp.lt.s32.totalorder %s10840_s4, %s10840_s4 }
  0xfa   : > { %p10843_p11 = pnand %p10841_p10, %p11354_p7  ;;  %p10850_p1 = por %p10849_p0, %p10848_p13 }
  0xfc   : > { %p10844_p12 = pneg %p10843_p11 }
  0xfe   : > { %p10851_p4 = pnand %p10850_p1, %p10844_p12 }
 0x100   : > { %10854 = shalt.err (!%p10851_p4)
}
 0x101   : > { %10211 = dma.hbm_to_vmem [thread:$0]  (!%p11344_p5), %s12578_s27, 32, %s1101_s11, [#allocation5], %s12594_s16, %s12594_s16, %s12593_s26  }
 0x102   : > { %s10855_s2 = scalar_lea.hbm %s12584_s12, 32 }
 0x103   : > { %p10856_p6 = scmp.ne.s32.totalorder %s12584_s12, %s10855_s2  ;;  %p10862_p3 = scmp.lt.u32.totalorder %s10855_s2, %s12584_s12 }
 0x105   : > { %p10858_p8 = pnand %p10856_p6, %p11354_p7 }
 0x107   : > { %p10859_p2 = pneg %p10858_p8 }
 0x109   : > { %p10864_p9 = pnand %p10862_p3, %p10859_p2 }
 0x10b   : > { %10867 = shalt.err (!%p10864_p9)
}
 0x10c   : > { %s10868_s18 = scalar_lea.vmem %s1127_s28, 32  ;;  %p10876_p13 = scmp.lt.s32.totalorder %s1127_s28, %s1127_s28 }
 0x10d   : > { %p10869_p10 = scmp.ne.s32.totalorder %s1127_s28, %s10868_s18  ;;  %p10877_p0 = scmp.lt.s32.totalorder %s10868_s18, %s10868_s18 }
 0x10f   : > { %p10871_p11 = pnand %p10869_p10, %p11354_p7  ;;  %p10878_p1 = por %p10877_p0, %p10876_p13 }
 0x111   : > { %p10872_p12 = pneg %p10871_p11 }
 0x113   : > { %p10879_p4 = pnand %p10878_p1, %p10872_p12 }
 0x115   : > { %10882 = shalt.err (!%p10879_p4)
}
 0x116   : > { %10217 = dma.hbm_to_vmem [thread:$0]  (!%p11344_p5), %s12584_s12, 32, %s1127_s28, [#allocation8], %s12594_s16, %s12594_s16, %s12593_s26  }
 0x117   : > { %s11084_s11 = smov [#allocation12]   ;;  %s11085_s23 = smov [#allocation15]  }
 0x118   : > { %s1152_s15 = sshll.u32 %s11084_s11, 4  ;;  %s1178_s4 = sshll.u32 %s11085_s23, 4  ;;  %s1153_s15 = int_to_ptr.vmem [resolvable:$true] %s1152_s15  ;;  %s1179_s4 = int_to_ptr.vmem [resolvable:$true] %s1178_s4 }
 0x119   : > { %s10883_s2 = scalar_lea.hbm %s12587_s6, 32 }
 0x11a   : > { %p10884_p6 = scmp.ne.s32.totalorder %s12587_s6, %s10883_s2  ;;  %p10890_p3 = scmp.lt.u32.totalorder %s10883_s2, %s12587_s6 }
 0x11c   : > { %p10886_p8 = pnand %p10884_p6, %p11354_p7 }
 0x11e   : > { %p10887_p2 = pneg %p10886_p8 }
 0x120   : > { %p10892_p9 = pnand %p10890_p3, %p10887_p2 }
 0x122   : > { %10895 = shalt.err (!%p10892_p9)
}
 0x123   : > { %s10896_s18 = scalar_lea.vmem %s1153_s15, 32  ;;  %p10904_p13 = scmp.lt.s32.totalorder %s1153_s15, %s1153_s15 }
 0x124   : > { %p10897_p10 = scmp.ne.s32.totalorder %s1153_s15, %s10896_s18  ;;  %p10905_p0 = scmp.lt.s32.totalorder %s10896_s18, %s10896_s18 }
 0x126   : > { %p10899_p11 = pnand %p10897_p10, %p11354_p7  ;;  %p10906_p1 = por %p10905_p0, %p10904_p13 }
 0x128   : > { %p10900_p12 = pneg %p10899_p11 }
 0x12a   : > { %p10907_p4 = pnand %p10906_p1, %p10900_p12 }
 0x12c   : > { %10910 = shalt.err (!%p10907_p4)
}
 0x12d   : > { %10223 = dma.hbm_to_vmem [thread:$0]  (!%p11344_p5), %s12587_s6, 32, %s1153_s15, [#allocation11], %s12594_s16, %s12594_s16, %s12593_s26  }
 0x12e   : > { %s10911_s28 = scalar_lea.hbm %s12580_s19, 32 }
 0x12f   : > { %p10912_p6 = scmp.ne.s32.totalorder %s12580_s19, %s10911_s28  ;;  %p10918_p3 = scmp.lt.u32.totalorder %s10911_s28, %s12580_s19 }
 0x131   : > { %p10914_p8 = pnand %p10912_p6, %p11354_p7 }
 0x133   : > { %p10915_p2 = pneg %p10914_p8 }
 0x135   : > { %p10920_p9 = pnand %p10918_p3, %p10915_p2 }
 0x137   : > { %10923 = shalt.err (!%p10920_p9)
}
 0x138   : > { %s10924_s11 = scalar_lea.vmem %s1179_s4, 32  ;;  %p10932_p13 = scmp.lt.s32.totalorder %s1179_s4, %s1179_s4 }
 0x139   : > { %p10925_p10 = scmp.ne.s32.totalorder %s1179_s4, %s10924_s11  ;;  %p10933_p0 = scmp.lt.s32.totalorder %s10924_s11, %s10924_s11 }
 0x13b   : > { %p10927_p11 = pnand %p10925_p10, %p11354_p7  ;;  %p10934_p1 = por %p10933_p0, %p10932_p13 }
 0x13d   : > { %p10928_p12 = pneg %p10927_p11 }
 0x13f   : > { %p10935_p4 = pnand %p10934_p1, %p10928_p12 }
 0x141   : > { %10938 = shalt.err (!%p10935_p4)
}
 0x142   : > { %10229 = dma.hbm_to_vmem [thread:$0]  (!%p11344_p5), %s12580_s19, 32, %s1179_s4, [#allocation14], %s12594_s16, %s12594_s16, %s12593_s26  }
 0x143   : > { %s11086_s15 = smov [#allocation18]   ;;  %s11087_s2 = smov [#allocation19]  }
 0x144   : > { %s1204_s23 = sshll.u32 %s11086_s15, 4  ;;  %s1220_s18 = sshll.u32 %s11087_s2, 4  ;;  %s1205_s23 = int_to_ptr.vmem [resolvable:$true] %s1204_s23  ;;  %s1221_s18 = int_to_ptr.vmem [resolvable:$true] %s1220_s18 }
 0x145   : > { %s10939_s28 = scalar_lea.hbm %s12588_s3, 32 }
 0x146   : > { %p10940_p6 = scmp.ne.s32.totalorder %s12588_s3, %s10939_s28  ;;  %p10946_p3 = scmp.lt.u32.totalorder %s10939_s28, %s12588_s3 }
 0x148   : > { %p10942_p8 = pnand %p10940_p6, %p11354_p7 }
 0x14a   : > { %p10943_p2 = pneg %p10942_p8 }
 0x14c   : > { %p10948_p9 = pnand %p10946_p3, %p10943_p2 }
 0x14e   : > { %10951 = shalt.err (!%p10948_p9)
}
 0x14f   : > { %s10952_s11 = scalar_lea.vmem %s1205_s23, 32  ;;  %p10960_p13 = scmp.lt.s32.totalorder %s1205_s23, %s1205_s23 }
 0x150   : > { %p10953_p10 = scmp.ne.s32.totalorder %s1205_s23, %s10952_s11  ;;  %p10961_p0 = scmp.lt.s32.totalorder %s10952_s11, %s10952_s11 }
 0x152   : > { %p10955_p11 = pnand %p10953_p10, %p11354_p7  ;;  %p10962_p1 = por %p10961_p0, %p10960_p13 }
 0x154   : > { %p10956_p12 = pneg %p10955_p11 }
 0x156   : > { %p10963_p4 = pnand %p10962_p1, %p10956_p12 }
 0x158   : > { %10966 = shalt.err (!%p10963_p4)
}
 0x159   : > { %10235 = dma.hbm_to_vmem [thread:$0]  (!%p11344_p5), %s12588_s3, 32, %s1205_s23, [#allocation17], %s12594_s16, %s12594_s16, %s12593_s26  }
 0x15a   : > { %s10967_s4 = scalar_lea.hbm %s12582_s14, 32 }
 0x15b   : > { %p10968_p6 = scmp.ne.s32.totalorder %s12582_s14, %s10967_s4  ;;  %p10974_p3 = scmp.lt.u32.totalorder %s10967_s4, %s12582_s14 }
 0x15d   : > { %p10970_p8 = pnand %p10968_p6, %p11354_p7 }
 0x15f   : > { %p10971_p2 = pneg %p10970_p8 }
 0x161   : > { %p10976_p9 = pnand %p10974_p3, %p10971_p2 }
 0x163   : > { %10979 = shalt.err (!%p10976_p9)
}
 0x164   : > { %s10980_s15 = scalar_lea.vmem %s1221_s18, 32  ;;  %p10988_p13 = scmp.lt.s32.totalorder %s1221_s18, %s1221_s18 }
 0x165   : > { %p10981_p10 = scmp.ne.s32.totalorder %s1221_s18, %s10980_s15  ;;  %p10989_p0 = scmp.lt.s32.totalorder %s10980_s15, %s10980_s15 }
 0x167   : > { %p10983_p11 = pnand %p10981_p10, %p11354_p7  ;;  %p10990_p1 = por %p10989_p0, %p10988_p13 }
 0x169   : > { %p10984_p12 = pneg %p10983_p11 }
 0x16b   : > { %p10991_p4 = pnand %p10990_p1, %p10984_p12 }
 0x16d   : > { %10994 = shalt.err (!%p10991_p4)
}
 0x16e   : > { %10238 = dma.hbm_to_vmem [thread:$0]  (!%p11344_p5), %s12582_s14, 32, %s1221_s18, [#allocation20], %s12594_s16, %s12594_s16, %s12593_s26  }
 0x16f   : > { %p12597_p6 = scmp.ne.s32.totalorder %s12590_s10, 0 }
 0x170   : > { %p12598_p8 = scmp.eq.s32.totalorder (!%p12597_p6), %s11327_s0, 0 }
 0x171   : > { %1269 = sbr.rel (%p12597_p6) target bundleno = 18528 (0x4860), region = 184 }
 0x178   : > { %11000 = dma.done.wait (%p12598_p8), [#allocation3], 32   ;;  %p12599_p7 = pmov %p12598_p8 }
 0x17a   : > { %11002 = vsyncadd (%p12599_p7), [#allocation3], 4294967264  ;;  %p12600_p2 = pmov %p12599_p7 }
 0x17c   : > { %11004 = dma.done.wait (%p12600_p2), [#allocation5], 64   ;;  %p12601_p3 = pmov %p12600_p2 }
 0x17d   : > { %p12602_p9 = pmov %p12600_p2 }
 0x17e   : > { %11006 = vsyncadd (%p12601_p3), [#allocation5], 4294967232 }
 0x17f   : > { %11008 = dma.done.wait (%p12602_p9), [#allocation8], 1056   ;;  %p12603_p5 = pmov %p12600_p2 }
 0x180   : > { %p12604_p10 = pmov %p12600_p2 }
 0x181   : > { %11010 = vsyncadd (%p12603_p5), [#allocation8], 4294966240 }
 0x182   : > { %11012 = dma.done.wait (%p12604_p10), [#allocation11], 1056   ;;  %p12605_p11 = pmov %p12600_p2 }
 0x183   : > { %p12606_p12 = pmov %p12600_p2 }
 0x184   : > { %11014 = vsyncadd (%p12605_p11), [#allocation11], 4294966240 }
 0x185   : > { %11016 = dma.done.wait (%p12606_p12), [#allocation14], 64   ;;  %p12607_p13 = pmov %p12600_p2 }
 0x186   : > { %p12608_p0 = pmov %p12600_p2 }
 0x187   : > { %11018 = vsyncadd (%p12607_p13), [#allocation14], 4294967232 }
 0x188   : > { %11020 = dma.done.wait (%p12608_p0), [#allocation17], 1056   ;;  %p12609_p1 = pmov %p12608_p0 }
 0x189   : > { %p12610_p4 = pmov %p12608_p0 }
 0x18a   : > { %11022 = vsyncadd (%p12609_p1), [#allocation17], 4294966240 }
 0x18b   : > { %11024 = dma.done.wait (%p12610_p4), [#allocation20], 32   ;;  %p12611_p6 = pmov %p12608_p0 }
 0x18c   : > { %s12612_s5 = sld [smem:[#allocation28_spill]]  ;;  %p1416_p8 = scmp.lt.s32.totalorder %s11327_s0, 1  ;;  %vm1442_vm0 = vcmask 261120   ;;  %v1431_v0 = vld [vmem:[%s12581_s17] sm:$0xff]  ;;  %v1432_v1 = vld [vmem:[%s12581_s17 + $0x8] sm:$0xff]  ;;  %v1433_v2 = vld [vmem:[%s12581_s17 + $0x10] sm:$0xff] }
 0x18d   : > { %11026 = vsyncadd (%p12611_p6), [#allocation20], 4294967264  ;;  %s12613_s1 = sld [smem:[#allocation32_spill]]  ;;  %v9808_v3 = vpack.c.bf16 %v1432_v1, %v1431_v0  ;;  %v1434_v4 = vld [vmem:[%s12581_s17 + $0x18] sm:$0xff]  ;;  %vm1530_vm1 = vcmask 64512   ;;  %s12515_s26 = smov 96  }
 0x18e   : > { %s12657_s0 = smov (!%p1416_p8, %s11327_s0), 1  ;;  %v9812_v6 = vpack.c.bf16 %v1434_v4, %v1433_v2  ;;  %vm11586_vm2 = vmpackc.low %vm1530_vm1, %vm1530_vm1  ;;  %vm1620_vm3 = vcmask 74752   ;;  %vm1616_vm4 = vcmask 80896   ;;  %s12511_s16 = smov 64   ;;  %vm1651_vm5 = vcmask 1041408   ;;  %v7975_v34 = vld [vmem:[#allocation10 + $0x28] sm:$0xff] }
 0x18f   : > { %s8933_s10 = sshll.u32 %s12657_s0, 4  ;;  %9809 = vmatprep.subr.bf16.mxu0 %v9808_v3  ;;  %s12519_s23 = smov 88   ;;  %vm11092_vm6 = vmmov 1   ;;  %vm2364_vm8 = vcmask 130048   ;;  %vm2367_vm9 = vcmask 195584   ;;  %vm2469_vm10 = vcmask 254976  }
 0x190   : > { %9811 = vmatpush3.bf16.msra.mxu0 %v9808_v3  ;;  %s12513_s2 = smov 120   ;;  %vm11604_vm7 = vmpackc.low %vm1651_vm5, %vm11092_vm6  ;;  %s12507_s18 = smov 56   ;;  %vm2619_vm11 = vcmask 523264   ;;  %vm11104_vm12 = vmmov 0   ;;  %vm4274_vm13 = vcmask 46080   ;;  %vm4292_vm14 = vcmask 1045504  }
 0x191   : > { %9813 = vmatprep.subr.bf16.mxu0 %v9812_v6  ;;  %s12509_s28 = smov 80   ;;  %s12505_s11 = smov 112   ;;  %vm4288_vm15 = vcmask 48128   ;;  %vm5255_vm5 = vcmask 78848  }
 0x192   : > { %s1420_s22 = scalar_lea.vmem %s12612_s5, %s8933_s10  ;;  %s12495_s4 = smov 72  }
 0x193   : > { %v11563_v5 = vld [vmem:[%s1420_s22] sm:$0xff]  ;;  %v11567_v7 = vld [vmem:[%s1420_s22 + $0x8] sm:$0x3]  ;;  %s12493_s15 = smov 104   ;;  %s12491_s10 = smov 48  }
 0x194   : > { %9227 = vmatprep.mubr.msk.f32.mxu0 %vm1442_vm0, %v11563_v5  ;;  %9815 = vmatpush3.bf16.msra.mxu0 %v9812_v6  ;;  %v8671_v8 = vld [vmem:[%s12613_s1] ss:$0 sm:$0xff]  ;;  %s12503_s22 = smov 8   ;;  %s12628_s3 = smov 96  }
 0x195   : > { %s12631_s5 = smov 80   ;;  %s12632_s6 = smov 56  }
 0x196   : > { %s12633_s8 = smov 112   ;;  %s12634_s9 = smov 72  }
 0x197   : > { %9228 = vmatmul.mubr.msk.f32.vlgmr.msra.gmra.mrb[0].mxu0 %vm1442_vm0, %v11567_v7  ;;  %s12635_s12 = smov 104   ;;  %s12636_s13 = smov 48  }
 0x198   : > { %s12637_s14 = smov 8   ;;  %s12639_s19 = smov 16  }
 0x199   : > { %s12640_s20 = smov 24   ;;  %s12653_s27 = sld [smem:[#allocation63_spill]] }
 0x26a   : > { %v9229_v9 = vpop.f32.mrb[0].mxu0 }
 0x26b   : > { %v11572_v10 = vadd.f32 %v9229_v9, %v8671_v8  ;;  %v1515_v11 = vpop.f32.mrb[1].mxu0 }
 0x26c   : > { %v11574_v12 = vadd.f32 %v8671_v8, %v1515_v11 }
 0x26e   : > { %9234 = vmatprep.mubr.msk.f32.mxu1 %vm1530_vm1, %v11574_v12  ;;  %v11580_v13 = vpack.i.bf16 %v11572_v10, %v11574_v12 }
 0x270   : > { %10347 = vrot.lane.b32.xlu0 %v11580_v13, %s12515_s26  ;;  %s12627_s26 = sld [smem:[#allocation42_spill]] }
 0x2e2   : > { %v10348_v14 = vpop.permute.xlu0 %10347 }
 0x2e3   : > { %v10350_v15 = vunpack.i.h.bf16 %v10348_v14  ;;  %v10349_v16 = vunpack.i.l.bf16 %v10348_v14 }
 0x2e5   : > { %v9816_v18 = vpack.c.bf16 %v10350_v15, %v10349_v16 }
 0x2e7   : > { %9818 = vmatprep.subr.msk.bf16.mxu1 %vm11586_vm2, %v9816_v18 }
 0x2e8   : > { %9821 = vmatpush3.bf16.xpose.msk.msra.mxu1 %vm11586_vm2, %v9816_v18 }
 0x2ef   : > { %9235 = vmatmul.mubr.msk.f32.vlgmr.msra.gmra.mrb[0].mxu1 %vm1530_vm1, %v11572_v10 }
 0x3c2   : > { %v9236_v19 = vpop.f32.mrb[0].mxu1 }
 0x3c3   : > { %v1615_v20 = vmul.f32 0.35355338, %v9236_v19  ;;  %v1605_v21 = vpop.f32.mrb[1].mxu1 }
 0x3c4   : > { %v1614_v22 = vmul.f32 0.35355338, %v1605_v21 }
 0x3c5   : > { %v1621_v23 = vsel %vm1620_vm3, %v1615_v20, -inf }
 0x3c6   : > { %1622 = vmax.xlane.f32.xlu1 %v1621_v23  ;;  %v1617_v24 = vsel %vm1616_vm4, %v1614_v22, -inf }
 0x3c7   : > { %1618 = vmax.xlane.f32.xlu0 %v1617_v24 }
 0x3d7   : > { %10352 = vrot.lane.b32.xlu1 %v11580_v13, %s12511_s16  ;;  %s12625_s16 = sld [smem:[#allocation40_spill]] }
 0x3db   : > { %10357 = vrot.lane.b32.xlu1 %v11580_v13, %s12519_s23 }
 0x3dd   : > { %1731 = vrot.lane.b32.xlu0 %v11572_v10, %s12513_s2 }
 0x453   : > { %v1623_v25 = vpop.xlane.xlu1 %1622 }
 0x454   : > { %v1625_v26 = vsub.f32 %v1615_v20, %v1623_v25  ;;  %v1619_v27 = vpop.xlane.xlu0 %1618 }
 0x455   : > { %v1624_v28 = vsub.f32 %v1614_v22, %v1619_v27 }
 0x456   : > { %v1628_v29 = vmul.f32 1.442695, %v1625_v26 }
 0x457   : > { %v1626_v30 = vmul.f32 1.442695, %v1624_v28  ;;  %v10353_v31 = vpop.permute.xlu1 %10352 }
 0x458   : > { %10496 = vpow2.f32 %v1628_v29  ;;  %v10355_v32 = vunpack.i.h.bf16 %v10353_v31  ;;  %v10354_v33 = vunpack.i.l.bf16 %v10353_v31  ;;  %v1732_v51 = vpop.permute.xlu0 %1731 }
 0x459   : > { %10498 = vpow2.f32 %v1626_v30 }
 0x45a   : > { %v9822_v35 = vpack.c.bf16 %v10355_v32, %v10354_v33 }
 0x45b   : > { %v10358_v36 = vpop.permute.xlu1 %10357 }
 0x45c   : > { %v10360_v37 = vunpack.i.h.bf16 %v10358_v36  ;;  %v10359_v38 = vunpack.i.l.bf16 %v10358_v36  ;;  %9824 = vmatprep.subr.msk.bf16.mxu1 %vm11604_vm7, %v9822_v35 }
 0x45d   : > { %9827 = vmatpush3.bf16.msk.msra.mxu1 %vm11604_vm7, %v9822_v35 }
 0x45e   : > { %v9828_v39 = vpack.c.bf16 %v10360_v37, %v10359_v38 }
 0x460   : > { %9830 = vmatprep.subr.msk.bf16.mxu1 %vm11586_vm2, %v9828_v39 }
 0x462   : > { %v10497_v40 = vpop.eup %10496 }
 0x463   : > { %v1633_v41 = vsel %vm1620_vm3, %v10497_v40, 0.0  ;;  %v10499_v42 = vpop.eup %10498 }
 0x464   : > { %1634 = vadd.xlane.f32.xlu1 %v1633_v41  ;;  %v1630_v43 = vsel %vm1616_vm4, %v10499_v42, 0.0 }
 0x468   : > { %1631 = vadd.xlane.f32.xlu1 %v1630_v43 }
 0x479   : > { %1729 = vrot.lane.b32.xlu1 %v11574_v12, %s12513_s2  ;;  %s12626_s2 = sld [smem:[#allocation41_spill]] }
 0x4f1   : > { %v1635_v44 = vpop.xlane.xlu1 %1634 }
 0x4f2   : > { %10500 = vrcp.f32 %v1635_v44 }
 0x4f5   : > { %v1632_v45 = vpop.xlane.xlu1 %1631 }
 0x4f6   : > { %10502 = vrcp.f32 %v1632_v45 }
 0x4f9   : > { %v1730_v50 = vpop.permute.xlu1 %1729 }
 0x4fc   : > { %v10501_v46 = vpop.eup %10500 }
 0x4fd   : > { %v1639_v49 = vmul.f32 %v10501_v46, %v10497_v40 }
 0x500   : > { %v10503_v47 = vpop.eup %10502 }
 0x501   : > { %v1638_v48 = vmul.f32 %v10503_v47, %v10499_v42 }
 0x503   : > { %9241 = vmatprep.mubr.msk.f32.mxu1 %vm1616_vm4, %v1638_v48 }
 0x504   : > { %9242 = vmatmul.mubr.msk.f32.vlgmr.msra.gmra.mrb[2].mxu1 %vm1616_vm4, %v1639_v49 }
 0x505   : > { %9833 = vmatpush3.bf16.xpose.msk.msra.mxu1 %vm11586_vm2, %v9828_v39  ;;  %9248 = vmatprep.mubr.msk.f32.mxu1 %vm1530_vm1, %v1730_v50 }
 0x50c   : > { %9249 = vmatmul.mubr.msk.f32.vlgmr.msra.gmra.mrb[4].mxu1 %vm1530_vm1, %v1732_v51 }
 0x5d7   : > { %v11624_v52 = vpop.f32.mrb[2].mxu1 }
 0x5d8   : > { %v11626_v53 = vpop.f32.mrb[3].mxu1 }
 0x5df   : > { %v9250_v54 = vpop.f32.mrb[4].mxu1 }
 0x5e0   : > { %v1821_v55 = vmul.f32 0.35355338, %v9250_v54  ;;  %v1811_v56 = vpop.f32.mrb[5].mxu1 }
 0x5e1   : > { %v1820_v57 = vmul.f32 0.35355338, %v1811_v56 }
 0x5e2   : > { %v1825_v58 = vsel %vm1620_vm3, %v1821_v55, -inf }
 0x5e3   : > { %1826 = vmax.xlane.f32.xlu0 %v1825_v58  ;;  %v1822_v59 = vsel %vm1616_vm4, %v1820_v57, -inf }
 0x5e4   : > { %1823 = vmax.xlane.f32.xlu1 %v1822_v59 }
 0x5f5   : > { %10362 = vrot.lane.b32.xlu1 %v11580_v13, %s12507_s18  ;;  %s12623_s18 = sld [smem:[#allocation36_spill]] }
 0x5f9   : > { %10367 = vrot.lane.b32.xlu0 %v11580_v13, %s12509_s28  ;;  %1932 = vrot.lane.b32.xlu1 %v11574_v12, %s12505_s11  ;;  %s12624_s28 = sld [smem:[#allocation38_spill]] }
 0x670   : > { %v1827_v60 = vpop.xlane.xlu0 %1826 }
 0x671   : > { %v1829_v61 = vsub.f32 %v1821_v55, %v1827_v60  ;;  %v1824_v62 = vpop.xlane.xlu1 %1823 }
 0x672   : > { %v1828_v63 = vsub.f32 %v1820_v57, %v1824_v62 }
 0x673   : > { %v1832_v0 = vmul.f32 1.442695, %v1829_v61 }
 0x674   : > { %v1830_v1 = vmul.f32 1.442695, %v1828_v63  ;;  %v10368_v2 = vpop.permute.xlu0 %10367 }
 0x675   : > { %10504 = vpow2.f32 %v1832_v0  ;;  %v10363_v3 = vpop.permute.xlu1 %10362  ;;  %v10370_v4 = vunpack.i.h.bf16 %v10368_v2  ;;  %v10369_v6 = vunpack.i.l.bf16 %v10368_v2 }
 0x676   : > { %v10365_v8 = vunpack.i.h.bf16 %v10363_v3  ;;  %v10364_v9 = vunpack.i.l.bf16 %v10363_v3  ;;  %10506 = vpow2.f32 %v1830_v1 }
 0x677   : > { %v9840_v14 = vpack.c.bf16 %v10370_v4, %v10369_v6 }
 0x678   : > { %v9834_v11 = vpack.c.bf16 %v10365_v8, %v10364_v9 }
 0x679   : > { %v1933_v20 = vpop.permute.xlu1 %1932 }
 0x67a   : > { %9836 = vmatprep.subr.msk.bf16.mxu0 %vm11604_vm7, %v9834_v11 }
 0x67b   : > { %9839 = vmatpush3.bf16.msk.msra.mxu0 %vm11604_vm7, %v9834_v11 }
 0x67c   : > { %9842 = vmatprep.subr.msk.bf16.mxu0 %vm11586_vm2, %v9840_v14 }
 0x67f   : > { %v10505_v15 = vpop.eup %10504 }
 0x680   : > { %v1837_v16 = vsel %vm1620_vm3, %v10505_v15, 0.0  ;;  %v10507_v18 = vpop.eup %10506 }
 0x681   : > { %1838 = vadd.xlane.f32.xlu1 %v1837_v16  ;;  %v1834_v19 = vsel %vm1616_vm4, %v10507_v18, 0.0 }
 0x685   : > { %1835 = vadd.xlane.f32.xlu1 %v1834_v19 }
 0x696   : > { %1934 = vrot.lane.b32.xlu1 %v11572_v10, %s12505_s11  ;;  %s12622_s11 = sld [smem:[#allocation35_spill]] }
 0x70e   : > { %v1839_v21 = vpop.xlane.xlu1 %1838 }
 0x70f   : > { %10508 = vrcp.f32 %v1839_v21 }
 0x712   : > { %v1836_v22 = vpop.xlane.xlu1 %1835 }
 0x713   : > { %10510 = vrcp.f32 %v1836_v22 }
 0x716   : > { %v1935_v27 = vpop.permute.xlu1 %1934 }
 0x719   : > { %v10509_v23 = vpop.eup %10508 }
 0x71a   : > { %v1843_v26 = vmul.f32 %v10509_v23, %v10505_v15 }
 0x71d   : > { %v10511_v24 = vpop.eup %10510 }
 0x71e   : > { %v1842_v25 = vmul.f32 %v10511_v24, %v10507_v18 }
 0x720   : > { %9255 = vmatprep.mubr.msk.f32.mxu0 %vm1616_vm4, %v1842_v25 }
 0x721   : > { %9256 = vmatmul.mubr.msk.f32.vlgmr.msra.gmra.mrb[2].mxu0 %vm1616_vm4, %v1843_v26 }
 0x722   : > { %9845 = vmatpush3.bf16.xpose.msk.msra.mxu0 %vm11586_vm2, %v9840_v14  ;;  %9262 = vmatprep.mubr.msk.f32.mxu0 %vm1530_vm1, %v1933_v20 }
 0x729   : > { %9263 = vmatmul.mubr.msk.f32.vlgmr.msra.gmra.mrb[4].mxu0 %vm1530_vm1, %v1935_v27 }
 0x7f4   : > { %v11652_v28 = vpop.f32.mrb[2].mxu0 }
 0x7f5   : > { %v11654_v29 = vpop.f32.mrb[3].mxu0 }
 0x7fc   : > { %v9264_v30 = vpop.f32.mrb[4].mxu0 }
 0x7fd   : > { %v2024_v31 = vmul.f32 0.35355338, %v9264_v30  ;;  %v2014_v32 = vpop.f32.mrb[5].mxu0 }
 0x7fe   : > { %v2023_v33 = vmul.f32 0.35355338, %v2014_v32 }
 0x7ff   : > { %v2028_v35 = vsel %vm1620_vm3, %v2024_v31, -inf }
 0x800   : > { %2029 = vmax.xlane.f32.xlu0 %v2028_v35  ;;  %v2025_v36 = vsel %vm1616_vm4, %v2023_v33, -inf }
 0x801   : > { %2026 = vmax.xlane.f32.xlu1 %v2025_v36 }
 0x88d   : > { %v2030_v37 = vpop.xlane.xlu0 %2029 }
 0x88e   : > { %v2032_v38 = vsub.f32 %v2024_v31, %v2030_v37  ;;  %v2027_v39 = vpop.xlane.xlu1 %2026 }
 0x88f   : > { %v2031_v40 = vsub.f32 %v2023_v33, %v2027_v39 }
 0x890   : > { %v2035_v41 = vmul.f32 1.442695, %v2032_v38 }
 0x891   : > { %v2033_v42 = vmul.f32 1.442695, %v2031_v40 }
 0x892   : > { %10512 = vpow2.f32 %v2035_v41 }
 0x893   : > { %10514 = vpow2.f32 %v2033_v42 }
 0x89c   : > { %v10513_v43 = vpop.eup %10512 }
 0x89d   : > { %v10515_v44 = vpop.eup %10514  ;;  %v2040_v45 = vsel %vm1620_vm3, %v10513_v43, 0.0 }
 0x89e   : > { %2041 = vadd.xlane.f32.xlu1 %v2040_v45  ;;  %v2037_v46 = vsel %vm1616_vm4, %v10515_v44, 0.0 }
 0x89f   : > { %2038 = vadd.xlane.f32.xlu0 %v2037_v46 }
 0x8af   : > { %10377 = vrot.lane.b32.xlu1 %v11580_v13, %s12495_s4  ;;  %s12618_s4 = sld [smem:[#allocation33_spill]] }
 0x8b3   : > { %2135 = vrot.lane.b32.xlu1 %v11574_v12, %s12493_s15 }
 0x8b5   : > { %10372 = vrot.lane.b32.xlu0 %v11580_v13, %s12491_s10  ;;  %s12499_s10 = smov 40   ;;  %v2370_v32 = vld [vmem:[%s12618_s4] sm:$0xff]  ;;  %v2371_v33 = vld [vmem:[%s12618_s4 + $0x8] sm:$0xff]  ;;  %v2372_v35 = vld [vmem:[%s12618_s4 + $0x10] sm:$0xff] }
 0x8b6   : > { %v9864_v36 = vpack.c.bf16 %v2371_v33, %v2370_v32  ;;  %v2373_v37 = vld [vmem:[%s12618_s4 + $0x18] sm:$0xff]  ;;  %v8706_v33 = vld [vmem:[%s12623_s18] ss:$0 sm:$0xff] }
 0x8b7   : > { %v9868_v38 = vpack.c.bf16 %v2373_v37, %v2372_v35 }
 0x8b9   : > { %2137 = vrot.lane.b32.xlu0 %v11572_v10, %s12493_s15  ;;  %s12497_s15 = smov 16  }
 0x92b   : > { %v2042_v47 = vpop.xlane.xlu1 %2041 }
 0x92c   : > { %10516 = vrcp.f32 %v2042_v47  ;;  %v2039_v48 = vpop.xlane.xlu0 %2038 }
 0x92d   : > { %10518 = vrcp.f32 %v2039_v48 }
 0x92f   : > { %v10378_v49 = vpop.permute.xlu1 %10377 }
 0x930   : > { %v10373_v50 = vpop.permute.xlu0 %10372  ;;  %v10380_v51 = vunpack.i.h.bf16 %v10378_v49  ;;  %v10379_v54 = vunpack.i.l.bf16 %v10378_v49 }
 0x931   : > { %v10375_v55 = vunpack.i.h.bf16 %v10373_v50  ;;  %v10374_v56 = vunpack.i.l.bf16 %v10373_v50 }
 0x932   : > { %v9852_v58 = vpack.c.bf16 %v10380_v51, %v10379_v54 }
 0x933   : > { %v9846_v57 = vpack.c.bf16 %v10375_v55, %v10374_v56  ;;  %v2136_v61 = vpop.permute.xlu1 %2135 }
 0x934   : > { %v2138_v62 = vpop.permute.xlu0 %2137 }
 0x935   : > { %9848 = vmatprep.subr.msk.bf16.mxu1 %vm11604_vm7, %v9846_v57 }
 0x936   : > { %v10517_v12 = vpop.eup %10516  ;;  %9851 = vmatpush3.bf16.msk.msra.mxu1 %vm11604_vm7, %v9846_v57 }
 0x937   : > { %v10519_v10 = vpop.eup %10518  ;;  %9854 = vmatprep.subr.msk.bf16.mxu1 %vm11586_vm2, %v9852_v58  ;;  %v2046_v60 = vmul.f32 %v10517_v12, %v10513_v43 }
 0x938   : > { %v2045_v59 = vmul.f32 %v10519_v10, %v10515_v44 }
 0x93a   : > { %9269 = vmatprep.mubr.msk.f32.mxu1 %vm1616_vm4, %v2045_v59 }
 0x93b   : > { %9270 = vmatmul.mubr.msk.f32.vlgmr.msra.gmra.mrb[6].mxu1 %vm1616_vm4, %v2046_v60 }
 0x93c   : > { %9276 = vmatprep.mubr.msk.f32.mxu1 %vm1530_vm1, %v2136_v61 }
 0x93f   : > { %9857 = vmatpush3.bf16.xpose.msk.msra.mxu1 %vm11586_vm2, %v9852_v58 }
 0x946   : > { %9277 = vmatmul.mubr.msk.f32.vlgmr.msra.gmra.mrb[8].mxu1 %vm1530_vm1, %v2138_v62 }
 0xa0e   : > { %v9271_v63 = vpop.f32.mrb[6].mxu1 }
 0xa0f   : > { %v2126_v0 = vpop.f32.mrb[7].mxu1 }
 0xa19   : > { %v9278_v1 = vpop.f32.mrb[8].mxu1 }
 0xa1a   : > { %v2227_v2 = vmul.f32 0.35355338, %v9278_v1  ;;  %v2217_v3 = vpop.f32.mrb[9].mxu1 }
 0xa1b   : > { %v2226_v4 = vmul.f32 0.35355338, %v2217_v3 }
 0xa1c   : > { %v2231_v6 = vsel %vm1620_vm3, %v2227_v2, -inf }
 0xa1d   : > { %2232 = vmax.xlane.f32.xlu0 %v2231_v6  ;;  %v2228_v8 = vsel %vm1616_vm4, %v2226_v4, -inf }
 0xa1e   : > { %2229 = vmax.xlane.f32.xlu1 %v2228_v8 }
 0xaaa   : > { %v2233_v9 = vpop.xlane.xlu0 %2232 }
 0xaab   : > { %v2235_v11 = vsub.f32 %v2227_v2, %v2233_v9  ;;  %v2230_v14 = vpop.xlane.xlu1 %2229 }
 0xaac   : > { %v2234_v15 = vsub.f32 %v2226_v4, %v2230_v14 }
 0xaad   : > { %v2238_v16 = vmul.f32 1.442695, %v2235_v11 }
 0xaae   : > { %v2236_v18 = vmul.f32 1.442695, %v2234_v15 }
 0xaaf   : > { %10520 = vpow2.f32 %v2238_v16 }
 0xab0   : > { %10522 = vpow2.f32 %v2236_v18 }
 0xab9   : > { %v10521_v19 = vpop.eup %10520 }
 0xaba   : > { %v10523_v20 = vpop.eup %10522  ;;  %v2243_v21 = vsel %vm1620_vm3, %v10521_v19, 0.0 }
 0xabb   : > { %2244 = vadd.xlane.f32.xlu1 %v2243_v21  ;;  %v2240_v22 = vsel %vm1616_vm4, %v10523_v20, 0.0 }
 0xabc   : > { %2241 = vadd.xlane.f32.xlu0 %v2240_v22 }
 0xacc   : > { %2340 = vrot.lane.b32.xlu1 %v11654_v29, %s12503_s22 }
 0xad0   : > { %2342 = vrot.lane.b32.xlu1 %v11652_v28, %s12503_s22  ;;  %s12621_s22 = sld [smem:[#allocation39_spill]] }
 0xad2   : > { %10382 = vrot.lane.b32.xlu0 %v11580_v13, %s12499_s10  ;;  %s12619_s10 = sld [smem:[#allocation34_spill]] }
 0xad4   : > { %2350 = vrot.lane.b32.xlu1 %v9271_v63, %s12497_s15 }
 0xad6   : > { %2348 = vrot.lane.b32.xlu0 %v2126_v0, %s12497_s15  ;;  %s12501_s15 = smov 24   ;;  %v2604_v15 = vld [vmem:[%s12621_s22] sm:$0xff]  ;;  %v2605_v16 = vld [vmem:[%s12621_s22 + $0x8] sm:$0xff]  ;;  %v2606_v18 = vld [vmem:[%s12621_s22 + $0x10] sm:$0xff] }
 0xad7   : > { %v2608_v22 = vld [vmem:[%s12621_s22 + $0x20] sm:$0xff] }
 0xad8   : > { %v8702_v55 = vld [vmem:[%s12619_s10] ss:$0 sm:$0xff] }
 0xb48   : > { %v2245_v23 = vpop.xlane.xlu1 %2244 }
 0xb49   : > { %10524 = vrcp.f32 %v2245_v23  ;;  %v2242_v24 = vpop.xlane.xlu0 %2241  ;;  %v2609_v23 = vld [vmem:[%s12621_s22 + $0x28] sm:$0xff] }
 0xb4a   : > { %10526 = vrcp.f32 %v2242_v24  ;;  %v9888_v24 = vpack.c.bf16 %v2609_v23, %v2608_v22 }
 0xb4c   : > { %v2341_v41 = vpop.permute.xlu1 %2340 }
 0xb4d   : > { %v10383_v25 = vpop.permute.xlu0 %10382  ;;  %v2362_v45 = vsel %vm1530_vm1, %v11626_v53, %v2341_v41  ;;  %v2610_v41 = vld [vmem:[%s12621_s22 + $0x30] sm:$0xff] }
 0xb4e   : > { %v10385_v26 = vunpack.i.h.bf16 %v10383_v25  ;;  %v10384_v27 = vunpack.i.l.bf16 %v10383_v25 }
 0xb50   : > { %v9858_v28 = vpack.c.bf16 %v10385_v26, %v10384_v27  ;;  %v2343_v42 = vpop.permute.xlu1 %2342 }
 0xb51   : > { %v2349_v44 = vpop.permute.xlu0 %2348  ;;  %v2363_v47 = vsel %vm1530_vm1, %v11624_v52, %v2343_v42  ;;  %v2611_v42 = vld [vmem:[%s12621_s22 + $0x38] sm:$0xff] }
 0xb52   : > { %9860 = vmatprep.subr.msk.bf16.mxu0 %vm11604_vm7, %v9858_v28  ;;  %v2365_v48 = vsel %vm2364_vm8, %v2362_v45, %v2349_v44  ;;  %v8707_v44 = vld [vmem:[%s12624_s28] ss:$0 sm:$0xff] }
 0xb53   : > { %v10525_v13 = vpop.eup %10524  ;;  %9863 = vmatpush3.bf16.msk.msra.mxu0 %vm11604_vm7, %v9858_v28 }
 0xb54   : > { %v10527_v29 = vpop.eup %10526  ;;  %v2249_v31 = vmul.f32 %v10525_v13, %v10521_v19  ;;  %9865 = vmatprep.subr.bf16.mxu0 %v9864_v36  ;;  %v2351_v43 = vpop.permute.xlu1 %2350  ;;  %v9880_v19 = vpack.c.bf16 %v2605_v16, %v2604_v15 }
 0xb55   : > { %v2248_v30 = vmul.f32 %v10527_v29, %v10523_v20  ;;  %v2366_v50 = vsel %vm2364_vm8, %v2363_v47, %v2351_v43  ;;  %v2607_v20 = vld [vmem:[%s12621_s22 + $0x18] sm:$0xff]  ;;  %v9892_v43 = vpack.c.bf16 %v2611_v42, %v2610_v41 }
 0xb56   : > { %v9884_v21 = vpack.c.bf16 %v2607_v20, %v2606_v18 }
 0xb57   : > { %9283 = vmatprep.mubr.msk.f32.mxu0 %vm1616_vm4, %v2248_v30 }
 0xb58   : > { %9284 = vmatmul.mubr.msk.f32.vlgmr.msra.gmra.mrb[6].mxu0 %vm1616_vm4, %v2249_v31  ;;  %v8705_v31 = vld [vmem:[%s12622_s11] ss:$0 sm:$0xff] }
 0xb59   : > { %9867 = vmatpush3.bf16.msra.mxu0 %v9864_v36 }
 0xb5a   : > { %9869 = vmatprep.subr.bf16.mxu0 %v9868_v38 }
 0xb5d   : > { %9871 = vmatpush3.bf16.msra.mxu0 %v9868_v38 }
 0xb5e   : > { %9881 = vmatprep.subr.bf16.mxu0 %v9880_v19 }
 0xc2b   : > { %v9285_v39 = vpop.f32.mrb[6].mxu0 }
 0xc2c   : > { %2358 = vrot.lane.b32.xlu1 %v9285_v39, %s12501_s15  ;;  %v2329_v40 = vpop.f32.mrb[7].mxu0 }
 0xc2d   : > { %2356 = vrot.lane.b32.xlu0 %v2329_v40, %s12501_s15  ;;  %s12620_s15 = sld [smem:[#allocation37_spill]] }
 0xc33   : > { %v2510_v4 = vld [vmem:[%s12620_s15] sm:$0xff]  ;;  %v2511_v6 = vld [vmem:[%s12620_s15 + $0x8] sm:$0xff]  ;;  %v2512_v8 = vld [vmem:[%s12620_s15 + $0x10] sm:$0xff] }
 0xc34   : > { %v9872_v9 = vpack.c.bf16 %v2511_v6, %v2510_v4  ;;  %v2513_v11 = vld [vmem:[%s12620_s15 + $0x18] sm:$0xff]  ;;  %v8717_v4 = vld [vmem:[%s12581_s17 + $0x30] sm:$0xff] }
 0xc35   : > { %v9876_v14 = vpack.c.bf16 %v2513_v11, %v2512_v8  ;;  %v8718_v8 = vld [vmem:[%s12581_s17 + $0x38] sm:$0xff] }
 0xc36   : > { %9873 = vmatprep.subr.bf16.mxu1 %v9872_v9 }
 0xc37   : > { %9875 = vmatpush3.bf16.msra.mxu1 %v9872_v9  ;;  %v9900_v9 = vpack.c.bf16 %v8718_v8, %v8717_v4 }
 0xc38   : > { %9877 = vmatprep.subr.bf16.mxu1 %v9876_v14 }
 0xc3b   : > { %9879 = vmatpush3.bf16.msra.mxu1 %v9876_v14 }
 0xc9e   : > { %v2359_v46 = vpop.permute.xlu1 %2358 }
 0xc9f   : > { %v2357_v49 = vpop.permute.xlu0 %2356  ;;  %v2369_v54 = vsel %vm2367_vm9, %v2366_v50, %v2359_v46 }
 0xca0   : > { %v2368_v51 = vsel %vm2367_vm9, %v2365_v48, %v2357_v49 }
 0xca1   : > { %9294 = vmatprep.mubr.msk.f32.mxu0 %vm1442_vm0, %v2368_v51  ;;  %v8710_v51 = vld [vmem:[%s12625_s16] ss:$0 sm:$0xff] }
 0xca2   : > { %9295 = vmatmul.mubr.msk.f32.vlgmr.msra.gmra.mrb[8].mxu0 %vm1442_vm0, %v2369_v54 }
 0xca3   : > { %9883 = vmatpush3.bf16.msra.mxu0 %v9880_v19 }
 0xca4   : > { %9885 = vmatprep.subr.bf16.mxu0 %v9884_v21 }
 0xca7   : > { %9887 = vmatpush3.bf16.msra.mxu0 %v9884_v21  ;;  %v8713_v21 = vld [vmem:[%s12626_s2] ss:$0 sm:$0xff] }
 0xca8   : > { %9889 = vmatprep.subr.bf16.mxu0 %v9888_v24 }
 0xcab   : > { %9891 = vmatpush3.bf16.msra.mxu0 %v9888_v24 }
 0xcac   : > { %9893 = vmatprep.subr.bf16.mxu0 %v9892_v43 }
 0xcaf   : > { %9895 = vmatpush3.bf16.msra.mxu0 %v9892_v43 }
 0xd75   : > { %v9296_v56 = vpop.f32.mrb[8].mxu0 }
 0xd76   : > { %v2459_v53 = vadd.f32 %v9296_v56, %v8702_v55  ;;  %v2453_v57 = vpop.f32.mrb[9].mxu0 }
 0xd77   : > { %v2454_v58 = vadd.f32 %v8702_v55, %v2453_v57 }
 0xd78   : > { %v2463_v52 = vadd.f32 %v2459_v53, %v11567_v7 }
 0xd79   : > { %v2462_v12 = vadd.f32 %v2454_v58, %v11563_v5 }
 0xd7a   : > { %v2470_v10 = vsel %vm2469_vm10, %v2463_v52, 0.0 }
 0xd7b   : > { %2471 = vadd.xlane.f32.xlu1 %v2470_v10  ;;  %v2466_v59 = vsel %vm1442_vm0, %v2462_v12, 0.0 }
 0xd7c   : > { %2467 = vadd.xlane.f32.xlu0 %v2466_v59 }
 0xe08   : > { %v2472_v60 = vpop.xlane.xlu1 %2471 }
 0xe09   : > { %v2475_v61 = vmul.f32 0.03125, %v2472_v60  ;;  %v2468_v62 = vpop.xlane.xlu0 %2467 }
 0xe0a   : > { %v2474_v63 = vmul.f32 0.03125, %v2468_v62 }
 0xe0b   : > { %v2477_v0 = vsub.f32 %v2463_v52, %v2475_v61 }
 0xe0c   : > { %v2476_v1 = vsub.f32 %v2462_v12, %v2474_v63 }
 0xe0d   : > { %v2479_v7 = vmul.f32 %v2477_v0, %v2477_v0 }
 0xe0e   : > { %v2478_v2 = vmul.f32 %v2476_v1, %v2476_v1 }
 0xe0f   : > { %v2483_v3 = vsel %vm2469_vm10, %v2479_v7, 0.0  ;;  %v8715_v7 = vld [vmem:[%s12581_s17 + $0x20] sm:$0xff] }
 0xe10   : > { %v2480_v5 = vsel %vm1442_vm0, %v2478_v2, 0.0 }
 0xe11   : > { %2481 = vadd.xlane.f32.xlu0 %v2480_v5 }
 0xe15   : > { %2484 = vadd.xlane.f32.xlu0 %v2483_v3  ;;  %v8716_v3 = vld [vmem:[%s12581_s17 + $0x28] sm:$0xff]  ;;  %s12638_s17 = smov 40  }
 0xe16   : > { %v9896_v6 = vpack.c.bf16 %v8716_v3, %v8715_v7 }
 0xe18   : > { %9897 = vmatprep.subr.bf16.mxu1 %v9896_v6 }
 0xe9e   : > { %v2482_v25 = vpop.xlane.xlu0 %2481 }
 0xe9f   : > { %v2486_v26 = vmul.f32 0.03125, %v2482_v25  ;;  %v8714_v25 = vld [vmem:[%s12627_s26] ss:$0 sm:$0xff] }
 0xea1   : > { %v2488_v27 = vadd.f32 1e-05, %v2486_v26 }
 0xea2   : > { %v2485_v28 = vpop.xlane.xlu0 %2484 }
 0xea3   : > { %10528 = vrsqrt.f32 %v2488_v27  ;;  %v2487_v13 = vmul.f32 0.03125, %v2485_v28 }
 0xea5   : > { %v2489_v29 = vadd.f32 1e-05, %v2487_v13 }
 0xea7   : > { %10530 = vrsqrt.f32 %v2489_v29  ;;  %v8720_v29 = vld [vmem:[%s12613_s1 + $0x1] ss:$0 sm:$0xff]  ;;  %s12629_s1 = smov 120  }
 0xead   : > { %v10529_v30 = vpop.eup %10528 }
 0xeae   : > { %v2492_v32 = vmul.f32 %v10529_v30, %v2476_v1 }
 0xeb0   : > { %v2500_v35 = vmul.f32 %v8705_v31, %v2492_v32 }
 0xeb1   : > { %v10531_v36 = vpop.eup %10530 }
 0xeb2   : > { %v2493_v37 = vmul.f32 %v10531_v36, %v2477_v0  ;;  %v2508_v38 = vadd.f32 %v8706_v33, %v2500_v35 }
 0xeb4   : > { %v2501_v39 = vmul.f32 %v8705_v31, %v2493_v37  ;;  %9305 = vmatprep.mubr.msk.f32.mxu1 %vm1442_vm0, %v2508_v38 }
 0xeb6   : > { %v2509_v40 = vadd.f32 %v8706_v33, %v2501_v39 }
 0xeb8   : > { %9306 = vmatmul.mubr.msk.f32.vlgmr.msra.gmra.mrb[10].mxu1 %vm1442_vm0, %v2509_v40 }
 0xeb9   : > { %9899 = vmatpush3.bf16.msra.mxu1 %v9896_v6 }
 0xeba   : > { %9901 = vmatprep.subr.bf16.mxu1 %v9900_v9 }
 0xebd   : > { %9903 = vmatpush3.bf16.msra.mxu1 %v9900_v9 }
 0xf8b   : > { %v9307_v45 = vpop.f32.mrb[10].mxu1 }
 0xf8c   : > { %v2599_v46 = vadd.f32 %v9307_v45, %v8707_v44  ;;  %v2593_v47 = vpop.f32.mrb[11].mxu1 }
 0xf8d   : > { %v2594_v48 = vadd.f32 %v8707_v44, %v2593_v47 }
 0xf8e   : > { %v2603_v50 = vmax.f32 %v2599_v46, 0.0 }
 0xf8f   : > { %v2602_v49 = vmax.f32 %v2594_v48, 0.0 }
 0xf91   : > { %9324 = vmatprep.mubr.msk.f32.mxu0 %vm2619_vm11, %v2602_v49 }
 0xf92   : > { %9325 = vmatmul.mubr.msk.f32.vlgmr.msra.gmra.mrb[10].mxu0 %vm2619_vm11, %v2603_v50 }
0x1065   : > { %v9326_v54 = vpop.f32.mrb[10].mxu0 }
0x1066   : > { %v2698_v55 = vadd.f32 %v9326_v54, %v8710_v51  ;;  %v2692_v56 = vpop.f32.mrb[11].mxu0 }
0x1067   : > { %v2693_v53 = vadd.f32 %v8710_v51, %v2692_v56 }
0x1068   : > { %v2702_v57 = vadd.f32 %v2698_v55, %v2509_v40 }
0x1069   : > { %v2701_v58 = vadd.f32 %v2693_v53, %v2508_v38 }
0x106a   : > { %v2708_v52 = vsel %vm2469_vm10, %v2702_v57, 0.0 }
0x106b   : > { %2709 = vadd.xlane.f32.xlu0 %v2708_v52  ;;  %v2705_v12 = vsel %vm1442_vm0, %v2701_v58, 0.0 }
0x106c   : > { %2706 = vadd.xlane.f32.xlu1 %v2705_v12 }
0x10f8   : > { %v2710_v10 = vpop.xlane.xlu0 %2709 }
0x10f9   : > { %v2712_v59 = vmul.f32 0.03125, %v2710_v10  ;;  %v2707_v60 = vpop.xlane.xlu1 %2706 }
0x10fa   : > { %v2711_v61 = vmul.f32 0.03125, %v2707_v60 }
0x10fb   : > { %v2714_v62 = vsub.f32 %v2702_v57, %v2712_v59 }
0x10fc   : > { %v2713_v63 = vsub.f32 %v2701_v58, %v2711_v61 }
0x10fd   : > { %v2716_v0 = vmul.f32 %v2714_v62, %v2714_v62 }
0x10fe   : > { %v2715_v1 = vmul.f32 %v2713_v63, %v2713_v63 }
0x10ff   : > { %v2720_v2 = vsel %vm2469_vm10, %v2716_v0, 0.0 }
0x1100   : > { %2721 = vadd.xlane.f32.xlu0 %v2720_v2  ;;  %v2717_v5 = vsel %vm1442_vm0, %v2715_v1, 0.0 }
0x1101   : > { %2718 = vadd.xlane.f32.xlu1 %v2717_v5 }
0x118d   : > { %v2722_v11 = vpop.xlane.xlu0 %2721 }
0x118e   : > { %v2724_v14 = vmul.f32 0.03125, %v2722_v11  ;;  %v2719_v15 = vpop.xlane.xlu1 %2718 }
0x118f   : > { %v2723_v16 = vmul.f32 0.03125, %v2719_v15 }
0x1190   : > { %v2726_v18 = vadd.f32 1e-05, %v2724_v14 }
0x1191   : > { %v2725_v19 = vadd.f32 1e-05, %v2723_v16 }
0x1192   : > { %10532 = vrsqrt.f32 %v2726_v18 }
0x1193   : > { %10534 = vrsqrt.f32 %v2725_v19 }
0x119c   : > { %v10533_v20 = vpop.eup %10532 }
0x119d   : > { %v10535_v22 = vpop.eup %10534  ;;  %v2730_v23 = vmul.f32 %v10533_v20, %v2714_v62 }
0x119e   : > { %v2729_v24 = vmul.f32 %v10535_v22, %v2713_v63 }
0x119f   : > { %v2738_v26 = vmul.f32 %v8713_v21, %v2730_v23 }
0x11a0   : > { %v2737_v27 = vmul.f32 %v8713_v21, %v2729_v24 }
0x11a1   : > { %v11753_v13 = vadd.f32 %v8714_v25, %v2738_v26 }
0x11a2   : > { %v11751_v28 = vadd.f32 %v8714_v25, %v2737_v27 }
0x11a4   : > { %9335 = vmatprep.mubr.msk.f32.mxu1 %vm1442_vm0, %v11751_v28 }
0x11a5   : > { %9336 = vmatmul.mubr.msk.f32.vlgmr.msra.gmra.mrb[12].mxu1 %vm1442_vm0, %v11753_v13 }
0x1278   : > { %v9337_v30 = vpop.f32.mrb[12].mxu1 }
0x1279   : > { %v11760_v31 = vadd.f32 %v9337_v30, %v8720_v29  ;;  %v2832_v32 = vpop.f32.mrb[13].mxu1 }
0x127a   : > { %v11762_v33 = vadd.f32 %v8720_v29, %v2832_v32 }
0x127c   : > { %9342 = vmatprep.mubr.msk.f32.mxu1 %vm1530_vm1, %v11762_v33  ;;  %v11768_v35 = vpack.i.bf16 %v11760_v31, %v11762_v33 }
0x127e   : > { %10392 = vrot.lane.b32.xlu0 %v11768_v35, %s12519_s23  ;;  %10387 = vrot.lane.b32.xlu1 %v11768_v35, %s12628_s3  ;;  %s12630_s23 = smov 64  }
0x1282   : > { %3042 = vrot.lane.b32.xlu1 %v11762_v33, %s12629_s1 }
0x1286   : > { %3044 = vrot.lane.b32.xlu1 %v11760_v31, %s12629_s1 }
0x12f0   : > { %v10393_v36 = vpop.permute.xlu0 %10392  ;;  %v10388_v37 = vpop.permute.xlu1 %10387 }
0x12f1   : > { %v10395_v38 = vunpack.i.h.bf16 %v10393_v36  ;;  %v10394_v39 = vunpack.i.l.bf16 %v10393_v36  ;;  %v10390_v40 = vunpack.i.h.bf16 %v10388_v37  ;;  %v10389_v41 = vunpack.i.l.bf16 %v10388_v37 }
0x12f3   : > { %v9904_v42 = vpack.c.bf16 %v10390_v40, %v10389_v41  ;;  %v9916_v43 = vpack.c.bf16 %v10395_v38, %v10394_v39 }
0x12f4   : > { %v3043_v44 = vpop.permute.xlu1 %3042 }
0x12f5   : > { %9906 = vmatprep.subr.msk.bf16.mxu1 %vm11586_vm2, %v9904_v42 }
0x12f6   : > { %9909 = vmatpush3.bf16.xpose.msk.msra.mxu1 %vm11586_vm2, %v9904_v42 }
0x12f7   : > { %9918 = vmatprep.subr.msk.bf16.mxu1 %vm11586_vm2, %v9916_v43 }
0x12f8   : > { %v3045_v45 = vpop.permute.xlu1 %3044 }
0x12fd   : > { %9343 = vmatmul.mubr.msk.f32.vlgmr.msra.gmra.mrb[14].mxu1 %vm1530_vm1, %v11760_v31 }
0x12fe   : > { %9921 = vmatpush3.bf16.xpose.msk.msra.mxu1 %vm11586_vm2, %v9916_v43  ;;  %9356 = vmatprep.mubr.msk.f32.mxu1 %vm1530_vm1, %v3043_v44 }
0x1305   : > { %9357 = vmatmul.mubr.msk.f32.vlgmr.msra.gmra.mrb[16].mxu1 %vm1530_vm1, %v3045_v45 }
0x13d0   : > { %v9344_v46 = vpop.f32.mrb[14].mxu1 }
0x13d1   : > { %v2931_v47 = vmul.f32 0.35355338, %v9344_v46  ;;  %v2921_v48 = vpop.f32.mrb[15].mxu1 }
0x13d2   : > { %v2930_v49 = vmul.f32 0.35355338, %v2921_v48 }
0x13d3   : > { %v2935_v50 = vsel %vm1620_vm3, %v2931_v47, -inf }
0x13d4   : > { %2936 = vmax.xlane.f32.xlu1 %v2935_v50  ;;  %v2932_v51 = vsel %vm1616_vm4, %v2930_v49, -inf }
0x13d5   : > { %2933 = vmax.xlane.f32.xlu0 %v2932_v51 }
0x13d8   : > { %v9358_v54 = vpop.f32.mrb[16].mxu1 }
0x13d9   : > { %v3124_v55 = vpop.f32.mrb[17].mxu1  ;;  %v3134_v53 = vmul.f32 0.35355338, %v9358_v54 }
0x13da   : > { %v3133_v56 = vmul.f32 0.35355338, %v3124_v55 }
0x13db   : > { %v3138_v58 = vsel %vm1620_vm3, %v3134_v53, -inf }
0x13dc   : > { %v3135_v57 = vsel %vm1616_vm4, %v3133_v56, -inf }
0x13dd   : > { %3136 = vmax.xlane.f32.xlu0 %v3135_v57 }
0x13e1   : > { %3139 = vmax.xlane.f32.xlu0 %v3138_v58 }
0x13e5   : > { %10397 = vrot.lane.b32.xlu1 %v11768_v35, %s12630_s23 }
0x1461   : > { %v2937_v52 = vpop.xlane.xlu1 %2936 }
0x1462   : > { %v2939_v12 = vsub.f32 %v2931_v47, %v2937_v52  ;;  %v2934_v10 = vpop.xlane.xlu0 %2933 }
0x1463   : > { %v2938_v59 = vsub.f32 %v2930_v49, %v2934_v10 }
0x1464   : > { %v2942_v60 = vmul.f32 1.442695, %v2939_v12 }
0x1465   : > { %v2940_v61 = vmul.f32 1.442695, %v2938_v59  ;;  %v10398_v62 = vpop.permute.xlu1 %10397 }
0x1466   : > { %10536 = vpow2.f32 %v2942_v60  ;;  %v10400_v63 = vunpack.i.h.bf16 %v10398_v62  ;;  %v10399_v0 = vunpack.i.l.bf16 %v10398_v62 }
0x1467   : > { %10538 = vpow2.f32 %v2940_v61 }
0x1468   : > { %v9910_v1 = vpack.c.bf16 %v10400_v63, %v10399_v0 }
0x146a   : > { %9912 = vmatprep.subr.msk.bf16.mxu0 %vm11604_vm7, %v9910_v1  ;;  %v3137_v2 = vpop.xlane.xlu0 %3136 }
0x146b   : > { %9915 = vmatpush3.bf16.msk.msra.mxu0 %vm11604_vm7, %v9910_v1  ;;  %v3141_v15 = vsub.f32 %v3133_v56, %v3137_v2 }
0x146d   : > { %v3143_v16 = vmul.f32 1.442695, %v3141_v15 }
0x146e   : > { %v3140_v5 = vpop.xlane.xlu0 %3139 }
0x146f   : > { %v3142_v7 = vsub.f32 %v3134_v53, %v3140_v5 }
0x1470   : > { %v10537_v3 = vpop.eup %10536 }
0x1471   : > { %v10539_v4 = vpop.eup %10538  ;;  %v3145_v6 = vmul.f32 1.442695, %v3142_v7  ;;  %v2947_v8 = vsel %vm1620_vm3, %v10537_v3, 0.0 }
0x1472   : > { %2948 = vadd.xlane.f32.xlu0 %v2947_v8  ;;  %v2944_v9 = vsel %vm1616_vm4, %v10539_v4, 0.0 }
0x1473   : > { %10540 = vpow2.f32 %v3145_v6  ;;  %2945 = vadd.xlane.f32.xlu1 %v2944_v9 }
0x1474   : > { %10542 = vpow2.f32 %v3143_v16 }
0x147d   : > { %v10541_v11 = vpop.eup %10540 }
0x147e   : > { %v3150_v14 = vsel %vm1620_vm3, %v10541_v11, 0.0  ;;  %v10543_v18 = vpop.eup %10542 }
0x147f   : > { %3151 = vadd.xlane.f32.xlu0 %v3150_v14  ;;  %v3147_v19 = vsel %vm1616_vm4, %v10543_v18, 0.0 }
0x1484   : > { %10407 = vrot.lane.b32.xlu1 %v11768_v35, %s12631_s5 }
0x1495   : > { %10402 = vrot.lane.b32.xlu0 %v11768_v35, %s12632_s6 }
0x1499   : > { %3247 = vrot.lane.b32.xlu0 %v11760_v31, %s12633_s8 }
0x14a8   : > { %3148 = vadd.xlane.f32.xlu1 %v3147_v19 }
0x14b9   : > { %3245 = vrot.lane.b32.xlu1 %v11762_v33, %s12633_s8 }
0x14ff   : > { %v2949_v20 = vpop.xlane.xlu0 %2948 }
0x1500   : > { %10544 = vrcp.f32 %v2949_v20  ;;  %v2946_v21 = vpop.xlane.xlu1 %2945 }
0x1501   : > { %10546 = vrcp.f32 %v2946_v21 }
0x1504   : > { %v10408_v27 = vpop.permute.xlu1 %10407 }
0x1505   : > { %v10410_v30 = vunpack.i.h.bf16 %v10408_v27  ;;  %v10409_v32 = vunpack.i.l.bf16 %v10408_v27 }
0x1507   : > { %v9928_v39 = vpack.c.bf16 %v10410_v30, %v10409_v32 }
0x150a   : > { %v10545_v22 = vpop.eup %10544 }
0x150b   : > { %v10547_v23 = vpop.eup %10546  ;;  %v2953_v26 = vmul.f32 %v10545_v22, %v10537_v3 }
0x150c   : > { %v3152_v24 = vpop.xlane.xlu0 %3151  ;;  %v2952_v25 = vmul.f32 %v10547_v23, %v10539_v4 }
0x150d   : > { %10548 = vrcp.f32 %v3152_v24 }
0x150e   : > { %9349 = vmatprep.mubr.msk.f32.mxu0 %vm1616_vm4, %v2952_v25 }
0x150f   : > { %9350 = vmatmul.mubr.msk.f32.vlgmr.msra.gmra.mrb[12].mxu0 %vm1616_vm4, %v2953_v26 }
0x1510   : > { %v10403_v29 = vpop.permute.xlu0 %10402 }
0x1511   : > { %v10405_v36 = vunpack.i.h.bf16 %v10403_v29  ;;  %v10404_v37 = vunpack.i.l.bf16 %v10403_v29 }
0x1513   : > { %v9922_v38 = vpack.c.bf16 %v10405_v36, %v10404_v37 }
0x1514   : > { %v3248_v46 = vpop.permute.xlu0 %3247 }
0x1515   : > { %9924 = vmatprep.subr.msk.bf16.mxu0 %vm11604_vm7, %v9922_v38 }
0x1516   : > { %9927 = vmatpush3.bf16.msk.msra.mxu0 %vm11604_vm7, %v9922_v38 }
0x1517   : > { %9930 = vmatprep.subr.msk.bf16.mxu0 %vm11586_vm2, %v9928_v39  ;;  %v10549_v41 = vpop.eup %10548 }
0x1518   : > { %v3156_v44 = vmul.f32 %v10549_v41, %v10541_v11 }
0x1535   : > { %v3149_v40 = vpop.xlane.xlu1 %3148 }
0x1536   : > { %10550 = vrcp.f32 %v3149_v40 }
0x1539   : > { %v3246_v45 = vpop.permute.xlu1 %3245 }
0x1540   : > { %v10551_v42 = vpop.eup %10550 }
0x1541   : > { %v3155_v43 = vmul.f32 %v10551_v42, %v10543_v18 }
0x1543   : > { %9363 = vmatprep.mubr.msk.f32.mxu0 %vm1616_vm4, %v3155_v43 }
0x1544   : > { %9364 = vmatmul.mubr.msk.f32.vlgmr.msra.gmra.mrb[14].mxu0 %vm1616_vm4, %v3156_v44 }
0x1545   : > { %9933 = vmatpush3.bf16.xpose.msk.msra.mxu0 %vm11586_vm2, %v9928_v39  ;;  %9370 = vmatprep.mubr.msk.f32.mxu0 %vm1530_vm1, %v3246_v45 }
0x154c   : > { %9371 = vmatmul.mubr.msk.f32.vlgmr.msra.gmra.mrb[16].mxu0 %vm1530_vm1, %v3248_v46 }
0x15e2   : > { %v11826_v47 = vpop.f32.mrb[12].mxu0 }
0x15e3   : > { %v11828_v48 = vpop.f32.mrb[13].mxu0 }
0x1617   : > { %v11830_v49 = vpop.f32.mrb[14].mxu0 }
0x1618   : > { %v11832_v50 = vpop.f32.mrb[15].mxu0 }
0x161f   : > { %v9372_v51 = vpop.f32.mrb[16].mxu0 }
0x1620   : > { %v3337_v54 = vmul.f32 0.35355338, %v9372_v51  ;;  %v3327_v55 = vpop.f32.mrb[17].mxu0 }
0x1621   : > { %v3336_v56 = vmul.f32 0.35355338, %v3327_v55  ;;  %v8751_v55 = vld [vmem:[%s12618_s4 + $0x20] sm:$0xff] }
0x1622   : > { %v3341_v53 = vsel %vm1620_vm3, %v3337_v54, -inf }
0x1623   : > { %3342 = vmax.xlane.f32.xlu0 %v3341_v53  ;;  %v3338_v57 = vsel %vm1616_vm4, %v3336_v56, -inf  ;;  %v8753_v53 = vld [vmem:[%s12618_s4 + $0x30] sm:$0xff] }
0x1624   : > { %3339 = vmax.xlane.f32.xlu1 %v3338_v57 }
0x16b0   : > { %v3343_v58 = vpop.xlane.xlu0 %3342 }
0x16b1   : > { %v3345_v52 = vsub.f32 %v3337_v54, %v3343_v58  ;;  %v3340_v12 = vpop.xlane.xlu1 %3339  ;;  %v8754_v58 = vld [vmem:[%s12618_s4 + $0x38] sm:$0xff] }
0x16b2   : > { %v3344_v10 = vsub.f32 %v3336_v56, %v3340_v12  ;;  %v8752_v56 = vld [vmem:[%s12618_s4 + $0x28] sm:$0xff]  ;;  %s12641_s4 = sld [smem:[#allocation45_spill]] }
0x16b3   : > { %v3348_v59 = vmul.f32 1.442695, %v3345_v52  ;;  %v9952_v57 = vpack.c.bf16 %v8752_v56, %v8751_v55  ;;  %v9956_v52 = vpack.c.bf16 %v8754_v58, %v8753_v53  ;;  %v8761_v55 = vld [vmem:[%s12622_s11 + $0x1] ss:$0 sm:$0xff]  ;;  %s12535_s11 = sshll.u32 %s12657_s0, 3 }
0x16b4   : > { %v3346_v60 = vmul.f32 1.442695, %v3344_v10  ;;  %v8762_v53 = vld [vmem:[%s12623_s18 + $0x1] ss:$0 sm:$0xff]  ;;  %s12643_s18 = sld [smem:[#allocation46_spill]] }
0x16b5   : > { %10552 = vpow2.f32 %v3348_v59 }
0x16b6   : > { %10554 = vpow2.f32 %v3346_v60 }
0x16bf   : > { %v10553_v61 = vpop.eup %10552 }
0x16c0   : > { %v10555_v62 = vpop.eup %10554  ;;  %v3353_v63 = vsel %vm1620_vm3, %v10553_v61, 0.0 }
0x16c1   : > { %3354 = vadd.xlane.f32.xlu1 %v3353_v63  ;;  %v3350_v0 = vsel %vm1616_vm4, %v10555_v62, 0.0 }
0x16c2   : > { %3351 = vadd.xlane.f32.xlu0 %v3350_v0 }
0x16d2   : > { %10417 = vrot.lane.b32.xlu1 %v11768_v35, %s12634_s9 }
0x16d6   : > { %3448 = vrot.lane.b32.xlu1 %v11762_v33, %s12635_s12 }
0x16d8   : > { %10412 = vrot.lane.b32.xlu0 %v11768_v35, %s12636_s13 }
0x16dc   : > { %3450 = vrot.lane.b32.xlu0 %v11760_v31, %s12635_s12 }
0x174e   : > { %v3355_v1 = vpop.xlane.xlu1 %3354 }
0x174f   : > { %10556 = vrcp.f32 %v3355_v1  ;;  %v3352_v2 = vpop.xlane.xlu0 %3351 }
0x1750   : > { %10558 = vrcp.f32 %v3352_v2 }
0x1752   : > { %v10418_v5 = vpop.permute.xlu1 %10417 }
0x1753   : > { %v10413_v7 = vpop.permute.xlu0 %10412  ;;  %v10420_v3 = vunpack.i.h.bf16 %v10418_v5  ;;  %v10419_v4 = vunpack.i.l.bf16 %v10418_v5 }
0x1754   : > { %v10415_v6 = vunpack.i.h.bf16 %v10413_v7  ;;  %v10414_v8 = vunpack.i.l.bf16 %v10413_v7 }
0x1755   : > { %v9940_v11 = vpack.c.bf16 %v10420_v3, %v10419_v4 }
0x1756   : > { %v9934_v9 = vpack.c.bf16 %v10415_v6, %v10414_v8  ;;  %v3449_v16 = vpop.permute.xlu1 %3448  ;;  %v8756_v6 = vld [vmem:[%s12619_s10 + $0x1] ss:$0 sm:$0xff]  ;;  %s12642_s10 = sld [smem:[#allocation29_spill]] }
0x1757   : > { %v3451_v18 = vpop.permute.xlu0 %3450 }
0x1758   : > { %9936 = vmatprep.subr.msk.bf16.mxu1 %vm11604_vm7, %v9934_v9 }
0x1759   : > { %v10557_v33 = vpop.eup %10556  ;;  %9939 = vmatpush3.bf16.msk.msra.mxu1 %vm11604_vm7, %v9934_v9 }
0x175a   : > { %v10559_v31 = vpop.eup %10558  ;;  %9942 = vmatprep.subr.msk.bf16.mxu1 %vm11586_vm2, %v9940_v11  ;;  %v3359_v15 = vmul.f32 %v10557_v33, %v10553_v61 }
0x175b   : > { %v3358_v14 = vmul.f32 %v10559_v31, %v10555_v62 }
0x175d   : > { %9377 = vmatprep.mubr.msk.f32.mxu1 %vm1616_vm4, %v3358_v14 }
0x175e   : > { %9378 = vmatmul.mubr.msk.f32.vlgmr.msra.gmra.mrb[18].mxu1 %vm1616_vm4, %v3359_v15 }
0x175f   : > { %9384 = vmatprep.mubr.msk.f32.mxu1 %vm1530_vm1, %v3449_v16 }
0x1762   : > { %9945 = vmatpush3.bf16.xpose.msk.msra.mxu1 %vm11586_vm2, %v9940_v11 }
0x1769   : > { %9385 = vmatmul.mubr.msk.f32.vlgmr.msra.gmra.mrb[20].mxu1 %vm1530_vm1, %v3451_v18 }
0x1831   : > { %v9379_v19 = vpop.f32.mrb[18].mxu1 }
0x1832   : > { %v3439_v20 = vpop.f32.mrb[19].mxu1 }
0x183c   : > { %v9386_v21 = vpop.f32.mrb[20].mxu1 }
0x183d   : > { %v3540_v22 = vmul.f32 0.35355338, %v9386_v21  ;;  %v3530_v23 = vpop.f32.mrb[21].mxu1 }
0x183e   : > { %v3539_v24 = vmul.f32 0.35355338, %v3530_v23 }
0x183f   : > { %v3544_v25 = vsel %vm1620_vm3, %v3540_v22, -inf }
0x1840   : > { %3545 = vmax.xlane.f32.xlu0 %v3544_v25  ;;  %v3541_v26 = vsel %vm1616_vm4, %v3539_v24, -inf  ;;  %v8764_v25 = vld [vmem:[%s12620_s15 + $0x28] sm:$0xff] }
0x1841   : > { %3542 = vmax.xlane.f32.xlu1 %v3541_v26  ;;  %v8765_v26 = vld [vmem:[%s12620_s15 + $0x30] sm:$0xff] }
0x18cd   : > { %v3546_v27 = vpop.xlane.xlu0 %3545 }
0x18ce   : > { %v3548_v29 = vsub.f32 %v3540_v22, %v3546_v27  ;;  %v3543_v30 = vpop.xlane.xlu1 %3542 }
0x18cf   : > { %v3547_v32 = vsub.f32 %v3539_v24, %v3543_v30  ;;  %v8763_v24 = vld [vmem:[%s12620_s15 + $0x20] sm:$0xff] }
0x18d0   : > { %v3551_v36 = vmul.f32 1.442695, %v3548_v29  ;;  %v9960_v27 = vpack.c.bf16 %v8764_v25, %v8763_v24  ;;  %v8766_v29 = vld [vmem:[%s12620_s15 + $0x38] sm:$0xff]  ;;  %s1424_s15 = scalar_lea.vmem %s12642_s10, %s12535_s11  ;;  %s12645_s10 = sld [smem:[#allocation30_spill]] }
0x18d1   : > { %v3549_v37 = vmul.f32 1.442695, %v3547_v32  ;;  %v9964_v30 = vpack.c.bf16 %v8766_v29, %v8765_v26  ;;  %v11103_v32 = vmov 0.0|0.0   ;;  %s12646_s11 = sld [smem:[#allocation47_spill]] }
0x18d2   : > { %10560 = vpow2.f32 %v3551_v36  ;;  %9961 = vmatprep.subr.bf16.mxu1 %v9960_v27  ;;  %v8771_v36 = vld [vmem:[%s12621_s22 + $0x40] sm:$0xff] }
0x18d3   : > { %10562 = vpow2.f32 %v3549_v37  ;;  %9963 = vmatpush3.bf16.msra.mxu1 %v9960_v27  ;;  %v8772_v37 = vld [vmem:[%s12621_s22 + $0x48] sm:$0xff] }
0x18d4   : > { %9965 = vmatprep.subr.bf16.mxu1 %v9964_v30 }
0x18d6   : > { %v4110_v25 = vld [vmem:[%s12645_s10] sm:$0x3f] }
0x18d7   : > { %9967 = vmatpush3.bf16.msra.mxu1 %v9964_v30 }
0x18d8   : > { %9984 = vmatprep.subr.bf16.mxu1 %v11103_v32 }
0x18dc   : > { %v10561_v38 = vpop.eup %10560 }
0x18dd   : > { %v10563_v39 = vpop.eup %10562  ;;  %v3556_v40 = vsel %vm1620_vm3, %v10561_v38, 0.0  ;;  %vm4971_vm3 = vcmask 259072  }
0x18de   : > { %3557 = vadd.xlane.f32.xlu1 %v3556_v40  ;;  %v3553_v41 = vsel %vm1616_vm4, %v10563_v39, 0.0  ;;  %v8774_v40 = vld [vmem:[%s12621_s22 + $0x58] sm:$0xff] }
0x18df   : > { %3554 = vadd.xlane.f32.xlu0 %v3553_v41 }
0x18ef   : > { %3653 = vrot.lane.b32.xlu1 %v11832_v50, %s12637_s14 }
0x18f3   : > { %3655 = vrot.lane.b32.xlu1 %v11830_v49, %s12637_s14 }
0x18f5   : > { %10422 = vrot.lane.b32.xlu0 %v11768_v35, %s12638_s17 }
0x18f7   : > { %3663 = vrot.lane.b32.xlu1 %v9379_v19, %s12639_s19 }
0x18f9   : > { %3661 = vrot.lane.b32.xlu0 %v3439_v20, %s12639_s19 }
0x196b   : > { %v3558_v42 = vpop.xlane.xlu1 %3557 }
0x196c   : > { %10564 = vrcp.f32 %v3558_v42  ;;  %v3555_v43 = vpop.xlane.xlu0 %3554  ;;  %v8775_v42 = vld [vmem:[%s12621_s22 + $0x60] sm:$0xff] }
0x196d   : > { %10566 = vrcp.f32 %v3555_v43  ;;  %v8776_v43 = vld [vmem:[%s12621_s22 + $0x68] sm:$0xff] }
0x196f   : > { %v3654_v59 = vpop.permute.xlu1 %3653 }
0x1970   : > { %v10423_v44 = vpop.permute.xlu0 %10422  ;;  %v3675_v63 = vsel %vm1530_vm1, %v11828_v48, %v3654_v59  ;;  %v4112_v59 = vld [vmem:[%s12641_s4 + $0x8] sm:$0xff] }
0x1971   : > { %v10425_v45 = vunpack.i.h.bf16 %v10423_v44  ;;  %v10424_v46 = vunpack.i.l.bf16 %v10423_v44  ;;  %v9976_v44 = vpack.c.bf16 %v8776_v43, %v8775_v42 }
0x1973   : > { %v9946_v50 = vpack.c.bf16 %v10425_v45, %v10424_v46  ;;  %v3656_v60 = vpop.permute.xlu1 %3655 }
0x1974   : > { %v3662_v62 = vpop.permute.xlu0 %3661  ;;  %v3676_v1 = vsel %vm1530_vm1, %v11826_v47, %v3656_v60 }
0x1975   : > { %9948 = vmatprep.subr.msk.bf16.mxu0 %vm11604_vm7, %v9946_v50  ;;  %v3677_v2 = vsel %vm2364_vm8, %v3675_v63, %v3662_v62  ;;  %v4113_v63 = vld [vmem:[%s12641_s4 + $0x10] sm:$0xff] }
0x1976   : > { %v10565_v35 = vpop.eup %10564  ;;  %9951 = vmatpush3.bf16.msk.msra.mxu0 %vm11604_vm7, %v9946_v50 }
0x1977   : > { %v10567_v49 = vpop.eup %10566  ;;  %v3562_v54 = vmul.f32 %v10565_v35, %v10561_v38  ;;  %9953 = vmatprep.subr.bf16.mxu0 %v9952_v57  ;;  %v3664_v61 = vpop.permute.xlu1 %3663  ;;  %v8773_v38 = vld [vmem:[%s12621_s22 + $0x50] sm:$0xff] }
0x1978   : > { %v3561_v51 = vmul.f32 %v10567_v49, %v10563_v39  ;;  %v3678_v7 = vsel %vm2364_vm8, %v3676_v1, %v3664_v61  ;;  %v9968_v39 = vpack.c.bf16 %v8772_v37, %v8771_v36  ;;  %v9972_v41 = vpack.c.bf16 %v8774_v40, %v8773_v38 }
0x197a   : > { %9391 = vmatprep.mubr.msk.f32.mxu0 %vm1616_vm4, %v3561_v51 }
0x197b   : > { %9392 = vmatmul.mubr.msk.f32.vlgmr.msra.gmra.mrb[18].mxu0 %vm1616_vm4, %v3562_v54 }
0x197c   : > { %9955 = vmatpush3.bf16.msra.mxu0 %v9952_v57 }
0x197d   : > { %9957 = vmatprep.subr.bf16.mxu0 %v9956_v52 }
0x1980   : > { %9959 = vmatpush3.bf16.msra.mxu0 %v9956_v52 }
0x1981   : > { %9969 = vmatprep.subr.bf16.mxu0 %v9968_v39 }
0x1a4e   : > { %v9393_v12 = vpop.f32.mrb[18].mxu0 }
0x1a4f   : > { %3671 = vrot.lane.b32.xlu1 %v9393_v12, %s12640_s20  ;;  %v3642_v10 = vpop.f32.mrb[19].mxu0 }
0x1a50   : > { %3669 = vrot.lane.b32.xlu0 %v3642_v10, %s12640_s20  ;;  %v4111_v10 = vld [vmem:[%s12641_s4] sm:$0xff] }
0x1a51   : > { %v9985_v61 = vpack.c.bf16 %v4112_v59, %v4111_v10 }
0x1ac1   : > { %v3672_v0 = vpop.permute.xlu1 %3671 }
0x1ac2   : > { %v3670_v5 = vpop.permute.xlu0 %3669  ;;  %v3680_v4 = vsel %vm2367_vm9, %v3678_v7, %v3672_v0  ;;  %v4114_v0 = vld [vmem:[%s12641_s4 + $0x18] sm:$0xff]  ;;  %v8777_v7 = vld [vmem:[%s12621_s22 + $0x70] sm:$0xff] }
0x1ac3   : > { %v3679_v3 = vsel %vm2367_vm9, %v3677_v2, %v3670_v5  ;;  %v9988_v1 = vpack.c.bf16 %v4114_v0, %v4113_v63  ;;  %v11105_v2 = vmov 0.0   ;;  %v11931_v5 = vld [vmem:[%s1424_s15] sm:$0x3f]  ;;  %s12644_s15 = smov 88  }
0x1ac4   : > { %9402 = vmatprep.mubr.msk.f32.mxu0 %vm1442_vm0, %v3679_v3  ;;  %v8778_v3 = vld [vmem:[%s12621_s22 + $0x78] sm:$0xff]  ;;  %s12649_s22 = sld [smem:[#allocation43_spill]] }
0x1ac5   : > { %9403 = vmatmul.mubr.msk.f32.vlgmr.msra.gmra.mrb[20].mxu0 %vm1442_vm0, %v3680_v4  ;;  %v9980_v4 = vpack.c.bf16 %v8778_v3, %v8777_v7 }
0x1ac6   : > { %9971 = vmatpush3.bf16.msra.mxu0 %v9968_v39 }
0x1ac7   : > { %9973 = vmatprep.subr.bf16.mxu0 %v9972_v41 }
0x1aca   : > { %9975 = vmatpush3.bf16.msra.mxu0 %v9972_v41 }
0x1acb   : > { %9977 = vmatprep.subr.bf16.mxu0 %v9976_v44 }
0x1ace   : > { %9979 = vmatpush3.bf16.msra.mxu0 %v9976_v44 }
0x1acf   : > { %9981 = vmatprep.subr.bf16.mxu0 %v9980_v4 }
0x1ad2   : > { %9983 = vmatpush3.bf16.msra.mxu0 %v9980_v4 }
0x1ad3   : > { %9456 = vmatprep.subr.mxu0 %v11105_v2 }
0x1b98   : > { %v9404_v8 = vpop.f32.mrb[20].mxu0 }
0x1b99   : > { %v3772_v48 = vadd.f32 %v9404_v8, %v8756_v6  ;;  %v3766_v9 = vpop.f32.mrb[21].mxu0 }
0x1b9a   : > { %v3767_v11 = vadd.f32 %v8756_v6, %v3766_v9  ;;  %v8768_v6 = vld [vmem:[%s12624_s28 + $0x1] ss:$0 sm:$0xff] }
0x1b9b   : > { %v3776_v47 = vadd.f32 %v3772_v48, %v11753_v13 }
0x1b9c   : > { %v3775_v33 = vadd.f32 %v3767_v11, %v11751_v28 }
0x1b9d   : > { %v3784_v31 = vsel %vm2469_vm10, %v3776_v47, 0.0 }
0x1b9e   : > { %3785 = vadd.xlane.f32.xlu1 %v3784_v31  ;;  %v3781_v14 = vsel %vm1442_vm0, %v3775_v33, 0.0  ;;  %v8789_v31 = vld [vmem:[%s12643_s18] ss:$0 sm:$0xff] }
0x1b9f   : > { %3782 = vadd.xlane.f32.xlu0 %v3781_v14 }
0x1c2b   : > { %v3786_v15 = vpop.xlane.xlu1 %3785 }
0x1c2c   : > { %v3788_v16 = vmul.f32 0.03125, %v3786_v15  ;;  %v3783_v18 = vpop.xlane.xlu0 %3782 }
0x1c2d   : > { %v3787_v19 = vmul.f32 0.03125, %v3783_v18 }
0x1c2e   : > { %v3790_v20 = vsub.f32 %v3776_v47, %v3788_v16 }
0x1c2f   : > { %v3789_v21 = vsub.f32 %v3775_v33, %v3787_v19 }
0x1c30   : > { %v3792_v28 = vmul.f32 %v3790_v20, %v3790_v20 }
0x1c31   : > { %v3791_v22 = vmul.f32 %v3789_v21, %v3789_v21 }
0x1c32   : > { %v3796_v23 = vsel %vm2469_vm10, %v3792_v28, 0.0 }
0x1c33   : > { %v3793_v13 = vsel %vm1442_vm0, %v3791_v22, 0.0 }
0x1c34   : > { %3794 = vadd.xlane.f32.xlu0 %v3793_v13 }
0x1c38   : > { %3797 = vadd.xlane.f32.xlu0 %v3796_v23 }
0x1cc1   : > { %v3795_v45 = vpop.xlane.xlu0 %3794 }
0x1cc2   : > { %v3799_v46 = vmul.f32 0.03125, %v3795_v45 }
0x1cc4   : > { %v3801_v50 = vadd.f32 1e-05, %v3799_v46 }
0x1cc5   : > { %v3798_v35 = vpop.xlane.xlu0 %3797 }
0x1cc6   : > { %10568 = vrsqrt.f32 %v3801_v50  ;;  %v3800_v49 = vmul.f32 0.03125, %v3798_v35 }
0x1cc8   : > { %v3802_v51 = vadd.f32 1e-05, %v3800_v49 }
0x1cca   : > { %10570 = vrsqrt.f32 %v3802_v51 }
0x1cd0   : > { %v10569_v54 = vpop.eup %10568 }
0x1cd1   : > { %v3805_v56 = vmul.f32 %v10569_v54, %v3789_v21 }
0x1cd3   : > { %v3813_v57 = vmul.f32 %v8761_v55, %v3805_v56 }
0x1cd4   : > { %v10571_v58 = vpop.eup %10570 }
0x1cd5   : > { %v3806_v52 = vmul.f32 %v10571_v58, %v3790_v20  ;;  %v11912_v12 = vadd.f32 %v8762_v53, %v3813_v57 }
0x1cd7   : > { %v3814_v60 = vmul.f32 %v8761_v55, %v3806_v52  ;;  %9413 = vmatprep.mubr.msk.f32.mxu1 %vm1442_vm0, %v11912_v12 }
0x1cd9   : > { %v11918_v62 = vadd.f32 %v8762_v53, %v3814_v60 }
0x1cdb   : > { %9414 = vmatmul.mubr.msk.f32.vlgmr.msra.gmra.mrb[22].mxu1 %vm1442_vm0, %v11918_v62 }
0x1cdc   : > { %9986 = vmatpush3.bf16.msra.mxu1 %v9985_v61  ;;  %9443 = vmatprep.mubr.msk.f32.mxu1 %vm11104_vm12, %v11105_v2 }
0x1cdd   : > { %9987 = vmatprep.subr.bf16.mxu1 %v11103_v32 }
0x1ce0   : > { %9989 = vmatpush3.bf16.msra.mxu1 %v9988_v1 }
0x1ce1   : > { %9446 = vmatprep.subr.mxu1 %v11105_v2 }
0x1ce3   : > { %9444 = vmatmul.mubr.msk.f32.vlgmr.msra.gmra.mrb[24].mxu1 %vm1442_vm0, %v11931_v5 }
0x1ce4   : > { %9448 = vmatprep.mubr.msk.f32.mxu1 %vm11104_vm12, %v11105_v2 }
0x1dae   : > { %v9415_v8 = vpop.f32.mrb[22].mxu1 }
0x1daf   : > { %v3914_v48 = vadd.f32 %v9415_v8, %v8768_v6  ;;  %v3908_v9 = vpop.f32.mrb[23].mxu1 }
0x1db0   : > { %v3909_v11 = vadd.f32 %v8768_v6, %v3908_v9 }
0x1db1   : > { %v3918_v33 = vmax.f32 %v3914_v48, 0.0 }
0x1db2   : > { %v3917_v47 = vmax.f32 %v3909_v11, 0.0 }
0x1db4   : > { %9432 = vmatprep.mubr.msk.f32.mxu0 %vm2619_vm11, %v3917_v47 }
0x1db5   : > { %9433 = vmatmul.mubr.msk.f32.vlgmr.msra.gmra.mrb[22].mxu0 %vm2619_vm11, %v3918_v33 }
0x1db6   : > { %v4191_v14 = vpop.f32.mrb[24].mxu1  ;;  %9458 = vmatprep.mubr.msk.f32.mxu0 %vm11104_vm12, %v11105_v2 }
0x1db7   : > { %v11947_v15 = vadd.f32 %v8789_v31, %v4191_v14  ;;  %v9445_v16 = vpop.f32.mrb[25].mxu1 }
0x1db9   : > { %4367 = vrot.lane.b32.xlu0 %v11947_v15, %s12644_s15  ;;  %4196 = vrot.lane.b32.xlu1 %v11947_v15, %s12628_s3 }
0x1dbd   : > { %4533 = vrot.lane.b32.xlu0 %v11947_v15, %s12633_s8  ;;  %4365 = vrot.lane.b32.xlu1 %v11947_v15, %s12629_s1 }
0x1dc1   : > { %4701 = vrot.lane.b32.xlu0 %v11947_v15, %s12635_s12  ;;  %4535 = vrot.lane.b32.xlu1 %v11947_v15, %s12631_s5 }
0x1dc5   : > { %4703 = vrot.lane.b32.xlu1 %v11947_v15, %s12634_s9 }
0x1e2b   : > { %v4368_v18 = vpop.permute.xlu0 %4367  ;;  %v4197_v19 = vpop.permute.xlu1 %4196 }
0x1e2c   : > { %9447 = vmatpush3.xpose.msk.msra.mxu1 %vm1530_vm1, %v4197_v19  ;;  %9457 = vmatpush3.xpose.msk.msra.mxu0 %vm1530_vm1, %v4368_v18 }
0x1e2d   : > { %9466 = vmatprep.subr.mxu0 %v11105_v2  ;;  %9451 = vmatprep.subr.mxu1 %v11105_v2 }
0x1e2f   : > { %9449 = vmatmul.mubr.msk.f32.vlgmr.msra.gmra.mrb[26].mxu1 %vm1530_vm1, %v11947_v15  ;;  %v4366_v20 = vpop.permute.xlu1 %4365  ;;  %v4534_v22 = vpop.permute.xlu0 %4533 }
0x1e30   : > { %9459 = vmatmul.mubr.msk.f32.vlgmr.msra.gmra.mrb[24].mxu0 %vm1530_vm1, %v4366_v20  ;;  %9453 = vmatprep.mubr.msk.f32.mxu1 %vm11104_vm12, %v11105_v2 }
0x1e31   : > { %9468 = vmatprep.mubr.msk.f32.mxu0 %vm11104_vm12, %v11105_v2 }
0x1e33   : > { %v4536_v21 = vpop.permute.xlu1 %4535  ;;  %v4702_v28 = vpop.permute.xlu0 %4701 }
0x1e34   : > { %9467 = vmatpush3.xpose.msk.msra.mxu0 %vm1530_vm1, %v4536_v21 }
0x1e35   : > { %9476 = vmatprep.subr.mxu0 %v11105_v2 }
0x1e37   : > { %v4704_v13 = vpop.permute.xlu1 %4703  ;;  %9469 = vmatmul.mubr.msk.f32.vlgmr.msra.gmra.mrb[26].mxu0 %vm1530_vm1, %v4534_v22 }
0x1e38   : > { %9477 = vmatpush3.xpose.msk.msra.mxu0 %vm1530_vm1, %v4704_v13  ;;  %9478 = vmatprep.mubr.msk.f32.mxu0 %vm11104_vm12, %v11105_v2 }
0x1e39   : > { %9990 = vmatprep.subr.bf16.mxu0 %v11103_v32 }
0x1e3b   : > { %9479 = vmatmul.mubr.msk.f32.vlgmr.msra.gmra.mrb[28].mxu0 %vm1530_vm1, %v4702_v28 }
0x1e3c   : > { %9494 = vmatprep.mubr.msk.f32.mxu0 %vm11104_vm12, %v11105_v2 }
0x1e88   : > { %v11984_v23 = vpop.f32.mrb[22].mxu0 }
0x1e89   : > { %v11986_v24 = vpop.f32.mrb[23].mxu0 }
0x1f02   : > { %v4268_v26 = vpop.f32.mrb[26].mxu1 }
0x1f03   : > { %v4272_v27 = vmul.f32 0.35355338, %v4268_v26  ;;  %v9450_v29 = vpop.f32.mrb[27].mxu1  ;;  %v4439_v30 = vpop.f32.mrb[24].mxu0 }
0x1f04   : > { %v4443_v36 = vmul.f32 0.35355338, %v4439_v30  ;;  %v9460_v37 = vpop.f32.mrb[25].mxu0  ;;  %v4885_v29 = vld [vmem:[%s12646_s11 + $0x8] sm:$0xff] }
0x1f05   : > { %v4273_v38 = vadd.f32 %v4272_v27, %v4110_v25  ;;  %v4884_v27 = vld [vmem:[%s12646_s11] sm:$0xff] }
0x1f06   : > { %v4444_v39 = vadd.f32 %v4443_v36, %v4110_v25  ;;  %v9991_v30 = vpack.c.bf16 %v4885_v29, %v4884_v27 }
0x1f07   : > { %v4275_v40 = vsel %vm4274_vm13, %v4273_v38, -inf }
0x1f08   : > { %4276 = vmax.xlane.f32.xlu1 %v4275_v40  ;;  %v4445_v41 = vsel %vm4274_vm13, %v4444_v39, -inf  ;;  %9992 = vmatpush3.bf16.msra.mxu0 %v9991_v30  ;;  %v4886_v40 = vld [vmem:[%s12646_s11 + $0x10] sm:$0xff] }
0x1f09   : > { %4446 = vmax.xlane.f32.xlu0 %v4445_v41  ;;  %9993 = vmatprep.subr.bf16.mxu0 %v11103_v32  ;;  %v4887_v41 = vld [vmem:[%s12646_s11 + $0x18] sm:$0xff] }
0x1f0a   : > { %v4607_v42 = vpop.f32.mrb[26].mxu0 }
0x1f0b   : > { %v4611_v43 = vmul.f32 0.35355338, %v4607_v42  ;;  %v9470_v44 = vpop.f32.mrb[27].mxu0  ;;  %v9994_v42 = vpack.c.bf16 %v4887_v41, %v4886_v40 }
0x1f0d   : > { %v4612_v45 = vadd.f32 %v4611_v43, %v4110_v25  ;;  %9995 = vmatpush3.bf16.msra.mxu0 %v9994_v42 }
0x1f0e   : > { %v4775_v46 = vpop.f32.mrb[28].mxu0 }
0x1f0f   : > { %v4779_v50 = vmul.f32 0.35355338, %v4775_v46  ;;  %v9480_v35 = vpop.f32.mrb[29].mxu0  ;;  %v4613_v49 = vsel %vm4274_vm13, %v4612_v45, -inf }
0x1f10   : > { %4614 = vmax.xlane.f32.xlu0 %v4613_v49 }
0x1f11   : > { %v4780_v51 = vadd.f32 %v4779_v50, %v4110_v25  ;;  %v8780_v50 = vld [vmem:[%s12625_s16 + $0x1] ss:$0 sm:$0xff]  ;;  %s12647_s16 = sld [smem:[#allocation48_spill]] }
0x1f12   : > { %v4009_v35 = vadd.f32 %v8780_v50, %v11986_v24 }
0x1f13   : > { %v4781_v54 = vsel %vm4274_vm13, %v4780_v51, -inf }
0x1f14   : > { %4782 = vmax.xlane.f32.xlu1 %v4781_v54  ;;  %v4017_v49 = vadd.f32 %v4009_v35, %v11912_v12  ;;  %v4014_v54 = vadd.f32 %v11984_v23, %v8780_v50 }
0x1f25   : > { %4456 = vrot.lane.b32.xlu1 %v11947_v15, %s12632_s6 }
0x1f95   : > { %v4277_v55 = vpop.xlane.xlu1 %4276 }
0x1f96   : > { %v4278_v56 = vsub.f32 %v4273_v38, %v4277_v55  ;;  %v4447_v53 = vpop.xlane.xlu0 %4446  ;;  %v4018_v55 = vadd.f32 %v4014_v54, %v11918_v62 }
0x1f97   : > { %v4448_v57 = vsub.f32 %v4444_v39, %v4447_v53 }
0x1f98   : > { %v4279_v58 = vmul.f32 1.442695, %v4278_v56  ;;  %v4026_v56 = vsel %vm2469_vm10, %v4018_v55, 0.0 }
0x1f99   : > { %v4449_v52 = vmul.f32 1.442695, %v4448_v57 }
0x1f9a   : > { %10572 = vpow2.f32 %v4279_v58 }
0x1f9b   : > { %10574 = vpow2.f32 %v4449_v52 }
0x1f9d   : > { %v4615_v4 = vpop.xlane.xlu0 %4614 }
0x1f9e   : > { %v4616_v6 = vsub.f32 %v4612_v45, %v4615_v4 }
0x1fa0   : > { %v4617_v8 = vmul.f32 1.442695, %v4616_v6 }
0x1fa1   : > { %v4783_v10 = vpop.xlane.xlu1 %4782 }
0x1fa2   : > { %v4784_v59 = vsub.f32 %v4780_v51, %v4783_v10  ;;  %v4023_v51 = vsel %vm1442_vm0, %v4017_v49, 0.0 }
0x1fa4   : > { %v10573_v60 = vpop.eup %10572  ;;  %v4785_v61 = vmul.f32 1.442695, %v4784_v59 }
0x1fa5   : > { %v10575_v63 = vpop.eup %10574  ;;  %v4281_v0 = vsel %vm4274_vm13, %v10573_v60, 0.0  ;;  %v4457_v11 = vpop.permute.xlu1 %4456 }
0x1fa6   : > { %10576 = vpow2.f32 %v4785_v61  ;;  %4282 = vadd.xlane.f32.xlu0 %v4281_v0  ;;  %v4451_v1 = vsel %vm4274_vm13, %v10575_v63, 0.0 }
0x1fa7   : > { %4452 = vadd.xlane.f32.xlu1 %v4451_v1  ;;  %10578 = vpow2.f32 %v4617_v8 }
0x1fb0   : > { %v10577_v7 = vpop.eup %10576 }
0x1fb1   : > { %v4787_v3 = vsel %vm4274_vm13, %v10577_v7, 0.0  ;;  %v10579_v48 = vpop.eup %10578 }
0x1fb2   : > { %4788 = vadd.xlane.f32.xlu1 %v4787_v3  ;;  %v4619_v9 = vsel %vm4274_vm13, %v10579_v48, 0.0 }
0x1fbc   : > { %4286 = vrot.lane.b32.xlu0 %v11947_v15, %s12630_s23 }
0x1fc3   : > { %4624 = vrot.lane.b32.xlu1 %v11947_v15, %s12636_s13 }
0x1fdb   : > { %4620 = vadd.xlane.f32.xlu0 %v4619_v9 }
0x1ff1   : > { %4792 = vrot.lane.b32.xlu0 %v11947_v15, %s12638_s17 }
0x2033   : > { %v4283_v47 = vpop.xlane.xlu0 %4282 }
0x2034   : > { %10580 = vrcp.f32 %v4283_v47  ;;  %v4453_v33 = vpop.xlane.xlu1 %4452 }
0x2035   : > { %10582 = vrcp.f32 %v4453_v33 }
0x2037   : > { %v4287_v31 = vpop.permute.xlu0 %4286 }
0x2038   : > { %9452 = vmatpush3.msk.msra.mxu1 %vm4292_vm14, %v4287_v31  ;;  %v8807_v31 = vld [vmem:[%s12647_s16] ss:$0 sm:$0xff] }
0x2039   : > { %9461 = vmatprep.subr.mxu1 %v11105_v2 }
0x203e   : > { %v10581_v14 = vpop.eup %10580 }
0x203f   : > { %v4285_v16 = vmul.f32 %v10581_v14, %v10573_v60  ;;  %v4789_v18 = vpop.xlane.xlu1 %4788  ;;  %v10583_v19 = vpop.eup %10582  ;;  %v8785_v14 = vld [vmem:[%s12626_s2 + $0x1] ss:$0 sm:$0xff]  ;;  %s12648_s2 = sld [smem:[#allocation51_spill]] }
0x2040   : > { %v4455_v15 = vmul.f32 %v10583_v19, %v10575_v63 }
0x2041   : > { %9454 = vmatmul.mubr.msk.f32.vlgmr.msra.gmra.mrb[28].mxu1 %vm4288_vm15, %v4285_v16 }
0x2042   : > { %9462 = vmatpush3.msk.msra.mxu1 %vm4292_vm14, %v4457_v11  ;;  %9463 = vmatprep.mubr.msk.f32.mxu1 %vm11104_vm12, %v11105_v2 }
0x2043   : > { %v4625_v20 = vpop.permute.xlu1 %4624  ;;  %9471 = vmatprep.subr.mxu1 %v11105_v2 }
0x2045   : > { %9464 = vmatmul.mubr.msk.f32.vlgmr.msra.gmra.mrb[30].mxu1 %vm4288_vm15, %v4455_v15 }
0x2046   : > { %9472 = vmatpush3.msk.msra.mxu1 %vm4292_vm14, %v4625_v20  ;;  %9473 = vmatprep.mubr.msk.f32.mxu1 %vm11104_vm12, %v11105_v2 }
0x2047   : > { %9481 = vmatprep.subr.mxu1 %v11105_v2 }
0x2068   : > { %v4621_v21 = vpop.xlane.xlu0 %4620 }
0x2069   : > { %10584 = vrcp.f32 %v4621_v21 }
0x206a   : > { %10586 = vrcp.f32 %v4789_v18  ;;  %v8786_v18 = vld [vmem:[%s12627_s26 + $0x1] ss:$0 sm:$0xff]  ;;  %s12650_s26 = sld [smem:[#allocation44_spill]] }
0x206c   : > { %v4793_v25 = vpop.permute.xlu0 %4792 }
0x2073   : > { %v10585_v22 = vpop.eup %10584 }
0x2074   : > { %v4623_v13 = vmul.f32 %v10585_v22, %v10579_v48  ;;  %v10587_v28 = vpop.eup %10586 }
0x2075   : > { %v4791_v26 = vmul.f32 %v10587_v28, %v10577_v7 }
0x2076   : > { %9474 = vmatmul.mubr.msk.f32.vlgmr.msra.gmra.mrb[32].mxu1 %vm4288_vm15, %v4623_v13 }
0x2077   : > { %9482 = vmatpush3.msk.msra.mxu1 %vm4292_vm14, %v4793_v25  ;;  %9483 = vmatprep.mubr.msk.f32.mxu1 %vm11104_vm12, %v11105_v2 }
0x2078   : > { %9996 = vmatprep.subr.bf16.mxu1 %v11103_v32 }
0x207a   : > { %9484 = vmatmul.mubr.msk.f32.vlgmr.msra.gmra.mrb[34].mxu1 %vm4288_vm15, %v4791_v26 }
0x207b   : > { %9505 = vmatprep.mubr.msk.f32.mxu1 %vm11104_vm12, %v11105_v2 }
0x2114   : > { %v4361_v36 = vpop.f32.mrb[28].mxu1 }
0x2115   : > { %v9455_v37 = vpop.f32.mrb[29].mxu1 }
0x2118   : > { %v4529_v38 = vpop.f32.mrb[30].mxu1 }
0x2119   : > { %4870 = vrot.lane.b32.xlu1 %v4529_v38, %s12637_s14  ;;  %v9465_v39 = vpop.f32.mrb[31].mxu1 }
0x2149   : > { %v4697_v43 = vpop.f32.mrb[32].mxu1 }
0x214a   : > { %4874 = vrot.lane.b32.xlu0 %v4697_v43, %s12639_s19  ;;  %v9475_v44 = vpop.f32.mrb[33].mxu1 }
0x214d   : > { %v4865_v45 = vpop.f32.mrb[34].mxu1 }
0x214e   : > { %4878 = vrot.lane.b32.xlu1 %v4865_v45, %s12640_s20  ;;  %v9485_v46 = vpop.f32.mrb[35].mxu1 }
0x2169   : > { %4024 = vadd.xlane.f32.xlu0 %v4023_v51  ;;  %v5000_v51 = vld [vmem:[%s12648_s2 + $0x8] sm:$0xff] }
0x2172   : > { %4027 = vadd.xlane.f32.xlu1 %v4026_v56  ;;  %v5002_v56 = vld [vmem:[%s12648_s2 + $0x18] sm:$0xff] }
0x218b   : > { %v4871_v53 = vpop.permute.xlu1 %4870 }
0x218c   : > { %v4881_v58 = vsel %vm1530_vm1, %v4361_v36, %v4871_v53  ;;  %v5083_v53 = vld [vmem:[#allocation7] sm:$0xff] }
0x21bc   : > { %v4875_v57 = vpop.permute.xlu0 %4874 }
0x21bd   : > { %v4882_v52 = vsel %vm2364_vm8, %v4881_v58, %v4875_v57  ;;  %v5084_v58 = vld [vmem:[#allocation7 + $0x8] sm:$0xff] }
0x21c0   : > { %v4879_v10 = vpop.permute.xlu1 %4878 }
0x21c1   : > { %v4883_v24 = vsel %vm2367_vm9, %v4882_v52, %v4879_v10  ;;  %v10002_v52 = vpack.c.bf16 %v5084_v58, %v5083_v53  ;;  %v5085_v10 = vld [vmem:[#allocation7 + $0x10] sm:$0xff] }
0x21c2   : > { %9495 = vmatmul.mubr.msk.f32.vlgmr.msra.gmra.mrb[30].mxu0 %vm1442_vm0, %v4883_v24  ;;  %v5086_v24 = vld [vmem:[#allocation7 + $0x18] sm:$0xff] }
0x21c3   : > { %10003 = vmatprep.subr.bf16.mxu0 %v10002_v52 }
0x21c4   : > { %10005 = vmatpush3.bf16.msra.mxu0 %v10002_v52 }
0x21f6   : > { %v4025_v12 = vpop.xlane.xlu0 %4024 }
0x21f7   : > { %v4029_v59 = vmul.f32 0.03125, %v4025_v12  ;;  %v10006_v12 = vpack.c.bf16 %v5086_v24, %v5085_v10 }
0x21f9   : > { %v4031_v23 = vsub.f32 %v4017_v49, %v4029_v59  ;;  %v4999_v49 = vld [vmem:[%s12648_s2] sm:$0xff]  ;;  %10007 = vmatprep.subr.bf16.mxu0 %v10006_v12 }
0x21fa   : > { %v9997_v54 = vpack.c.bf16 %v5000_v51, %v4999_v49  ;;  %10009 = vmatpush3.bf16.msra.mxu0 %v10006_v12 }
0x21fb   : > { %v4033_v60 = vmul.f32 %v4031_v23, %v4031_v23  ;;  %10014 = vmatprep.subr.bf16.mxu0 %v11103_v32 }
0x21fc   : > { %9998 = vmatpush3.bf16.msra.mxu1 %v9997_v54 }
0x21fd   : > { %v4035_v62 = vsel %vm1442_vm0, %v4033_v60, 0.0  ;;  %9999 = vmatprep.subr.bf16.mxu1 %v11103_v32 }
0x21fe   : > { %4036 = vadd.xlane.f32.xlu0 %v4035_v62 }
0x21ff   : > { %v4028_v61 = vpop.xlane.xlu1 %4027 }
0x2200   : > { %v4030_v63 = vmul.f32 0.03125, %v4028_v61 }
0x2202   : > { %v4032_v0 = vsub.f32 %v4018_v55, %v4030_v63  ;;  %v5001_v55 = vld [vmem:[%s12648_s2 + $0x10] sm:$0xff] }
0x2203   : > { %v10000_v57 = vpack.c.bf16 %v5002_v56, %v5001_v55 }
0x2204   : > { %v4034_v1 = vmul.f32 %v4032_v0, %v4032_v0 }
0x2205   : > { %10001 = vmatpush3.bf16.msra.mxu1 %v10000_v57 }
0x2206   : > { %v4038_v7 = vsel %vm2469_vm10, %v4034_v1, 0.0  ;;  %10010 = vmatprep.subr.bf16.mxu1 %v11103_v32 }
0x2207   : > { %4039 = vadd.xlane.f32.xlu0 %v4038_v7 }
0x228b   : > { %v4037_v3 = vpop.xlane.xlu0 %4036 }
0x228c   : > { %v4041_v4 = vmul.f32 0.03125, %v4037_v3 }
0x228e   : > { %v4043_v6 = vadd.f32 1e-05, %v4041_v4  ;;  %v8787_v4 = vld [vmem:[%s12649_s22] ss:$0 sm:$0xff]  ;;  %s12652_s22 = sld [smem:[#allocation62_spill]] }
0x2290   : > { %10588 = vrsqrt.f32 %v4043_v6 }
0x2294   : > { %v4040_v8 = vpop.xlane.xlu0 %4039 }
0x2295   : > { %v4042_v48 = vmul.f32 0.03125, %v4040_v8  ;;  %v4964_v9 = vpop.f32.mrb[30].mxu0  ;;  %v8788_v8 = vld [vmem:[%s12650_s26] ss:$0 sm:$0xff]  ;;  %s12651_s26 = sld [smem:[#allocation60_spill]] }
0x2296   : > { %v9496_v11 = vpop.f32.mrb[31].mxu0  ;;  %v4965_v19 = vadd.f32 %v8807_v31, %v4964_v9  ;;  %v8810_v31 = vld [vmem:[#allocation4] ss:$0 sm:$0xff] }
0x2297   : > { %v4044_v47 = vadd.f32 1e-05, %v4042_v48  ;;  %v8809_v11 = vld [vmem:[#allocation2] ss:$0 sm:$0xff] }
0x2298   : > { %v4968_v21 = vadd.f32 %v4965_v19, %v11931_v5 }
0x2299   : > { %10590 = vrsqrt.f32 %v4044_v47 }
0x229a   : > { %v10589_v33 = vpop.eup %10588  ;;  %v4972_v25 = vsel %vm4971_vm3, %v4968_v21, 0.0 }
0x229b   : > { %v4047_v16 = vmul.f32 %v10589_v33, %v4031_v23 }
0x229d   : > { %v4055_v15 = vmul.f32 %v8785_v14, %v4047_v16 }
0x229f   : > { %v4063_v20 = vadd.f32 %v8786_v18, %v4055_v15 }
0x22a1   : > { %v4067_v22 = vsel %vm1442_vm0, %v4063_v20, 0.0 }
0x22a2   : > { %4068 = vadd.xlane.f32.xlu1 %v4067_v22 }
0x22a3   : > { %v10591_v13 = vpop.eup %10590 }
0x22a4   : > { %v4048_v28 = vmul.f32 %v10591_v13, %v4032_v0 }
0x22a6   : > { %4973 = vadd.xlane.f32.xlu1 %v4972_v25  ;;  %v4056_v26 = vmul.f32 %v8785_v14, %v4048_v28  ;;  %v8813_v25 = vld [vmem:[#allocation9] ss:$0 sm:$0xff] }
0x22a8   : > { %v4064_v27 = vadd.f32 %v8786_v18, %v4056_v26 }
0x22aa   : > { %v4070_v29 = vsel %vm2469_vm10, %v4064_v27, 0.0 }
0x22ab   : > { %4071 = vadd.xlane.f32.xlu0 %v4070_v29 }
0x232f   : > { %v4069_v30 = vpop.xlane.xlu1 %4068 }
0x2330   : > { %v4073_v36 = vmul.f32 0.03125, %v4069_v30 }
0x2332   : > { %v4075_v37 = vsub.f32 %v4063_v20, %v4073_v36 }
0x2333   : > { %v4974_v38 = vpop.xlane.xlu1 %4973 }
0x2334   : > { %v4975_v5 = vmul.f32 0.03125, %v4974_v38  ;;  %v4077_v39 = vmul.f32 %v4075_v37, %v4075_v37 }
0x2336   : > { %v4976_v40 = vsub.f32 %v4968_v21, %v4975_v5  ;;  %v4079_v41 = vsel %vm1442_vm0, %v4077_v39, 0.0  ;;  %v8811_v21 = vld [vmem:[#allocation6] ss:$0 sm:$0xff] }
0x2337   : > { %4080 = vadd.xlane.f32.xlu0 %v4079_v41 }
0x2338   : > { %v4072_v42 = vpop.xlane.xlu0 %4071  ;;  %v4977_v43 = vmul.f32 %v4976_v40, %v4976_v40 }
0x2339   : > { %v4074_v44 = vmul.f32 0.03125, %v4072_v42 }
0x233a   : > { %v4978_v45 = vsel %vm4971_vm3, %v4977_v43, 0.0 }
0x233b   : > { %v4076_v46 = vsub.f32 %v4064_v27, %v4074_v44  ;;  %4979 = vadd.xlane.f32.xlu0 %v4978_v45 }
0x233d   : > { %v4078_v50 = vmul.f32 %v4076_v46, %v4076_v46 }
0x233f   : > { %v4082_v35 = vsel %vm2469_vm10, %v4078_v50, 0.0 }
0x2340   : > { %4083 = vadd.xlane.f32.xlu1 %v4082_v35 }
0x23c4   : > { %v4081_v59 = vpop.xlane.xlu0 %4080 }
0x23c5   : > { %v4085_v23 = vmul.f32 0.03125, %v4081_v59 }
0x23c7   : > { %v4087_v60 = vadd.f32 1e-05, %v4085_v23 }
0x23c8   : > { %v4980_v62 = vpop.xlane.xlu0 %4979 }
0x23c9   : > { %10592 = vrsqrt.f32 %v4087_v60  ;;  %v4981_v61 = vmul.f32 0.03125, %v4980_v62 }
0x23cb   : > { %v4982_v63 = vadd.f32 1e-05, %v4981_v61 }
0x23cd   : > { %10594 = vrsqrt.f32 %v4982_v63  ;;  %v4084_v0 = vpop.xlane.xlu1 %4083 }
0x23ce   : > { %v4086_v1 = vmul.f32 0.03125, %v4084_v0 }
0x23d0   : > { %v4088_v7 = vadd.f32 1e-05, %v4086_v1 }
0x23d2   : > { %10596 = vrsqrt.f32 %v4088_v7 }
0x23d3   : > { %v10593_v3 = vpop.eup %10592 }
0x23d4   : > { %v4091_v6 = vmul.f32 %v10593_v3, %v4075_v37 }
0x23d6   : > { %v4099_v48 = vmul.f32 %v8787_v4, %v4091_v6 }
0x23d7   : > { %v10595_v9 = vpop.eup %10594 }
0x23d8   : > { %v4984_v47 = vmul.f32 %v10595_v9, %v4976_v40  ;;  %v12065_v33 = vadd.f32 %v8788_v8, %v4099_v48 }
0x23da   : > { %9516 = vmatprep.mubr.msk.f32.mxu0 %vm1442_vm0, %v12065_v33  ;;  %v4991_v14 = vmul.f32 %v8809_v11, %v4984_v47 }
0x23dc   : > { %v10597_v16 = vpop.eup %10596  ;;  %v12069_v18 = vadd.f32 %v8810_v31, %v4991_v14 }
0x23dd   : > { %v4092_v19 = vmul.f32 %v10597_v16, %v4076_v46 }
0x23de   : > { %9506 = vmatmul.mubr.msk.f32.vlgmr.msra.gmra.mrb[36].mxu1 %vm1442_vm0, %v12069_v18 }
0x23df   : > { %v4100_v15 = vmul.f32 %v8787_v4, %v4092_v19  ;;  %9523 = vmatprep.mubr.msk.f32.mxu1 %vm11104_vm12, %v11105_v2 }
0x23e1   : > { %v12075_v20 = vadd.f32 %v8788_v8, %v4100_v15 }
0x23e3   : > { %9517 = vmatmul.mubr.msk.f32.vlgmr.msra.gmra.mrb[32].mxu0 %vm1442_vm0, %v12075_v20 }
0x23e4   : > { %9530 = vmatprep.mubr.msk.f32.mxu0 %vm11104_vm12, %v11105_v2 }
0x24b1   : > { %v5079_v22 = vpop.f32.mrb[36].mxu1 }
0x24b2   : > { %v12081_v13 = vadd.f32 %v8811_v21, %v5079_v22  ;;  %v9507_v28 = vpop.f32.mrb[37].mxu1 }
0x24b4   : > { %5347 = vrot.lane.b32.xlu0 %v12081_v13, %s12629_s1 }
0x24b6   : > { %v9518_v26 = vpop.f32.mrb[32].mxu0 }
0x24b7   : > { %v5172_v27 = vadd.f32 %v9518_v26, %v8813_v25  ;;  %v5166_v29 = vpop.f32.mrb[33].mxu0 }
0x24b8   : > { %v5167_v30 = vadd.f32 %v8813_v25, %v5166_v29 }
0x24ba   : > { %v12085_v36 = vpack.i.bf16 %v5172_v27, %v5167_v30  ;;  %v10011_v37 = vpack.c.bf16 %v5172_v27, %v5167_v30 }
0x24bc   : > { %10427 = vrot.lane.b32.xlu1 %v12085_v36, %s12629_s1  ;;  %10013 = vmatpush3.bf16.xpose.msk.msra.mxu1 %vm11586_vm2, %v10011_v37 }
0x24bd   : > { %10018 = vmatprep.subr.bf16.mxu1 %v11103_v32 }
0x24c3   : > { %9524 = vmatmul.mubr.msk.f32.vlgmr.msra.gmra.mrb[38].mxu1 %vm1530_vm1, %v12081_v13 }
0x24c4   : > { %9537 = vmatprep.mubr.msk.f32.mxu1 %vm11104_vm12, %v11105_v2 }
0x2526   : > { %v5348_v41 = vpop.permute.xlu0 %5347 }
0x252e   : > { %v10428_v38 = vpop.permute.xlu1 %10427 }
0x252f   : > { %v10430_v5 = vunpack.i.h.bf16 %v10428_v38  ;;  %v10429_v39 = vunpack.i.l.bf16 %v10428_v38 }
0x2531   : > { %v10019_v40 = vpack.c.bf16 %v10430_v5, %v10429_v39 }
0x2533   : > { %10021 = vmatpush3.bf16.xpose.msk.msra.mxu1 %vm11586_vm2, %v10019_v40 }
0x2534   : > { %10030 = vmatprep.subr.bf16.mxu1 %v11103_v32 }
0x253a   : > { %9538 = vmatmul.mubr.msk.f32.vlgmr.msra.gmra.mrb[40].mxu1 %vm1530_vm1, %v5348_v41 }
0x253b   : > { %9558 = vmatprep.mubr.msk.f32.mxu1 %vm11104_vm12, %v11105_v2 }
0x2596   : > { %v5250_v42 = vpop.f32.mrb[38].mxu1 }
0x2597   : > { %v5254_v43 = vmul.f32 0.35355338, %v5250_v42  ;;  %v9525_v44 = vpop.f32.mrb[39].mxu1 }
0x2599   : > { %v5256_v45 = vsel %vm5255_vm5, %v5254_v43, -inf }
0x259a   : > { %5257 = vmax.xlane.f32.xlu1 %v5256_v45 }
0x25ab   : > { %10432 = vrot.lane.b32.xlu1 %v12085_v36, %s12628_s3 }
0x260d   : > { %v5425_v46 = vpop.f32.mrb[40].mxu1 }
0x260e   : > { %v5429_v50 = vmul.f32 0.35355338, %v5425_v46  ;;  %v9539_v35 = vpop.f32.mrb[41].mxu1 }
0x2610   : > { %v5430_v49 = vsel %vm5255_vm5, %v5429_v50, -inf }
0x2611   : > { %5431 = vmax.xlane.f32.xlu0 %v5430_v49 }
0x2627   : > { %v5258_v51 = vpop.xlane.xlu1 %5257 }
0x2628   : > { %v5259_v54 = vsub.f32 %v5254_v43, %v5258_v51 }
0x262a   : > { %v5260_v55 = vmul.f32 1.442695, %v5259_v54 }
0x262b   : > { %v10433_v56 = vpop.permute.xlu1 %10432 }
0x262c   : > { %10598 = vpow2.f32 %v5260_v55  ;;  %v10435_v53 = vunpack.i.h.bf16 %v10433_v56  ;;  %v10434_v57 = vunpack.i.l.bf16 %v10433_v56 }
0x262e   : > { %v10015_v58 = vpack.c.bf16 %v10435_v53, %v10434_v57 }
0x2630   : > { %10017 = vmatpush3.bf16.msk.msra.mxu0 %vm11604_vm7, %v10015_v58 }
0x2631   : > { %10022 = vmatprep.subr.bf16.mxu0 %v11103_v32 }
0x2636   : > { %v10599_v52 = vpop.eup %10598 }
0x2637   : > { %v5262_v10 = vsel %vm5255_vm5, %v10599_v52, 0.0 }
0x2638   : > { %5263 = vadd.xlane.f32.xlu1 %v5262_v10 }
0x2649   : > { %10442 = vrot.lane.b32.xlu1 %v12085_v36, %s12633_s8 }
0x264d   : > { %5521 = vrot.lane.b32.xlu1 %v12081_v13, %s12633_s8 }
0x269e   : > { %v5432_v24 = vpop.xlane.xlu0 %5431 }
0x269f   : > { %v5433_v12 = vsub.f32 %v5429_v50, %v5432_v24 }
0x26a1   : > { %v5434_v59 = vmul.f32 1.442695, %v5433_v12 }
0x26a3   : > { %10600 = vpow2.f32 %v5434_v59 }
0x26ad   : > { %v10601_v23 = vpop.eup %10600 }
0x26ae   : > { %v5436_v60 = vsel %vm5255_vm5, %v10601_v23, 0.0 }
0x26af   : > { %5437 = vadd.xlane.f32.xlu0 %v5436_v60 }
0x26c5   : > { %v5264_v62 = vpop.xlane.xlu1 %5263  ;;  %10437 = vrot.lane.b32.xlu0 %v12085_v36, %s12644_s15 }
0x26c6   : > { %10602 = vrcp.f32 %v5264_v62 }
0x26c9   : > { %v10443_v6 = vpop.permute.xlu1 %10442 }
0x26ca   : > { %v10445_v48 = vunpack.i.h.bf16 %v10443_v6  ;;  %v10444_v9 = vunpack.i.l.bf16 %v10443_v6 }
0x26cc   : > { %v10027_v47 = vpack.c.bf16 %v10445_v48, %v10444_v9 }
0x26cd   : > { %v5522_v31 = vpop.permute.xlu1 %5521 }
0x26d0   : > { %v10603_v61 = vpop.eup %10602 }
0x26d1   : > { %v5266_v63 = vmul.f32 %v10603_v61, %v10599_v52 }
0x26d3   : > { %9531 = vmatmul.mubr.msk.f32.vlgmr.msra.gmra.mrb[34].mxu0 %vm1616_vm4, %v5266_v63  ;;  %v5884_v63 = vld [vmem:[#allocation10] sm:$0xff] }
0x26d4   : > { %9544 = vmatprep.mubr.msk.f32.mxu0 %vm11104_vm12, %v11105_v2 }
0x273c   : > { %v5438_v0 = vpop.xlane.xlu0 %5437 }
0x273d   : > { %10604 = vrcp.f32 %v5438_v0  ;;  %v5886_v0 = vld [vmem:[#allocation10 + $0x10] sm:$0xff] }
0x2740   : > { %v10438_v1 = vpop.permute.xlu0 %10437 }
0x2741   : > { %v10440_v7 = vunpack.i.h.bf16 %v10438_v1  ;;  %v10439_v3 = vunpack.i.l.bf16 %v10438_v1 }
0x2743   : > { %v10023_v4 = vpack.c.bf16 %v10440_v7, %v10439_v3  ;;  %v5887_v7 = vld [vmem:[#allocation10 + $0x18] sm:$0xff] }
0x2744   : > { %v10046_v3 = vpack.c.bf16 %v5887_v7, %v5886_v0 }
0x2745   : > { %10025 = vmatpush3.bf16.msk.msra.mxu0 %vm11604_vm7, %v10023_v4 }
0x2746   : > { %10026 = vmatprep.subr.bf16.mxu0 %v11103_v32 }
0x2747   : > { %v10605_v8 = vpop.eup %10604 }
0x2748   : > { %v5440_v11 = vmul.f32 %v10605_v8, %v10601_v23 }
0x274a   : > { %9545 = vmatmul.mubr.msk.f32.vlgmr.msra.gmra.mrb[36].mxu0 %vm1616_vm4, %v5440_v11 }
0x274b   : > { %9551 = vmatprep.mubr.msk.f32.mxu0 %vm11104_vm12, %v11105_v2 }
0x274e   : > { %10029 = vmatpush3.bf16.xpose.msk.msra.mxu0 %vm11586_vm2, %v10027_v47 }
0x274f   : > { %10038 = vmatprep.subr.bf16.mxu0 %v11103_v32 }
0x2755   : > { %9552 = vmatmul.mubr.msk.f32.vlgmr.msra.gmra.mrb[38].mxu0 %vm1530_vm1, %v5522_v31 }
0x2756   : > { %9572 = vmatprep.mubr.msk.f32.mxu0 %vm11104_vm12, %v11105_v2 }
0x27a6   : > { %v12132_v14 = vpop.f32.mrb[34].mxu0 }
0x27a7   : > { %v9532_v16 = vpop.f32.mrb[35].mxu0 }
0x27a8   : > { %v8836_v16 = vld [vmem:[#allocation12] ss:$0 sm:$0xff] }
0x281d   : > { %v5517_v19 = vpop.f32.mrb[36].mxu0 }
0x281e   : > { %v9546_v15 = vpop.f32.mrb[37].mxu0 }
0x2828   : > { %v5599_v21 = vpop.f32.mrb[38].mxu0 }
0x2829   : > { %v5603_v22 = vmul.f32 0.35355338, %v5599_v21  ;;  %v9553_v28 = vpop.f32.mrb[39].mxu0 }
0x282b   : > { %v5604_v25 = vsel %vm5255_vm5, %v5603_v22, -inf }
0x282c   : > { %5605 = vmax.xlane.f32.xlu0 %v5604_v25 }
0x2842   : > { %10447 = vrot.lane.b32.xlu0 %v12085_v36, %s12631_s5 }
0x2846   : > { %5695 = vrot.lane.b32.xlu0 %v12081_v13, %s12635_s12 }
0x28b9   : > { %v5606_v26 = vpop.xlane.xlu0 %5605 }
0x28ba   : > { %v5607_v27 = vsub.f32 %v5603_v22, %v5606_v26 }
0x28bc   : > { %v5608_v29 = vmul.f32 1.442695, %v5607_v27 }
0x28bd   : > { %v10448_v30 = vpop.permute.xlu0 %10447 }
0x28be   : > { %10606 = vpow2.f32 %v5608_v29  ;;  %v10450_v37 = vunpack.i.h.bf16 %v10448_v30  ;;  %v10449_v38 = vunpack.i.l.bf16 %v10448_v30  ;;  %v5998_v30 = vld [vmem:[#allocation16] sm:$0xff] }
0x28c0   : > { %v10031_v5 = vpack.c.bf16 %v10450_v37, %v10449_v38  ;;  %v5999_v37 = vld [vmem:[#allocation16 + $0x8] sm:$0xff] }
0x28c1   : > { %v5696_v50 = vpop.permute.xlu0 %5695  ;;  %v10049_v38 = vpack.c.bf16 %v5999_v37, %v5998_v30  ;;  %v8851_v30 = vld [vmem:[%s12643_s18 + $0x1] ss:$0 sm:$0xff] }
0x28c2   : > { %10033 = vmatpush3.bf16.msk.msra.mxu1 %vm11604_vm7, %v10031_v5  ;;  %v6001_v5 = vld [vmem:[#allocation16 + $0x18] sm:$0xff] }
0x28c3   : > { %10034 = vmatprep.subr.bf16.mxu1 %v11103_v32 }
0x28c8   : > { %v10607_v39 = vpop.eup %10606 }
0x28c9   : > { %v5610_v40 = vsel %vm5255_vm5, %v10607_v39, 0.0 }
0x28ca   : > { %5611 = vadd.xlane.f32.xlu1 %v5610_v40  ;;  %v6083_v40 = vld [vmem:[%s12651_s26] sm:$0xff] }
0x28db   : > { %10452 = vrot.lane.b32.xlu1 %v12085_v36, %s12635_s12 }
0x2957   : > { %v5612_v13 = vpop.xlane.xlu1 %5611 }
0x2958   : > { %10608 = vrcp.f32 %v5612_v13  ;;  %v6084_v13 = vld [vmem:[%s12651_s26 + $0x8] sm:$0xff] }
0x295b   : > { %v10453_v41 = vpop.permute.xlu1 %10452 }
0x295c   : > { %v10455_v42 = vunpack.i.h.bf16 %v10453_v41  ;;  %v10454_v43 = vunpack.i.l.bf16 %v10453_v41  ;;  %v6085_v41 = vld [vmem:[%s12651_s26 + $0x10] sm:$0xff] }
0x295e   : > { %v10035_v46 = vpack.c.bf16 %v10455_v42, %v10454_v43  ;;  %v10055_v42 = vpack.c.bf16 %v6084_v13, %v6083_v40  ;;  %v6086_v43 = vld [vmem:[%s12651_s26 + $0x18] sm:$0xff] }
0x2962   : > { %v10609_v44 = vpop.eup %10608 }
0x2963   : > { %v5614_v45 = vmul.f32 %v10609_v44, %v10607_v39  ;;  %v10058_v44 = vpack.c.bf16 %v6086_v43, %v6085_v41 }
0x2965   : > { %9559 = vmatmul.mubr.msk.f32.vlgmr.msra.gmra.mrb[42].mxu1 %vm1616_vm4, %v5614_v45  ;;  %v6087_v45 = vld [vmem:[%s12651_s26 + $0x20] sm:$0xff] }
0x2966   : > { %10037 = vmatpush3.bf16.xpose.msk.msra.mxu1 %vm11586_vm2, %v10035_v46  ;;  %9565 = vmatprep.mubr.msk.f32.mxu1 %vm11104_vm12, %v11105_v2  ;;  %v6088_v46 = vld [vmem:[%s12651_s26 + $0x28] sm:$0xff] }
0x2967   : > { %10048 = vmatprep.subr.bf16.mxu1 %v11103_v32 }
0x296d   : > { %9566 = vmatmul.mubr.msk.f32.vlgmr.msra.gmra.mrb[44].mxu1 %vm1530_vm1, %v5696_v50  ;;  %v10061_v50 = vpack.c.bf16 %v6088_v46, %v6087_v45 }
0x296e   : > { %9594 = vmatprep.mubr.msk.f32.mxu1 %vm11104_vm12, %v11105_v2  ;;  %10050 = vmatpush3.bf16.msra.mxu1 %v10049_v38 }
0x296f   : > { %10051 = vmatprep.subr.bf16.mxu1 %v11103_v32 }
0x2a38   : > { %v5691_v35 = vpop.f32.mrb[42].mxu1 }
0x2a39   : > { %v9560_v49 = vpop.f32.mrb[43].mxu1 }
0x2a40   : > { %v5773_v51 = vpop.f32.mrb[44].mxu1 }
0x2a41   : > { %v5777_v54 = vmul.f32 0.35355338, %v5773_v51  ;;  %v9567_v55 = vpop.f32.mrb[45].mxu1 }
0x2a42   : > { %v8838_v55 = vld [vmem:[#allocation13] ss:$0 sm:$0xff] }
0x2a43   : > { %v5778_v56 = vsel %vm5255_vm5, %v5777_v54, -inf }
0x2a44   : > { %5779 = vmax.xlane.f32.xlu1 %v5778_v56 }
0x2a55   : > { %5870 = vrot.lane.b32.xlu1 %v5517_v19, %s12637_s14 }
0x2a59   : > { %5874 = vrot.lane.b32.xlu1 %v5691_v35, %s12639_s19 }
0x2ad1   : > { %v5780_v53 = vpop.xlane.xlu1 %5779 }
0x2ad2   : > { %v5781_v57 = vsub.f32 %v5777_v54, %v5780_v53  ;;  %v8839_v53 = vld [vmem:[#allocation15] ss:$0 sm:$0xff] }
0x2ad4   : > { %v5782_v58 = vmul.f32 1.442695, %v5781_v57 }
0x2ad5   : > { %v5871_v8 = vpop.permute.xlu1 %5870 }
0x2ad6   : > { %10610 = vpow2.f32 %v5782_v58  ;;  %v5881_v9 = vsel %vm1530_vm1, %v12132_v14, %v5871_v8 }
0x2ad9   : > { %v5875_v48 = vpop.permute.xlu1 %5874 }
0x2ada   : > { %v5882_v11 = vsel %vm2364_vm8, %v5881_v9, %v5875_v48  ;;  %v8846_v9 = vld [vmem:[%s12641_s4 + $0x20] sm:$0xff] }
0x2ae0   : > { %v10611_v52 = vpop.eup %10610 }
0x2ae1   : > { %v5784_v10 = vsel %vm5255_vm5, %v10611_v52, 0.0 }
0x2ae2   : > { %5785 = vadd.xlane.f32.xlu0 %v5784_v10  ;;  %v6090_v10 = vld [vmem:[%s12651_s26 + $0x38] sm:$0xff] }
0x2af8   : > { %10457 = vrot.lane.b32.xlu0 %v12085_v36, %s12634_s9  ;;  %v5885_v36 = vld [vmem:[#allocation10 + $0x8] sm:$0xff] }
0x2af9   : > { %v10043_v1 = vpack.c.bf16 %v5885_v36, %v5884_v63 }
0x2b6f   : > { %v5786_v24 = vpop.xlane.xlu0 %5785 }
0x2b70   : > { %10612 = vrcp.f32 %v5786_v24 }
0x2b73   : > { %v10458_v12 = vpop.permute.xlu0 %10457 }
0x2b74   : > { %v10460_v59 = vunpack.i.h.bf16 %v10458_v12  ;;  %v10459_v23 = vunpack.i.l.bf16 %v10458_v12  ;;  %v8840_v12 = vld [vmem:[#allocation18] ss:$0 sm:$0xff] }
0x2b76   : > { %v10039_v60 = vpack.c.bf16 %v10460_v59, %v10459_v23 }
0x2b78   : > { %10041 = vmatpush3.bf16.msk.msra.mxu0 %vm11604_vm7, %v10039_v60 }
0x2b79   : > { %10042 = vmatprep.subr.bf16.mxu0 %v11103_v32 }
0x2b7a   : > { %v10613_v62 = vpop.eup %10612 }
0x2b7b   : > { %v5788_v61 = vmul.f32 %v10613_v62, %v10611_v52  ;;  %v6089_v52 = vld [vmem:[%s12651_s26 + $0x30] sm:$0xff] }
0x2b7c   : > { %v10064_v24 = vpack.c.bf16 %v6090_v10, %v6089_v52 }
0x2b7d   : > { %9573 = vmatmul.mubr.msk.f32.vlgmr.msra.gmra.mrb[40].mxu0 %vm1616_vm4, %v5788_v61  ;;  %v8842_v61 = vld [vmem:[#allocation19] ss:$0 sm:$0xff] }
0x2b7e   : > { %9583 = vmatprep.mubr.msk.f32.mxu0 %vm11104_vm12, %v11105_v2  ;;  %10044 = vmatpush3.bf16.msra.mxu0 %v10043_v1 }
0x2b7f   : > { %10045 = vmatprep.subr.bf16.mxu0 %v11103_v32 }
0x2b82   : > { %10047 = vmatpush3.bf16.msra.mxu0 %v10046_v3 }
0x2b83   : > { %10054 = vmatprep.subr.bf16.mxu0 %v11103_v32 }
0x2c50   : > { %v5865_v4 = vpop.f32.mrb[40].mxu0 }
0x2c51   : > { %5878 = vrot.lane.b32.xlu0 %v5865_v4, %s12640_s20  ;;  %v9574_v6 = vpop.f32.mrb[41].mxu0 }
0x2cc3   : > { %v5879_v47 = vpop.permute.xlu0 %5878 }
0x2cc4   : > { %v5883_v31 = vsel %vm2367_vm9, %v5882_v11, %v5879_v47  ;;  %v8847_v11 = vld [vmem:[%s12641_s4 + $0x28] sm:$0xff] }
0x2cc5   : > { %9584 = vmatmul.mubr.msk.f32.vlgmr.msra.gmra.mrb[42].mxu0 %vm1442_vm0, %v5883_v31  ;;  %v10067_v47 = vpack.c.bf16 %v8847_v11, %v8846_v9  ;;  %v8848_v31 = vld [vmem:[%s12641_s4 + $0x30] sm:$0xff] }
0x2cc6   : > { %9613 = vmatprep.mubr.msk.f32.mxu0 %vm11104_vm12, %v11105_v2  ;;  %10056 = vmatpush3.bf16.msra.mxu0 %v10055_v42 }
0x2cc7   : > { %10057 = vmatprep.subr.bf16.mxu0 %v11103_v32 }
0x2cca   : > { %10059 = vmatpush3.bf16.msra.mxu0 %v10058_v44 }
0x2ccb   : > { %10060 = vmatprep.subr.bf16.mxu0 %v11103_v32 }
0x2cce   : > { %10062 = vmatpush3.bf16.msra.mxu0 %v10061_v50 }
0x2ccf   : > { %10063 = vmatprep.subr.bf16.mxu0 %v11103_v32 }
0x2cd2   : > { %10065 = vmatpush3.bf16.msra.mxu0 %v10064_v24 }
0x2cd3   : > { %9637 = vmatprep.subr.mxu0 %v11105_v2 }
0x2d98   : > { %v5964_v19 = vpop.f32.mrb[42].mxu0 }
0x2d99   : > { %v5965_v15 = vadd.f32 %v8836_v16, %v5964_v19  ;;  %v9585_v21 = vpop.f32.mrb[43].mxu0  ;;  %v8849_v16 = vld [vmem:[%s12641_s4 + $0x38] sm:$0xff] }
0x2d9a   : > { %v10070_v19 = vpack.c.bf16 %v8849_v16, %v8848_v31 }
0x2d9b   : > { %v5968_v22 = vadd.f32 %v5965_v15, %v12069_v18  ;;  %v6000_v18 = vld [vmem:[#allocation16 + $0x10] sm:$0xff] }
0x2d9c   : > { %v10052_v39 = vpack.c.bf16 %v6001_v5, %v6000_v18 }
0x2d9d   : > { %v5971_v28 = vsel %vm4971_vm3, %v5968_v22, 0.0 }
0x2d9e   : > { %5972 = vadd.xlane.f32.xlu1 %v5971_v28  ;;  %10053 = vmatpush3.bf16.msra.mxu1 %v10052_v39 }
0x2d9f   : > { %10066 = vmatprep.subr.bf16.mxu1 %v11103_v32 }
0x2e2b   : > { %v5973_v14 = vpop.xlane.xlu1 %5972 }
0x2e2c   : > { %v5974_v25 = vmul.f32 0.03125, %v5973_v14  ;;  %v8844_v14 = vld [vmem:[%s12652_s22] ss:$0 sm:$0xff] }
0x2e2e   : > { %v5975_v26 = vsub.f32 %v5968_v22, %v5974_v25 }
0x2e30   : > { %v5976_v27 = vmul.f32 %v5975_v26, %v5975_v26 }
0x2e32   : > { %v5977_v29 = vsel %vm4971_vm3, %v5976_v27, 0.0 }
0x2e33   : > { %5978 = vadd.xlane.f32.xlu0 %v5977_v29 }
0x2ec0   : > { %v5979_v35 = vpop.xlane.xlu0 %5978 }
0x2ec1   : > { %v5980_v49 = vmul.f32 0.03125, %v5979_v35 }
0x2ec3   : > { %v5981_v51 = vadd.f32 1e-05, %v5980_v49 }
0x2ec5   : > { %10614 = vrsqrt.f32 %v5981_v51  ;;  %v10658_v51 = vld [vmem:[%s12645_s10] sm:$0x3f] }
0x2ecf   : > { %v10615_v54 = vpop.eup %10614 }
0x2ed0   : > { %v5983_v56 = vmul.f32 %v10615_v54, %v5975_v26  ;;  %v8845_v26 = vld [vmem:[%s12653_s27] ss:$0 sm:$0xff] }
0x2ed2   : > { %v5990_v57 = vmul.f32 %v8838_v55, %v5983_v56 }
0x2ed4   : > { %v5997_v58 = vadd.f32 %v8839_v53, %v5990_v57 }
0x2ed6   : > { %9595 = vmatmul.mubr.msk.f32.vlgmr.msra.gmra.mrb[46].mxu1 %vm1442_vm0, %v5997_v58 }
0x2ed7   : > { %9624 = vmatprep.mubr.msk.f32.mxu1 %vm11104_vm12, %v11105_v2  ;;  %10068 = vmatpush3.bf16.msra.mxu1 %v10067_v47 }
0x2ed8   : > { %10069 = vmatprep.subr.bf16.mxu1 %v11103_v32 }
0x2edb   : > { %10071 = vmatpush3.bf16.msra.mxu1 %v10070_v19 }
0x2edc   : > { %9627 = vmatprep.subr.mxu1 %v11105_v2 }
0x2fa9   : > { %v6078_v59 = vpop.f32.mrb[46].mxu1 }
0x2faa   : > { %v6079_v23 = vadd.f32 %v8840_v12, %v6078_v59  ;;  %v9596_v60 = vpop.f32.mrb[47].mxu1 }
0x2fac   : > { %v6082_v62 = vmax.f32 %v6079_v23, 0.0 }
0x2fae   : > { %9614 = vmatmul.mubr.msk.f32.vlgmr.msra.gmra.mrb[44].mxu0 %vm2619_vm11, %v6082_v62 }
0x2faf   : > { %9639 = vmatprep.mubr.msk.f32.mxu0 %vm11104_vm12, %v11105_v2 }
0x3081   : > { %v6167_v63 = vpop.f32.mrb[44].mxu0 }
0x3082   : > { %v6168_v36 = vadd.f32 %v8842_v61, %v6167_v63  ;;  %v9615_v0 = vpop.f32.mrb[45].mxu0 }
0x3084   : > { %v6171_v1 = vadd.f32 %v6168_v36, %v5997_v58 }
0x3086   : > { %v6174_v7 = vsel %vm4971_vm3, %v6171_v1, 0.0 }
0x3087   : > { %6175 = vadd.xlane.f32.xlu0 %v6174_v7 }
0x3114   : > { %v6176_v3 = vpop.xlane.xlu0 %6175 }
0x3115   : > { %v6177_v4 = vmul.f32 0.03125, %v6176_v3 }
0x3117   : > { %v6178_v6 = vsub.f32 %v6171_v1, %v6177_v4 }
0x3119   : > { %v6179_v8 = vmul.f32 %v6178_v6, %v6178_v6 }
0x311b   : > { %v6180_v48 = vsel %vm4971_vm3, %v6179_v8, 0.0 }
0x311c   : > { %6181 = vadd.xlane.f32.xlu1 %v6180_v48 }
0x31a9   : > { %v6182_v15 = vpop.xlane.xlu1 %6181 }
0x31aa   : > { %v6183_v21 = vmul.f32 0.03125, %v6182_v15 }
0x31ac   : > { %v6184_v22 = vadd.f32 1e-05, %v6183_v21 }
0x31ae   : > { %10616 = vrsqrt.f32 %v6184_v22 }
0x31b8   : > { %v10617_v28 = vpop.eup %10616 }
0x31b9   : > { %v6186_v25 = vmul.f32 %v10617_v28, %v6178_v6 }
0x31bb   : > { %v6193_v27 = vmul.f32 %v8844_v14, %v6186_v25 }
0x31bd   : > { %v12209_v29 = vadd.f32 %v8845_v26, %v6193_v27 }
0x31bf   : > { %9625 = vmatmul.mubr.msk.f32.vlgmr.msra.gmra.mrb[48].mxu1 %vm1442_vm0, %v12209_v29 }
0x31c0   : > { %9629 = vmatprep.mubr.msk.f32.mxu1 %vm11104_vm12, %v11105_v2 }
0x3292   : > { %v6283_v37 = vpop.f32.mrb[48].mxu1 }
0x3293   : > { %v12216_v38 = vadd.f32 %v8851_v30, %v6283_v37  ;;  %v9626_v18 = vpop.f32.mrb[49].mxu1 }
0x3295   : > { %6456 = vrot.lane.b32.xlu1 %v12216_v38, %s12644_s15  ;;  %6288 = vrot.lane.b32.xlu0 %v12216_v38, %s12628_s3 }
0x3299   : > { %6454 = vrot.lane.b32.xlu1 %v12216_v38, %s12629_s1  ;;  %6624 = vrot.lane.b32.xlu0 %v12216_v38, %s12631_s5 }
0x329d   : > { %6622 = vrot.lane.b32.xlu1 %v12216_v38, %s12633_s8  ;;  %6792 = vrot.lane.b32.xlu0 %v12216_v38, %s12634_s9 }
0x32a1   : > { %6790 = vrot.lane.b32.xlu1 %v12216_v38, %s12635_s12 }
0x3307   : > { %v6457_v5 = vpop.permute.xlu1 %6456  ;;  %v6289_v39 = vpop.permute.xlu0 %6288 }
0x3308   : > { %9628 = vmatpush3.xpose.msk.msra.mxu1 %vm1530_vm1, %v6289_v39  ;;  %9638 = vmatpush3.xpose.msk.msra.mxu0 %vm1530_vm1, %v6457_v5 }
0x3309   : > { %9647 = vmatprep.subr.mxu0 %v11105_v2  ;;  %9632 = vmatprep.subr.mxu1 %v11105_v2 }
0x330b   : > { %v6455_v40 = vpop.permute.xlu1 %6454  ;;  %9630 = vmatmul.mubr.msk.f32.vlgmr.msra.gmra.mrb[50].mxu1 %vm1530_vm1, %v12216_v38  ;;  %v6625_v13 = vpop.permute.xlu0 %6624 }
0x330c   : > { %9640 = vmatmul.mubr.msk.f32.vlgmr.msra.gmra.mrb[46].mxu0 %vm1530_vm1, %v6455_v40  ;;  %9634 = vmatprep.mubr.msk.f32.mxu1 %vm11104_vm12, %v11105_v2 }
0x330d   : > { %9648 = vmatpush3.xpose.msk.msra.mxu0 %vm1530_vm1, %v6625_v13  ;;  %9649 = vmatprep.mubr.msk.f32.mxu0 %vm11104_vm12, %v11105_v2 }
0x330e   : > { %9657 = vmatprep.subr.mxu0 %v11105_v2 }
0x330f   : > { %v6623_v41 = vpop.permute.xlu1 %6622  ;;  %v6793_v42 = vpop.permute.xlu0 %6792 }
0x3310   : > { %9650 = vmatmul.mubr.msk.f32.vlgmr.msra.gmra.mrb[48].mxu0 %vm1530_vm1, %v6623_v41 }
0x3311   : > { %9658 = vmatpush3.xpose.msk.msra.mxu0 %vm1530_vm1, %v6793_v42  ;;  %9659 = vmatprep.mubr.msk.f32.mxu0 %vm11104_vm12, %v11105_v2 }
0x3312   : > { %10072 = vmatprep.subr.bf16.mxu0 %v11103_v32 }
0x3313   : > { %v6791_v43 = vpop.permute.xlu1 %6790 }
0x3314   : > { %9660 = vmatmul.mubr.msk.f32.vlgmr.msra.gmra.mrb[50].mxu0 %vm1530_vm1, %v6791_v43 }
0x3315   : > { %9675 = vmatprep.mubr.msk.f32.mxu0 %vm11104_vm12, %v11105_v2 }
0x33de   : > { %v6360_v44 = vpop.f32.mrb[50].mxu1 }
0x33df   : > { %v6364_v45 = vmul.f32 0.35355338, %v6360_v44  ;;  %v9631_v46 = vpop.f32.mrb[51].mxu1  ;;  %v6528_v50 = vpop.f32.mrb[46].mxu0  ;;  %v8869_v44 = vld [vmem:[%s12646_s11 + $0x20] sm:$0xff] }
0x33e0   : > { %v6532_v35 = vmul.f32 0.35355338, %v6528_v50  ;;  %v9641_v49 = vpop.f32.mrb[47].mxu0  ;;  %v8871_v50 = vld [vmem:[%s12646_s11 + $0x30] sm:$0xff] }
0x33e1   : > { %v6365_v54 = vadd.f32 %v10658_v51, %v6364_v45  ;;  %v8870_v45 = vld [vmem:[%s12646_s11 + $0x28] sm:$0xff] }
0x33e2   : > { %v6533_v55 = vadd.f32 %v10658_v51, %v6532_v35  ;;  %v10073_v46 = vpack.c.bf16 %v8870_v45, %v8869_v44  ;;  %v8872_v35 = vld [vmem:[%s12646_s11 + $0x38] sm:$0xff] }
0x33e3   : > { %v6696_v56 = vpop.f32.mrb[48].mxu0  ;;  %v6366_v53 = vsel %vm4274_vm13, %v6365_v54, -inf  ;;  %v10076_v49 = vpack.c.bf16 %v8872_v35, %v8871_v50 }
0x33e4   : > { %v6700_v57 = vmul.f32 0.35355338, %v6696_v56  ;;  %v9651_v58 = vpop.f32.mrb[49].mxu0  ;;  %6367 = vmax.xlane.f32.xlu0 %v6366_v53  ;;  %v6534_v52 = vsel %vm4274_vm13, %v6533_v55, -inf  ;;  %10074 = vmatpush3.bf16.msra.mxu0 %v10073_v46  ;;  %v8882_v46 = vld [vmem:[#allocation6 + $0x1] ss:$0 sm:$0xff] }
0x33e5   : > { %6535 = vmax.xlane.f32.xlu1 %v6534_v52  ;;  %10075 = vmatprep.subr.bf16.mxu0 %v11103_v32 }
0x33e6   : > { %v6701_v10 = vadd.f32 %v10658_v51, %v6700_v57 }
0x33e7   : > { %v6864_v24 = vpop.f32.mrb[50].mxu0 }
0x33e8   : > { %v6868_v12 = vmul.f32 0.35355338, %v6864_v24  ;;  %v9661_v59 = vpop.f32.mrb[51].mxu0  ;;  %v6702_v23 = vsel %vm4274_vm13, %v6701_v10, -inf  ;;  %10077 = vmatpush3.bf16.msra.mxu0 %v10076_v49 }
0x33e9   : > { %6703 = vmax.xlane.f32.xlu0 %v6702_v23 }
0x33ea   : > { %v6869_v60 = vadd.f32 %v10658_v51, %v6868_v12  ;;  %v7178_v51 = vld [vmem:[#allocation7 + $0x20] sm:$0xff] }
0x33ec   : > { %v6870_v62 = vsel %vm4274_vm13, %v6869_v60, -inf }
0x33ed   : > { %6871 = vmax.xlane.f32.xlu0 %v6870_v62  ;;  %v7181_v62 = vld [vmem:[#allocation7 + $0x38] sm:$0xff] }
0x33f6   : > { %6377 = vrot.lane.b32.xlu1 %v12216_v38, %s12630_s23 }
0x3471   : > { %v6368_v61 = vpop.xlane.xlu0 %6367 }
0x3472   : > { %v6369_v63 = vsub.f32 %v6365_v54, %v6368_v61  ;;  %v6536_v36 = vpop.xlane.xlu1 %6535  ;;  %v7179_v54 = vld [vmem:[#allocation7 + $0x28] sm:$0xff] }
0x3473   : > { %v6537_v0 = vsub.f32 %v6533_v55, %v6536_v36  ;;  %v10084_v55 = vpack.c.bf16 %v7179_v54, %v7178_v51 }
0x3474   : > { %v6370_v1 = vmul.f32 1.442695, %v6369_v63 }
0x3475   : > { %v6538_v7 = vmul.f32 1.442695, %v6537_v0  ;;  %10085 = vmatprep.subr.bf16.mxu0 %v10084_v55 }
0x3476   : > { %10618 = vpow2.f32 %v6370_v1  ;;  %v6378_v3 = vpop.permute.xlu1 %6377  ;;  %v6704_v4 = vpop.xlane.xlu0 %6703 }
0x3477   : > { %10620 = vpow2.f32 %v6538_v7  ;;  %v6705_v6 = vsub.f32 %v6701_v10, %v6704_v4  ;;  %9633 = vmatpush3.msk.msra.mxu1 %vm4292_vm14, %v6378_v3  ;;  %v8874_v7 = vld [vmem:[%s12647_s16 + $0x1] ss:$0 sm:$0xff] }
0x3478   : > { %9642 = vmatprep.subr.mxu1 %v11105_v2 }
0x3479   : > { %v6706_v8 = vmul.f32 1.442695, %v6705_v6 }
0x347a   : > { %v6872_v48 = vpop.xlane.xlu0 %6871 }
0x347b   : > { %10622 = vpow2.f32 %v6706_v8  ;;  %v6873_v9 = vsub.f32 %v6869_v60, %v6872_v48  ;;  %v7180_v60 = vld [vmem:[#allocation7 + $0x30] sm:$0xff] }
0x347c   : > { %v10088_v0 = vpack.c.bf16 %v7181_v62, %v7180_v60 }
0x347d   : > { %v6874_v11 = vmul.f32 1.442695, %v6873_v9 }
0x347f   : > { %10624 = vpow2.f32 %v6874_v11 }
0x3480   : > { %v10619_v47 = vpop.eup %10618 }
0x3481   : > { %v10621_v31 = vpop.eup %10620  ;;  %v6372_v16 = vsel %vm4274_vm13, %v10619_v47, 0.0 }
0x3482   : > { %6373 = vadd.xlane.f32.xlu1 %v6372_v16  ;;  %v6540_v19 = vsel %vm4274_vm13, %v10621_v31, 0.0 }
0x3483   : > { %6541 = vadd.xlane.f32.xlu0 %v6540_v19 }
0x3485   : > { %v10623_v15 = vpop.eup %10622 }
0x3486   : > { %v6708_v21 = vsel %vm4274_vm13, %v10623_v15, 0.0 }
0x3487   : > { %6709 = vadd.xlane.f32.xlu1 %v6708_v21 }
0x3489   : > { %v10625_v22 = vpop.eup %10624 }
0x348a   : > { %v6876_v28 = vsel %vm4274_vm13, %v10625_v22, 0.0 }
0x348b   : > { %6877 = vadd.xlane.f32.xlu0 %v6876_v28  ;;  %v8878_v28 = vld [vmem:[%s12648_s2 + $0x20] sm:$0xff] }
0x3498   : > { %6713 = vrot.lane.b32.xlu1 %v12216_v38, %s12636_s13 }
0x349c   : > { %6881 = vrot.lane.b32.xlu1 %v12216_v38, %s12638_s17 }
0x34a1   : > { %6545 = vrot.lane.b32.xlu0 %v12216_v38, %s12632_s6 }
0x350f   : > { %v6374_v14 = vpop.xlane.xlu1 %6373 }
0x3510   : > { %10626 = vrcp.f32 %v6374_v14  ;;  %v6542_v25 = vpop.xlane.xlu0 %6541  ;;  %v8879_v14 = vld [vmem:[%s12648_s2 + $0x28] sm:$0xff] }
0x3511   : > { %10628 = vrcp.f32 %v6542_v25  ;;  %v10079_v25 = vpack.c.bf16 %v8879_v14, %v8878_v28 }
0x3514   : > { %v6710_v26 = vpop.xlane.xlu1 %6709 }
0x3515   : > { %10630 = vrcp.f32 %v6710_v26  ;;  %v8880_v26 = vld [vmem:[%s12648_s2 + $0x30] sm:$0xff] }
0x3518   : > { %v6878_v27 = vpop.xlane.xlu0 %6877  ;;  %v6714_v39 = vpop.permute.xlu1 %6713 }
0x3519   : > { %10632 = vrcp.f32 %v6878_v27  ;;  %v8881_v27 = vld [vmem:[%s12648_s2 + $0x38] sm:$0xff] }
0x351a   : > { %v10627_v30 = vpop.eup %10626 }
0x351b   : > { %v6376_v37 = vmul.f32 %v10627_v30, %v10619_v47  ;;  %v10629_v18 = vpop.eup %10628  ;;  %v10082_v30 = vpack.c.bf16 %v8881_v27, %v8880_v26 }
0x351c   : > { %v6546_v5 = vpop.permute.xlu0 %6545  ;;  %v6544_v38 = vmul.f32 %v10629_v18, %v10621_v31  ;;  %v6882_v42 = vpop.permute.xlu1 %6881 }
0x351d   : > { %9635 = vmatmul.mubr.msk.f32.vlgmr.msra.gmra.mrb[52].mxu1 %vm4288_vm15, %v6376_v37 }
0x351e   : > { %9643 = vmatpush3.msk.msra.mxu1 %vm4292_vm14, %v6546_v5  ;;  %9644 = vmatprep.mubr.msk.f32.mxu1 %vm11104_vm12, %v11105_v2 }
0x351f   : > { %9652 = vmatprep.subr.mxu1 %v11105_v2  ;;  %v10631_v40 = vpop.eup %10630 }
0x3520   : > { %v6712_v13 = vmul.f32 %v10631_v40, %v10623_v15 }
0x3521   : > { %9645 = vmatmul.mubr.msk.f32.vlgmr.msra.gmra.mrb[54].mxu1 %vm4288_vm15, %v6544_v38 }
0x3522   : > { %9653 = vmatpush3.msk.msra.mxu1 %vm4292_vm14, %v6714_v39  ;;  %9654 = vmatprep.mubr.msk.f32.mxu1 %vm11104_vm12, %v11105_v2  ;;  %v8876_v39 = vld [vmem:[#allocation2 + $0x1] ss:$0 sm:$0xff] }
0x3523   : > { %9662 = vmatprep.subr.mxu1 %v11105_v2  ;;  %v10633_v41 = vpop.eup %10632 }
0x3524   : > { %v6880_v43 = vmul.f32 %v10633_v41, %v10625_v22 }
0x3525   : > { %9655 = vmatmul.mubr.msk.f32.vlgmr.msra.gmra.mrb[56].mxu1 %vm4288_vm15, %v6712_v13  ;;  %v8877_v13 = vld [vmem:[#allocation4 + $0x1] ss:$0 sm:$0xff] }
0x3526   : > { %9663 = vmatpush3.msk.msra.mxu1 %vm4292_vm14, %v6882_v42  ;;  %9664 = vmatprep.mubr.msk.f32.mxu1 %vm11104_vm12, %v11105_v2 }
0x3527   : > { %10078 = vmatprep.subr.bf16.mxu1 %v11103_v32 }
0x3529   : > { %9665 = vmatmul.mubr.msk.f32.vlgmr.msra.gmra.mrb[58].mxu1 %vm4288_vm15, %v6880_v43 }
0x352a   : > { %9686 = vmatprep.mubr.msk.f32.mxu1 %vm11104_vm12, %v11105_v2  ;;  %10080 = vmatpush3.bf16.msra.mxu1 %v10079_v25 }
0x352b   : > { %10081 = vmatprep.subr.bf16.mxu1 %v11103_v32 }
0x352e   : > { %10083 = vmatpush3.bf16.msra.mxu1 %v10082_v30 }
0x352f   : > { %10092 = vmatprep.subr.bf16.mxu1 %v11103_v32 }
0x35f0   : > { %v6450_v56 = vpop.f32.mrb[52].mxu1 }
0x35f1   : > { %v9636_v53 = vpop.f32.mrb[53].mxu1 }
0x35f4   : > { %v6618_v57 = vpop.f32.mrb[54].mxu1 }
0x35f5   : > { %6959 = vrot.lane.b32.xlu0 %v6618_v57, %s12637_s14  ;;  %v9646_v58 = vpop.f32.mrb[55].mxu1 }
0x35f8   : > { %v6786_v52 = vpop.f32.mrb[56].mxu1 }
0x35f9   : > { %6963 = vrot.lane.b32.xlu1 %v6786_v52, %s12639_s19  ;;  %v9656_v10 = vpop.f32.mrb[57].mxu1 }
0x35fc   : > { %v6954_v24 = vpop.f32.mrb[58].mxu1 }
0x35fd   : > { %6967 = vrot.lane.b32.xlu0 %v6954_v24, %s12640_s20  ;;  %v9666_v12 = vpop.f32.mrb[59].mxu1 }
0x3667   : > { %v6960_v59 = vpop.permute.xlu0 %6959 }
0x3668   : > { %v6970_v61 = vsel %vm1530_vm1, %v6450_v56, %v6960_v59 }
0x366b   : > { %v6964_v23 = vpop.permute.xlu1 %6963 }
0x366c   : > { %v6971_v63 = vsel %vm2364_vm8, %v6970_v61, %v6964_v23 }
0x366f   : > { %v6968_v36 = vpop.permute.xlu0 %6967 }
0x3670   : > { %v6972_v1 = vsel %vm2367_vm9, %v6971_v63, %v6968_v36 }
0x3671   : > { %9676 = vmatmul.mubr.msk.f32.vlgmr.msra.gmra.mrb[52].mxu0 %vm1442_vm0, %v6972_v1 }
0x3672   : > { %10087 = vmatpush3.bf16.msra.mxu0 %v10084_v55  ;;  %9697 = vmatprep.mubr.msk.f32.mxu0 %vm1442_vm0, %v12065_v33  ;;  %v8884_v33 = vld [vmem:[#allocation9 + $0x1] ss:$0 sm:$0xff] }
0x3673   : > { %10089 = vmatprep.subr.bf16.mxu0 %v10088_v0 }
0x3676   : > { %10091 = vmatpush3.bf16.msra.mxu0 %v10088_v0 }
0x3677   : > { %10096 = vmatprep.subr.bf16.mxu0 %v11103_v32 }
0x3679   : > { %9698 = vmatmul.mubr.msk.f32.vlgmr.msra.gmra.mrb[54].mxu0 %vm1442_vm0, %v12075_v20 }
0x367a   : > { %9711 = vmatprep.mubr.msk.f32.mxu0 %vm11104_vm12, %v11105_v2 }
0x3744   : > { %v7055_v3 = vpop.f32.mrb[52].mxu0 }
0x3745   : > { %v7056_v4 = vadd.f32 %v8874_v7, %v7055_v3  ;;  %v9677_v6 = vpop.f32.mrb[53].mxu0 }
0x3747   : > { %v7059_v8 = vadd.f32 %v7056_v4, %v12209_v29 }
0x3749   : > { %v7064_v48 = vsel %vm4971_vm3, %v7059_v8, 0.0 }
0x374a   : > { %7065 = vadd.xlane.f32.xlu1 %v7064_v48 }
0x374c   : > { %v9699_v9 = vpop.f32.mrb[54].mxu0 }
0x374d   : > { %v7262_v11 = vadd.f32 %v9699_v9, %v8884_v33  ;;  %v7256_v47 = vpop.f32.mrb[55].mxu0 }
0x374e   : > { %v7257_v20 = vadd.f32 %v8884_v33, %v7256_v47 }
0x3750   : > { %v12312_v31 = vpack.i.bf16 %v7262_v11, %v7257_v20  ;;  %v10093_v16 = vpack.c.bf16 %v7262_v11, %v7257_v20 }
0x37d7   : > { %v7066_v19 = vpop.xlane.xlu1 %7065 }
0x37d8   : > { %v7067_v15 = vmul.f32 0.03125, %v7066_v19 }
0x37da   : > { %v7068_v21 = vsub.f32 %v7059_v8, %v7067_v15 }
0x37dc   : > { %v7069_v22 = vmul.f32 %v7068_v21, %v7068_v21 }
0x37de   : > { %v7070_v29 = vsel %vm4971_vm3, %v7069_v22, 0.0 }
0x37df   : > { %7071 = vadd.xlane.f32.xlu0 %v7070_v29 }
0x37f5   : > { %10462 = vrot.lane.b32.xlu0 %v12312_v31, %s12629_s1 }
0x386c   : > { %v7072_v37 = vpop.xlane.xlu0 %7071 }
0x386d   : > { %v7073_v18 = vmul.f32 0.03125, %v7072_v37 }
0x386f   : > { %v7074_v5 = vadd.f32 1e-05, %v7073_v18 }
0x3870   : > { %v10463_v43 = vpop.permute.xlu0 %10462 }
0x3871   : > { %10634 = vrsqrt.f32 %v7074_v5  ;;  %v10465_v44 = vunpack.i.h.bf16 %v10463_v43  ;;  %v10464_v45 = vunpack.i.l.bf16 %v10463_v43 }
0x3873   : > { %v10101_v51 = vpack.c.bf16 %v10465_v44, %v10464_v45 }
0x387b   : > { %v10635_v38 = vpop.eup %10634 }
0x387c   : > { %v7076_v40 = vmul.f32 %v10635_v38, %v7068_v21 }
0x387e   : > { %v7083_v41 = vmul.f32 %v8876_v39, %v7076_v40 }
0x3880   : > { %v12323_v42 = vadd.f32 %v8877_v13, %v7083_v41 }
0x3882   : > { %9687 = vmatmul.mubr.msk.f32.vlgmr.msra.gmra.mrb[60].mxu1 %vm1442_vm0, %v12323_v42 }
0x3883   : > { %10095 = vmatpush3.bf16.xpose.msk.msra.mxu1 %vm11586_vm2, %v10093_v16  ;;  %9704 = vmatprep.mubr.msk.f32.mxu1 %vm11104_vm12, %v11105_v2 }
0x3884   : > { %10100 = vmatprep.subr.bf16.mxu1 %v11103_v32 }
0x3955   : > { %v7173_v50 = vpop.f32.mrb[60].mxu1 }
0x3956   : > { %v12332_v35 = vadd.f32 %v8882_v46, %v7173_v50  ;;  %v9688_v49 = vpop.f32.mrb[61].mxu1 }
0x3958   : > { %7436 = vrot.lane.b32.xlu1 %v12332_v35, %s12629_s1  ;;  %9705 = vmatmul.mubr.msk.f32.vlgmr.msra.gmra.mrb[62].mxu1 %vm1530_vm1, %v12332_v35 }
0x3959   : > { %10103 = vmatpush3.bf16.xpose.msk.msra.mxu1 %vm11586_vm2, %v10101_v51  ;;  %9718 = vmatprep.mubr.msk.f32.mxu1 %vm11104_vm12, %v11105_v2 }
0x395a   : > { %10112 = vmatprep.subr.bf16.mxu1 %v11103_v32 }
0x39ca   : > { %v7437_v54 = vpop.permute.xlu1 %7436 }
0x39cb   : > { %9719 = vmatmul.mubr.msk.f32.vlgmr.msra.gmra.mrb[64].mxu1 %vm1530_vm1, %v7437_v54 }
0x39cc   : > { %9739 = vmatprep.mubr.msk.f32.mxu1 %vm11104_vm12, %v11105_v2 }
0x3a2b   : > { %v7340_v55 = vpop.f32.mrb[62].mxu1 }
0x3a2c   : > { %v7344_v56 = vmul.f32 0.35355338, %v7340_v55  ;;  %v9706_v53 = vpop.f32.mrb[63].mxu1 }
0x3a2e   : > { %v7345_v57 = vsel %vm5255_vm5, %v7344_v56, -inf }
0x3a2f   : > { %7346 = vmax.xlane.f32.xlu1 %v7345_v57 }
0x3a40   : > { %10472 = vrot.lane.b32.xlu1 %v12312_v31, %s12644_s15 }
0x3a9e   : > { %v7514_v58 = vpop.f32.mrb[64].mxu1 }
0x3a9f   : > { %v7518_v52 = vmul.f32 0.35355338, %v7514_v58  ;;  %v9720_v10 = vpop.f32.mrb[65].mxu1 }
0x3aa1   : > { %v7519_v24 = vsel %vm5255_vm5, %v7518_v52, -inf }
0x3aa2   : > { %7520 = vmax.xlane.f32.xlu0 %v7519_v24 }
0x3abc   : > { %v7347_v12 = vpop.xlane.xlu1 %7346 }
0x3abd   : > { %v7348_v59 = vsub.f32 %v7344_v56, %v7347_v12 }
0x3abf   : > { %v7349_v23 = vmul.f32 1.442695, %v7348_v59 }
0x3ac0   : > { %v10473_v8 = vpop.permute.xlu1 %10472 }
0x3ac1   : > { %10636 = vpow2.f32 %v7349_v23  ;;  %v10475_v33 = vunpack.i.h.bf16 %v10473_v8  ;;  %v10474_v9 = vunpack.i.l.bf16 %v10473_v8 }
0x3ac3   : > { %v10105_v20 = vpack.c.bf16 %v10475_v33, %v10474_v9 }
0x3acb   : > { %v10637_v60 = vpop.eup %10636 }
0x3acc   : > { %v7351_v62 = vsel %vm5255_vm5, %v10637_v60, 0.0 }
0x3acd   : > { %7352 = vadd.xlane.f32.xlu0 %v7351_v62 }
0x3ae3   : > { %10467 = vrot.lane.b32.xlu0 %v12312_v31, %s12628_s3 }
0x3ae7   : > { %7610 = vrot.lane.b32.xlu0 %v12332_v35, %s12633_s8 }
0x3b2f   : > { %v7521_v61 = vpop.xlane.xlu0 %7520 }
0x3b30   : > { %v7522_v63 = vsub.f32 %v7518_v52, %v7521_v61 }
0x3b32   : > { %v7523_v36 = vmul.f32 1.442695, %v7522_v63 }
0x3b34   : > { %10638 = vpow2.f32 %v7523_v36 }
0x3b3e   : > { %v10639_v0 = vpop.eup %10638 }
0x3b3f   : > { %v7525_v1 = vsel %vm5255_vm5, %v10639_v0, 0.0 }
0x3b40   : > { %7526 = vadd.xlane.f32.xlu1 %v7525_v1 }
0x3b51   : > { %10477 = vrot.lane.b32.xlu1 %v12312_v31, %s12633_s8 }
0x3b5a   : > { %v7353_v7 = vpop.xlane.xlu0 %7352 }
0x3b5b   : > { %10640 = vrcp.f32 %v7353_v7 }
0x3b5e   : > { %v10468_v3 = vpop.permute.xlu0 %10467 }
0x3b5f   : > { %v10470_v4 = vunpack.i.h.bf16 %v10468_v3  ;;  %v10469_v6 = vunpack.i.l.bf16 %v10468_v3 }
0x3b61   : > { %v10097_v48 = vpack.c.bf16 %v10470_v4, %v10469_v6  ;;  %v7974_v4 = vld [vmem:[#allocation10 + $0x20] sm:$0xff]  ;;  %v7976_v6 = vld [vmem:[#allocation10 + $0x30] sm:$0xff] }
0x3b62   : > { %v7611_v14 = vpop.permute.xlu0 %7610  ;;  %v10125_v8 = vpack.c.bf16 %v7975_v34, %v7974_v4 }
0x3b63   : > { %10099 = vmatpush3.bf16.msk.msra.mxu0 %vm11604_vm7, %v10097_v48  ;;  %v7977_v48 = vld [vmem:[#allocation10 + $0x38] sm:$0xff] }
0x3b64   : > { %10104 = vmatprep.subr.bf16.mxu0 %v11103_v32  ;;  %v10128_v33 = vpack.c.bf16 %v7977_v48, %v7976_v6 }
0x3b65   : > { %v10641_v11 = vpop.eup %10640 }
0x3b66   : > { %v7355_v47 = vmul.f32 %v10641_v11, %v10637_v60 }
0x3b68   : > { %9712 = vmatmul.mubr.msk.f32.vlgmr.msra.gmra.mrb[56].mxu0 %vm1616_vm4, %v7355_v47 }
0x3b69   : > { %10107 = vmatpush3.bf16.msk.msra.mxu0 %vm11604_vm7, %v10105_v20  ;;  %9725 = vmatprep.mubr.msk.f32.mxu0 %vm11104_vm12, %v11105_v2 }
0x3b6a   : > { %10108 = vmatprep.subr.bf16.mxu0 %v11103_v32 }
0x3bcd   : > { %v7527_v16 = vpop.xlane.xlu1 %7526 }
0x3bce   : > { %10642 = vrcp.f32 %v7527_v16 }
0x3bd1   : > { %v10478_v19 = vpop.permute.xlu1 %10477 }
0x3bd2   : > { %v10480_v15 = vunpack.i.h.bf16 %v10478_v19  ;;  %v10479_v21 = vunpack.i.l.bf16 %v10478_v19 }
0x3bd4   : > { %v10109_v28 = vpack.c.bf16 %v10480_v15, %v10479_v21 }
0x3bd8   : > { %v10643_v22 = vpop.eup %10642 }
0x3bd9   : > { %v7529_v29 = vmul.f32 %v10643_v22, %v10639_v0  ;;  %v8907_v22 = vld [vmem:[#allocation12 + $0x1] ss:$0 sm:$0xff] }
0x3bdb   : > { %9726 = vmatmul.mubr.msk.f32.vlgmr.msra.gmra.mrb[58].mxu0 %vm1616_vm4, %v7529_v29 }
0x3bdc   : > { %10111 = vmatpush3.bf16.xpose.msk.msra.mxu0 %vm11586_vm2, %v10109_v28  ;;  %9732 = vmatprep.mubr.msk.f32.mxu0 %vm11104_vm12, %v11105_v2 }
0x3bdd   : > { %10120 = vmatprep.subr.bf16.mxu0 %v11103_v32 }
0x3be3   : > { %9733 = vmatmul.mubr.msk.f32.vlgmr.msra.gmra.mrb[60].mxu0 %vm1530_vm1, %v7611_v14 }
0x3be4   : > { %9753 = vmatprep.mubr.msk.f32.mxu0 %vm11104_vm12, %v11105_v2 }
0x3c3b   : > { %v12376_v25 = vpop.f32.mrb[56].mxu0 }
0x3c3c   : > { %v9713_v26 = vpop.f32.mrb[57].mxu0 }
0x3cae   : > { %v7606_v27 = vpop.f32.mrb[58].mxu0 }
0x3caf   : > { %v9727_v30 = vpop.f32.mrb[59].mxu0 }
0x3cb6   : > { %v7688_v37 = vpop.f32.mrb[60].mxu0 }
0x3cb7   : > { %v7692_v18 = vmul.f32 0.35355338, %v7688_v37  ;;  %v9734_v5 = vpop.f32.mrb[61].mxu0 }
0x3cb9   : > { %v7693_v38 = vsel %vm5255_vm5, %v7692_v18, -inf }
0x3cba   : > { %7694 = vmax.xlane.f32.xlu1 %v7693_v38  ;;  %v8092_v38 = vld [vmem:[#allocation16 + $0x20] sm:$0xff] }
0x3ccb   : > { %10487 = vrot.lane.b32.xlu1 %v12312_v31, %s12635_s12 }
0x3ccf   : > { %7784 = vrot.lane.b32.xlu1 %v12332_v35, %s12635_s12 }
0x3d47   : > { %v7695_v39 = vpop.xlane.xlu1 %7694 }
0x3d48   : > { %v7696_v40 = vsub.f32 %v7692_v18, %v7695_v39  ;;  %v8093_v39 = vld [vmem:[#allocation16 + $0x28] sm:$0xff] }
0x3d4a   : > { %v7697_v13 = vmul.f32 1.442695, %v7696_v40  ;;  %v10131_v40 = vpack.c.bf16 %v8093_v39, %v8092_v38 }
0x3d4b   : > { %v10488_v51 = vpop.permute.xlu1 %10487 }
0x3d4c   : > { %10644 = vpow2.f32 %v7697_v13  ;;  %v10490_v54 = vunpack.i.h.bf16 %v10488_v51  ;;  %v10489_v55 = vunpack.i.l.bf16 %v10488_v51  ;;  %v8095_v13 = vld [vmem:[#allocation16 + $0x38] sm:$0xff] }
0x3d4d   : > { %v8917_v51 = vld [vmem:[%s12651_s26 + $0x60] sm:$0xff] }
0x3d4e   : > { %v10117_v53 = vpack.c.bf16 %v10490_v54, %v10489_v55 }
0x3d4f   : > { %v7785_v57 = vpop.permute.xlu1 %7784 }
0x3d56   : > { %v10645_v41 = vpop.eup %10644 }
0x3d57   : > { %v7699_v43 = vsel %vm5255_vm5, %v10645_v41, 0.0 }
0x3d58   : > { %7700 = vadd.xlane.f32.xlu0 %v7699_v43  ;;  %v8913_v43 = vld [vmem:[%s12651_s26 + $0x40] sm:$0xff] }
0x3d6e   : > { %10482 = vrot.lane.b32.xlu0 %v12312_v31, %s12631_s5  ;;  %s12654_s5 = sld [smem:[#allocation64_spill]] }
0x3de5   : > { %v7701_v44 = vpop.xlane.xlu0 %7700 }
0x3de6   : > { %10646 = vrcp.f32 %v7701_v44  ;;  %v8914_v44 = vld [vmem:[%s12651_s26 + $0x48] sm:$0xff] }
0x3de9   : > { %v10483_v45 = vpop.permute.xlu0 %10482 }
0x3dea   : > { %v10485_v46 = vunpack.i.h.bf16 %v10483_v45  ;;  %v10484_v50 = vunpack.i.l.bf16 %v10483_v45  ;;  %v8915_v45 = vld [vmem:[%s12651_s26 + $0x50] sm:$0xff] }
0x3dec   : > { %v10113_v49 = vpack.c.bf16 %v10485_v46, %v10484_v50  ;;  %v10137_v46 = vpack.c.bf16 %v8914_v44, %v8913_v43  ;;  %v8916_v50 = vld [vmem:[%s12651_s26 + $0x58] sm:$0xff]  ;;  %v8928_v44 = vld [vmem:[%s11304_s21] ss:$0 sm:$0xff] }
0x3dee   : > { %10115 = vmatpush3.bf16.msk.msra.mxu1 %vm11604_vm7, %v10113_v49  ;;  %v10140_v49 = vpack.c.bf16 %v8916_v50, %v8915_v45 }
0x3def   : > { %10116 = vmatprep.subr.bf16.mxu1 %v11103_v32 }
0x3df0   : > { %v10647_v35 = vpop.eup %10646 }
0x3df1   : > { %v7703_v56 = vmul.f32 %v10647_v35, %v10645_v41  ;;  %v8918_v35 = vld [vmem:[%s12651_s26 + $0x68] sm:$0xff] }
0x3df2   : > { %v10143_v54 = vpack.c.bf16 %v8918_v35, %v8917_v51 }
0x3df3   : > { %9740 = vmatmul.mubr.msk.f32.vlgmr.msra.gmra.mrb[66].mxu1 %vm1616_vm4, %v7703_v56 }
0x3df4   : > { %9746 = vmatprep.mubr.msk.f32.mxu1 %vm11104_vm12, %v11105_v2 }
0x3df7   : > { %10119 = vmatpush3.bf16.xpose.msk.msra.mxu1 %vm11586_vm2, %v10117_v53 }
0x3df8   : > { %10130 = vmatprep.subr.bf16.mxu1 %v11103_v32 }
0x3dfe   : > { %9747 = vmatmul.mubr.msk.f32.vlgmr.msra.gmra.mrb[68].mxu1 %vm1530_vm1, %v7785_v57 }
0x3dff   : > { %9775 = vmatprep.mubr.msk.f32.mxu1 %vm11104_vm12, %v11105_v2  ;;  %10132 = vmatpush3.bf16.msra.mxu1 %v10131_v40 }
0x3e00   : > { %10133 = vmatprep.subr.bf16.mxu1 %v11103_v32 }
0x3ec6   : > { %v7780_v58 = vpop.f32.mrb[66].mxu1 }
0x3ec7   : > { %v9741_v52 = vpop.f32.mrb[67].mxu1 }
0x3ed1   : > { %v7862_v10 = vpop.f32.mrb[68].mxu1 }
0x3ed2   : > { %v7866_v24 = vmul.f32 0.35355338, %v7862_v10  ;;  %v9748_v12 = vpop.f32.mrb[69].mxu1  ;;  %v8910_v10 = vld [vmem:[#allocation15 + $0x1] ss:$0 sm:$0xff] }
0x3ed4   : > { %v7867_v59 = vsel %vm5255_vm5, %v7866_v24, -inf }
0x3ed5   : > { %7868 = vmax.xlane.f32.xlu0 %v7867_v59  ;;  %v8919_v59 = vld [vmem:[%s12651_s26 + $0x70] sm:$0xff] }
0x3eeb   : > { %10492 = vrot.lane.b32.xlu0 %v12312_v31, %s12634_s9  ;;  %s12655_s9 = sshll.u32 %s12657_s0, 3 }
0x3eec   : > { %s1428_s13 = scalar_lea.vmem %s11319_s24, %s12655_s9 }
0x3eef   : > { %7963 = vrot.lane.b32.xlu0 %v7780_v58, %s12639_s19  ;;  %v8909_v58 = vld [vmem:[#allocation13 + $0x1] ss:$0 sm:$0xff] }
0x3f62   : > { %v7869_v17 = vpop.xlane.xlu0 %7868 }
0x3f63   : > { %v7870_v23 = vsub.f32 %v7866_v24, %v7869_v17  ;;  %v8920_v17 = vld [vmem:[%s12651_s26 + $0x78] sm:$0xff] }
0x3f65   : > { %v7871_v60 = vmul.f32 1.442695, %v7870_v23  ;;  %v10146_v23 = vpack.c.bf16 %v8920_v17, %v8919_v59 }
0x3f66   : > { %v10493_v62 = vpop.permute.xlu0 %10492 }
0x3f67   : > { %10648 = vpow2.f32 %v7871_v60  ;;  %v10495_v61 = vunpack.i.h.bf16 %v10493_v62  ;;  %v10494_v63 = vunpack.i.l.bf16 %v10493_v62  ;;  %v8911_v60 = vld [vmem:[#allocation18 + $0x1] ss:$0 sm:$0xff] }
0x3f69   : > { %v10121_v36 = vpack.c.bf16 %v10495_v61, %v10494_v63 }
0x3f6a   : > { %v7964_v16 = vpop.permute.xlu0 %7963 }
0x3f6b   : > { %10123 = vmatpush3.bf16.msk.msra.mxu0 %vm11604_vm7, %v10121_v36 }
0x3f6c   : > { %10124 = vmatprep.subr.bf16.mxu0 %v11103_v32 }
0x3f71   : > { %v10649_v0 = vpop.eup %10648 }
0x3f72   : > { %v7873_v1 = vsel %vm5255_vm5, %v10649_v0, 0.0 }
0x3f73   : > { %7874 = vadd.xlane.f32.xlu1 %v7873_v1 }
0x3f84   : > { %7959 = vrot.lane.b32.xlu1 %v7606_v27, %s12637_s14 }
0x4000   : > { %v7875_v31 = vpop.xlane.xlu1 %7874 }
0x4001   : > { %10650 = vrcp.f32 %v7875_v31 }
0x4004   : > { %v7960_v47 = vpop.permute.xlu1 %7959 }
0x4005   : > { %v7970_v20 = vsel %vm1530_vm1, %v12376_v25, %v7960_v47  ;;  %vm8413_vm1 = vcmask 95232  }
0x4006   : > { %v7971_v19 = vsel %vm2364_vm8, %v7970_v20, %v7964_v16  ;;  %v8925_v20 = vld [vmem:[%s12652_s22 + $0x1] ss:$0 sm:$0xff] }
0x400b   : > { %v10651_v7 = vpop.eup %10650 }
0x400c   : > { %v7877_v3 = vmul.f32 %v10651_v7, %v10649_v0  ;;  %v8921_v0 = vld [vmem:[#allocation19 + $0x1] ss:$0 sm:$0xff] }
0x400e   : > { %9754 = vmatmul.mubr.msk.f32.vlgmr.msra.gmra.mrb[62].mxu0 %vm1616_vm4, %v7877_v3 }
0x400f   : > { %9764 = vmatprep.mubr.msk.f32.mxu0 %vm11104_vm12, %v11105_v2  ;;  %10126 = vmatpush3.bf16.msra.mxu0 %v10125_v8 }
0x4010   : > { %10127 = vmatprep.subr.bf16.mxu0 %v11103_v32 }
0x4013   : > { %10129 = vmatpush3.bf16.msra.mxu0 %v10128_v33 }
0x4014   : > { %10136 = vmatprep.subr.bf16.mxu0 %v11103_v32 }
0x40e1   : > { %v7954_v9 = vpop.f32.mrb[62].mxu0 }
0x40e2   : > { %7967 = vrot.lane.b32.xlu1 %v7954_v9, %s12640_s20  ;;  %v9755_v11 = vpop.f32.mrb[63].mxu0 }
0x4154   : > { %v7968_v15 = vpop.permute.xlu1 %7967 }
0x4155   : > { %v7972_v21 = vsel %vm2367_vm9, %v7971_v19, %v7968_v15  ;;  %v8926_v19 = vld [vmem:[%s12653_s27 + $0x1] ss:$0 sm:$0xff] }
0x4156   : > { %9765 = vmatmul.mubr.msk.f32.vlgmr.msra.gmra.mrb[64].mxu0 %vm1442_vm0, %v7972_v21 }
0x4157   : > { %9794 = vmatprep.mubr.msk.f32.mxu0 %vm11104_vm12, %v11105_v2  ;;  %10138 = vmatpush3.bf16.msra.mxu0 %v10137_v46 }
0x4158   : > { %10139 = vmatprep.subr.bf16.mxu0 %v11103_v32 }
0x415b   : > { %10141 = vmatpush3.bf16.msra.mxu0 %v10140_v49 }
0x415c   : > { %10142 = vmatprep.subr.bf16.mxu0 %v11103_v32 }
0x415f   : > { %10144 = vmatpush3.bf16.msra.mxu0 %v10143_v54 }
0x4160   : > { %10145 = vmatprep.subr.bf16.mxu0 %v11103_v32 }
0x4163   : > { %10147 = vmatpush3.bf16.msra.mxu0 %v10146_v23 }
0x4229   : > { %v8055_v29 = vpop.f32.mrb[64].mxu0 }
0x422a   : > { %v8056_v28 = vadd.f32 %v8907_v22, %v8055_v29  ;;  %v9766_v14 = vpop.f32.mrb[65].mxu0 }
0x422c   : > { %v8059_v26 = vadd.f32 %v8056_v28, %v12323_v42  ;;  %v8094_v42 = vld [vmem:[#allocation16 + $0x30] sm:$0xff] }
0x422d   : > { %v10134_v41 = vpack.c.bf16 %v8095_v13, %v8094_v42 }
0x422e   : > { %v8064_v27 = vsel %vm4971_vm3, %v8059_v26, 0.0 }
0x422f   : > { %8065 = vadd.xlane.f32.xlu0 %v8064_v27  ;;  %10135 = vmatpush3.bf16.msra.mxu1 %v10134_v41  ;;  %v8927_v41 = vld [vmem:[%s12654_s5] ss:$0 sm:$0xff] }
0x4230   : > { %10148 = vmatprep.subr.bf16.mxu1 %v11103_v32 }
0x42bc   : > { %v8066_v25 = vpop.xlane.xlu0 %8065 }
0x42bd   : > { %v8067_v30 = vmul.f32 0.03125, %v8066_v25  ;;  %v8329_v25 = vld [vmem:[%s11309_s29] sm:$0xff] }
0x42bf   : > { %v8068_v37 = vsub.f32 %v8059_v26, %v8067_v30  ;;  %v8330_v30 = vld [vmem:[%s11309_s29 + $0x8] sm:$0xff] }
0x42c1   : > { %v8069_v18 = vmul.f32 %v8068_v37, %v8068_v37 }
0x42c3   : > { %v8070_v5 = vsel %vm4971_vm3, %v8069_v18, 0.0  ;;  %v8331_v18 = vld [vmem:[%s11309_s29 + $0x10] sm:$0xff] }
0x42c4   : > { %8071 = vadd.xlane.f32.xlu1 %v8070_v5  ;;  %v8332_v5 = vld [vmem:[%s11309_s29 + $0x18] sm:$0xff] }
0x42c5   : > { %v10152_v38 = vpack.c.bf16 %v8332_v5, %v8331_v18 }
0x4351   : > { %v8072_v55 = vpop.xlane.xlu1 %8071 }
0x4352   : > { %v8073_v56 = vmul.f32 0.03125, %v8072_v55 }
0x4354   : > { %v8074_v53 = vadd.f32 1e-05, %v8073_v56 }
0x4356   : > { %10652 = vrsqrt.f32 %v8074_v53 }
0x4360   : > { %v10653_v57 = vpop.eup %10652 }
0x4361   : > { %v8076_v52 = vmul.f32 %v10653_v57, %v8068_v37  ;;  %v10149_v37 = vpack.c.bf16 %v8330_v30, %v8329_v25 }
0x4363   : > { %v8083_v24 = vmul.f32 %v8909_v58, %v8076_v52 }
0x4365   : > { %v8090_v12 = vadd.f32 %v8910_v10, %v8083_v24 }
0x4367   : > { %9776 = vmatmul.mubr.msk.f32.vlgmr.msra.gmra.mrb[70].mxu1 %vm1442_vm0, %v8090_v12 }
0x4368   : > { %9805 = vmatprep.mubr.msk.f32.mxu1 %vm11104_vm12, %v11105_v2  ;;  %10150 = vmatpush3.bf16.msra.mxu1 %v10149_v37 }
0x4369   : > { %10151 = vmatprep.subr.bf16.mxu1 %v11103_v32  ;;  %v8929_v32 = vld [vmem:[%s11314_s25] ss:$0 sm:$0xff] }
0x436c   : > { %10153 = vmatpush3.bf16.msra.mxu1 %v10152_v38 }
0x443a   : > { %v8173_v62 = vpop.f32.mrb[70].mxu1 }
0x443b   : > { %v8174_v61 = vadd.f32 %v8911_v60, %v8173_v62  ;;  %v9777_v63 = vpop.f32.mrb[71].mxu1 }
0x443d   : > { %v8177_v36 = vmax.f32 %v8174_v61, 0.0 }
0x443f   : > { %9795 = vmatmul.mubr.msk.f32.vlgmr.msra.gmra.mrb[66].mxu0 %vm2619_vm11, %v8177_v36 }
0x4512   : > { %v8264_v1 = vpop.f32.mrb[66].mxu0 }
0x4513   : > { %v8265_v31 = vadd.f32 %v8921_v0, %v8264_v1  ;;  %v9796_v7 = vpop.f32.mrb[67].mxu0 }
0x4515   : > { %v8268_v3 = vadd.f32 %v8265_v31, %v8090_v12 }
0x4517   : > { %v8273_v2 = vsel %vm4971_vm3, %v8268_v3, 0.0 }
0x4518   : > { %8274 = vadd.xlane.f32.xlu0 %v8273_v2 }
0x45a5   : > { %v8275_v4 = vpop.xlane.xlu0 %8274 }
0x45a6   : > { %v8276_v34 = vmul.f32 0.03125, %v8275_v4 }
0x45a8   : > { %v8277_v6 = vsub.f32 %v8268_v3, %v8276_v34 }
0x45aa   : > { %v8278_v8 = vmul.f32 %v8277_v6, %v8277_v6 }
0x45ac   : > { %v8279_v48 = vsel %vm4971_vm3, %v8278_v8, 0.0 }
0x45ad   : > { %8280 = vadd.xlane.f32.xlu0 %v8279_v48 }
0x463a   : > { %v8281_v33 = vpop.xlane.xlu0 %8280 }
0x463b   : > { %v8282_v9 = vmul.f32 0.03125, %v8281_v33 }
0x463d   : > { %v8283_v11 = vadd.f32 1e-05, %v8282_v9 }
0x463f   : > { %10654 = vrsqrt.f32 %v8283_v11 }
0x4649   : > { %v10655_v47 = vpop.eup %10654 }
0x464a   : > { %v8285_v16 = vmul.f32 %v10655_v47, %v8277_v6 }
0x464c   : > { %v8292_v15 = vmul.f32 %v8925_v20, %v8285_v16 }
0x464e   : > { %v8299_v21 = vadd.f32 %v8926_v19, %v8292_v15 }
0x4650   : > { %v8302_v22 = vsel %vm4971_vm3, %v8299_v21, 0.0 }
0x4651   : > { %8303 = vadd.xlane.f32.xlu1 %v8302_v22 }
0x46de   : > { %v8304_v29 = vpop.xlane.xlu1 %8303 }
0x46df   : > { %v8305_v28 = vmul.f32 0.03125, %v8304_v29 }
0x46e1   : > { %v8306_v14 = vsub.f32 %v8299_v21, %v8305_v28 }
0x46e3   : > { %v8307_v26 = vmul.f32 %v8306_v14, %v8306_v14 }
0x46e5   : > { %v8308_v27 = vsel %vm4971_vm3, %v8307_v26, 0.0 }
0x46e6   : > { %8309 = vadd.xlane.f32.xlu0 %v8308_v27 }
0x4773   : > { %v8310_v39 = vpop.xlane.xlu0 %8309 }
0x4774   : > { %v8311_v40 = vmul.f32 0.03125, %v8310_v39 }
0x4776   : > { %v8312_v42 = vadd.f32 1e-05, %v8311_v40 }
0x4778   : > { %10656 = vrsqrt.f32 %v8312_v42 }
0x4782   : > { %v10657_v13 = vpop.eup %10656 }
0x4783   : > { %v8314_v43 = vmul.f32 %v10657_v13, %v8306_v14 }
0x4785   : > { %v8321_v45 = vmul.f32 %v8927_v41, %v8314_v43 }
0x4787   : > { %v8328_v46 = vadd.f32 %v8928_v44, %v8321_v45 }
0x4789   : > { %9806 = vmatmul.mubr.msk.f32.vlgmr.msra.gmra.mrb[72].mxu1 %vm1442_vm0, %v8328_v46 }
0x485c   : > { %v8409_v50 = vpop.f32.mrb[72].mxu1 }
0x485d   : > { %v8410_v49 = vadd.f32 %v8929_v32, %v8409_v50  ;;  %v9807_v51 = vpop.f32.mrb[73].mxu1 }
0x485f   : > { %8414 = vst.msk [vmem:[%s1428_s13] sm:$0x3f] %vm8413_vm1, %v8410_v49 }
0x4860 PF: > { %s100_s7 = sadd.s32 1, %s11029_s7  }
0x4861   : > { %p97_p7 = scmp.ge.s32.totalorder %s100_s7, 4  }
0x4863   :  { %99 = sbr.rel (!%p97_p7) target bundleno = 88 (0x58), region = 339 }
0x486a   :  { %8434 = vsyncpa [#allocation3], 1 }
0x486b   :  { %8436 = vsyncpa [#allocation3 + $0x1], 1 }
0x486c   :  { %8437 = vsyncpa [#allocation5], 1 }
0x486d   :  { %8438 = vsyncpa [#allocation8], 1 }
0x486e   :  { %8439 = vsyncpa [#allocation11], 1 }
0x486f   :  { %8440 = vsyncpa [#allocation14], 1 }
0x4870   :  { %8441 = vsyncpa [#allocation17], 1 }
0x4871   :  { %8442 = vsyncpa [#allocation20], 1 }

</bundles_post_ra>
